<compile_context>
chip_gen: v5e
topology: v5e:2x2
jax: 0.10.0
libtpu: 0.0.40
codegen_flags: <defaults>
</compile_context>

<pallas_src>
import jax
import jax.numpy as jnp
from jax.experimental import pallas as pl
from jax.experimental.pallas import tpu as pltpu


# ----------------------------------------------------------------------------
# Pallas kernels
# ----------------------------------------------------------------------------
def _conv_mm_kernel(p_ref, w_ref, b_ref, o_ref):
    # p_ref: (M, K) bf16 patches, w_ref: (K, N) bf16, b_ref: (1, N) f32
    acc = jnp.dot(p_ref[...], w_ref[...], preferred_element_type=jnp.float32)
    acc = jnp.maximum(acc + b_ref[...], 0.0)          # f32 epilogue (v5e-safe)
    o_ref[...] = acc.astype(o_ref.dtype)


def _mlp_kernel(x_ref, w3_ref, b3_ref, w4_ref, b4_ref, o_ref):
    # fused hidden_linear + ReLU + output_linear; hidden never leaves VMEM.
    h = jnp.dot(x_ref[...], w3_ref[...], preferred_element_type=jnp.float32)
    h = jnp.maximum(h + b3_ref[...], 0.0)
    out = jnp.dot(h.astype(jnp.bfloat16), w4_ref[...],
                  preferred_element_type=jnp.float32)
    o_ref[...] = (out + b4_ref[...]).astype(o_ref.dtype)


def conv_matmul(patches, w, b):
    """relu(patches @ w + b), gridded over batch. patches: (B, M, K) bf16."""
    B, M, K = patches.shape
    N = w.shape[1]
    flops = 2 * B * M * K * N
    bytes_accessed = patches.size * 2 + w.size * 2 + b.size * 4 + B * M * N * 2
    return pl.pallas_call(
        _conv_mm_kernel,
        out_shape=jax.ShapeDtypeStruct((B, M, N), jnp.bfloat16),
        grid=(B,),
        in_specs=[
            pl.BlockSpec((None, M, K), lambda i: (i, 0, 0)),
            pl.BlockSpec((K, N), lambda i: (0, 0)),
            pl.BlockSpec((1, N), lambda i: (0, 0)),
        ],
        out_specs=pl.BlockSpec((None, M, N), lambda i: (i, 0, 0)),
        compiler_params=pltpu.CompilerParams(
            dimension_semantics=("parallel",),
            vmem_limit_bytes=32 * 1024 * 1024,
        ),
        cost_estimate=pl.CostEstimate(
            flops=flops, transcendentals=0, bytes_accessed=bytes_accessed),
    )(patches, w, b)


def mlp_fused(x, w3, b3, w4, b4):
    """relu(x @ w3 + b3) @ w4 + b4 in one kernel. x: (B, K) bf16."""
    B, K = x.shape
    H = w3.shape[1]
    N = w4.shape[1]
    flops = 2 * B * (K * H + H * N)
    bytes_accessed = (x.size * 2 + w3.size * 2 + w4.size * 2
                      + b3.size * 4 + b4.size * 4 + B * N * 4)
    vmem = pl.BlockSpec(memory_space=pltpu.MemorySpace.VMEM)
    return pl.pallas_call(
        _mlp_kernel,
        out_shape=jax.ShapeDtypeStruct((B, N), jnp.float32),
        in_specs=[vmem, vmem, vmem, vmem, vmem],
        out_specs=vmem,
        compiler_params=pltpu.CompilerParams(
            vmem_limit_bytes=32 * 1024 * 1024),
        cost_estimate=pl.CostEstimate(
            flops=flops, transcendentals=0, bytes_accessed=bytes_accessed),
    )(x, w3, b3, w4, b4)


# ----------------------------------------------------------------------------
# Glue: space-to-depth patch extraction (k == 2*stride for both convs).
# Patch feature order per output pixel is (bi, bj, hr, wr, c) with
# kh = stride*bi + hr, kw = stride*bj + wr; the matching conv weight
# rearrangement is done once in prepare_params.
# ----------------------------------------------------------------------------
def _patches_k2s(x, stride):
    """x: (B, H, W, C) NHWC -> (B, OH*OW, k*k*C) patches, k = 2*stride, VALID."""
    B, H, W, C = x.shape
    s = stride
    hb, wb = H // s, W // s
    oh, ow = hb - 1, wb - 1
    xs = x.reshape(B, hb, s, wb, s, C)
    xs = xs.transpose(0, 1, 3, 2, 4, 5).reshape(B, hb, wb, s * s * C)
    parts = [xs[:, bi:bi + oh, bj:bj + ow, :]
             for bi in (0, 1) for bj in (0, 1)]
    p = jnp.concatenate(parts, axis=-1)                  # (B, oh, ow, 4*s*s*C)
    return p.reshape(B, oh * ow, 4 * s * s * C)


def _rearrange_conv_weight(w, stride):
    """(OC, C, k, k) PyTorch conv weight -> (k*k*C, OC) matching _patches_k2s."""
    oc, c, k, _ = w.shape
    s = stride
    w = w.reshape(oc, c, 2, s, 2, s)                     # (oc, c, bi, hr, bj, wr)
    w = w.transpose(2, 4, 3, 5, 1, 0)                    # (bi, bj, hr, wr, c, oc)
    return w.reshape(k * k * c, oc)


def prepare_params(params):
    """One-time, off-the-hot-path weight rearrangement + bf16 cast."""
    bf = lambda a: a.astype(jnp.bfloat16)
    f32 = lambda a: a.astype(jnp.float32)
    # fc1 consumes the NHWC (pixel-major, channel-minor) flatten; permute its
    # columns once so no activation transpose / relayout is needed at runtime.
    w3 = params["fc1_w"].reshape(256, 32, 81).transpose(2, 1, 0).reshape(2592, 256)
    return {
        "w1": bf(_rearrange_conv_weight(params["conv1_w"], 4)),   # (256, 16)
        "b1": f32(params["conv1_b"]).reshape(1, -1),
        "w2": bf(_rearrange_conv_weight(params["conv2_w"], 2)),   # (256, 32)
        "b2": f32(params["conv2_b"]).reshape(1, -1),
        "w3": bf(w3),                                             # (2592, 256)
        "b3": f32(params["fc1_b"]).reshape(1, -1),
        "w4": bf(params["fc2_w"].T),                              # (256, A)
        "b4": f32(params["fc2_b"]).reshape(1, -1),
    }


# ----------------------------------------------------------------------------
# Full forward pass: conv(4->16,k8,s4)+ReLU -> conv(16->32,k4,s2)+ReLU
#                    -> flatten -> Linear(2592->256)+ReLU -> Linear(256->A)
# ----------------------------------------------------------------------------
def dql_forward(x, p):
    """x: (B, 4, 84, 84) float32 NCHW (same interface as the PyTorch module)."""
    B = x.shape[0]
    xh = x.astype(jnp.bfloat16).transpose(0, 2, 3, 1)    # NHWC, channels in lanes

    p1 = _patches_k2s(xh, stride=4)                      # (B, 400, 256)
    a1 = conv_matmul(p1, p["w1"], p["b1"])               # (B, 400, 16) bf16
    a1 = a1.reshape(B, 20, 20, 16)

    p2 = _patches_k2s(a1, stride=2)                      # (B, 81, 256)
    a2 = conv_matmul(p2, p["w2"], p["b2"])               # (B, 81, 32) bf16

    flat = a2.reshape(B, 32 * 9 * 9)                     # metadata-only reshape
    return mlp_fused(flat, p["w3"], p["b3"], p["w4"], p["b4"])   # (B, A) f32


# ----------------------------------------------------------------------------
# Deterministic parameter init (PyTorch-like uniform fan-in bound).
# ----------------------------------------------------------------------------
def init_params(key, output_size):
    keys = jax.random.split(key, 8)

    def uni(k, shape, fan_in):
        bound = 1.0 / jnp.sqrt(fan_in)
        return jax.random.uniform(k, shape, jnp.float32, -bound, bound)

    return {
        "conv1_w": uni(keys[0], (16, 4, 8, 8), 4 * 8 * 8),
        "conv1_b": uni(keys[1], (16,), 4 * 8 * 8),
        "conv2_w": uni(keys[2], (32, 16, 4, 4), 16 * 4 * 4),
        "conv2_b": uni(keys[3], (32,), 16 * 4 * 4),
        "fc1_w": uni(keys[4], (256, 32 * 9 * 9), 32 * 9 * 9),
        "fc1_b": uni(keys[5], (256,), 32 * 9 * 9),
        "fc2_w": uni(keys[6], (output_size, 256), 256),
        "fc2_b": uni(keys[7], (output_size,), 256),
    }


if __name__ == "__main__":
    # Spatial size 84x84 is forced by hidden_linear expecting 32*9*9 features.
    batch = 2
    output_size = 6
    key = jax.random.PRNGKey(0)
    pkey, xkey = jax.random.split(key)
    params = init_params(pkey, output_size)
    x = jax.random.normal(xkey, (batch, 4, 84, 84), dtype=jnp.float32)

    prepared = prepare_params(params)          # one-time, outside the hot path
    forward = jax.jit(dql_forward)
    out = jax.block_until_ready(forward(x, prepared))
    assert out.shape == (batch, output_size)

    # sanity check vs. pure-JAX f32 reference of the same math
    def ref_forward(x, p):
        r = jax.lax.conv_general_dilated(
            x, p["conv1_w"], (4, 4), "VALID",
            dimension_numbers=("NCHW", "OIHW", "NCHW"))
        r = jnp.maximum(r + p["conv1_b"][None, :, None, None], 0.0)
        r = jax.lax.conv_general_dilated(
            r, p["conv2_w"], (2, 2), "VALID",
            dimension_numbers=("NCHW", "OIHW", "NCHW"))
        r = jnp.maximum(r + p["conv2_b"][None, :, None, None], 0.0)
        r = r.reshape(r.shape[0], -1)
        r = jnp.maximum(r @ p["fc1_w"].T + p["fc1_b"], 0.0)
        return r @ p["fc2_w"].T + p["fc2_b"]

    ref = ref_forward(x, params)
    # bf16 MXU inputs with f32 accumulation -> compare at a bf16-appropriate tol.
    assert jnp.allclose(out, ref, atol=2e-2, rtol=2e-2), (
        float(jnp.max(jnp.abs(out - ref))))

    print("KERNEL_OK")
</pallas_src>

<mosaic_0001>
module attributes {stable_mosaic.version = 11 : i64} {
  func.func @_conv_mm_kernel(%arg0: i32, %arg1: memref<1x400x256xbf16, #tpu.memory_space<vmem>>, %arg2: memref<256x16xbf16, #tpu.memory_space<vmem>>, %arg3: memref<1x16xf32, #tpu.memory_space<vmem>>, %arg4: memref<1x400x16xbf16, #tpu.memory_space<vmem>>) attributes {dimension_semantics = [#tpu.dimension_semantics<parallel>], iteration_bounds = array<i64: 2>, scalar_prefetch = 0 : i64, scratch_operands = 0 : i64, tpu.core_type = #tpu.core_type<tc>, window_params = [{transform_indices = @transform_0, window_bounds = array<i64: 1, 400, 256>}, {pipeline_mode = #tpu.pipeline_mode<synchronous>, transform_indices = @transform_1, window_bounds = array<i64: 256, 16>}, {pipeline_mode = #tpu.pipeline_mode<synchronous>, transform_indices = @transform_2, window_bounds = array<i64: 1, 16>}, {transform_indices = @transform_3, window_bounds = array<i64: 1, 400, 16>}]} {
    %c0 = arith.constant 0 : index
    %c0_0 = arith.constant 0 : index
    %c0_1 = arith.constant 0 : index
    %0 = vector.load %arg1[%c0, %c0_0, %c0_1] : memref<1x400x256xbf16, #tpu.memory_space<vmem>>, vector<1x400x256xbf16>
    %1 = vector.shape_cast %0 : vector<1x400x256xbf16> to vector<400x256xbf16>
    %c0_2 = arith.constant 0 : index
    %c0_3 = arith.constant 0 : index
    %2 = vector.load %arg2[%c0_2, %c0_3] : memref<256x16xbf16, #tpu.memory_space<vmem>>, vector<256x16xbf16>
    %cst = arith.constant dense<0.000000e+00> : vector<400x16xf32>
    %3 = tpu.matmul %1, %2, %cst {dimension_numbers = #tpu.dot_dimension_numbers<[1], [0], [0], [1], [0, 0, 1, 1], [], []>} : vector<400x256xbf16>, vector<256x16xbf16>, vector<400x16xf32> -> vector<400x16xf32>
    %c0_4 = arith.constant 0 : index
    %c0_5 = arith.constant 0 : index
    %4 = vector.load %arg3[%c0_4, %c0_5] : memref<1x16xf32, #tpu.memory_space<vmem>>, vector<1x16xf32>
    %5 = vector.broadcast %4 : vector<1x16xf32> to vector<400x16xf32>
    %6 = arith.addf %3, %5 : vector<400x16xf32>
    %cst_6 = arith.constant 0.000000e+00 : f32
    %7 = vector.broadcast %cst_6 : f32 to vector<400x16xf32>
    %8 = arith.maximumf %6, %7 : vector<400x16xf32>
    %9 = arith.truncf %8 : vector<400x16xf32> to vector<400x16xbf16>
    %c0_7 = arith.constant 0 : index
    %c0_8 = arith.constant 0 : index
    %c0_9 = arith.constant 0 : index
    %10 = vector.load %arg4[%c0_7, %c0_8, %c0_9] : memref<1x400x16xbf16, #tpu.memory_space<vmem>>, vector<1x400x16xbf16>
    %11 = vector.shape_cast %10 : vector<1x400x16xbf16> to vector<400x16xbf16>
    %12 = vector.shape_cast %9 : vector<400x16xbf16> to vector<1x400x16xbf16>
    tpu.vector_store %arg4[%c0_7, %c0_8, %c0_9], %12 {strides = array<i32>} : memref<1x400x16xbf16, #tpu.memory_space<vmem>>, vector<1x400x16xbf16>,
    return
  }
  func.func @transform_0(%arg0: i32) -> (i32, i32, i32) {
    %c0_i32 = arith.constant 0 : i32
    %c0_i32_0 = arith.constant 0 : i32
    %c0_i32_1 = arith.constant 0 : i32
    return %arg0, %c0_i32, %c0_i32_0 : i32, i32, i32
  }
  func.func @transform_1(%arg0: i32) -> (i32, i32) {
    %c0_i32 = arith.constant 0 : i32
    %c0_i32_0 = arith.constant 0 : i32
    %c0_i32_1 = arith.constant 0 : i32
    return %c0_i32, %c0_i32_0 : i32, i32
  }
  func.func @transform_2(%arg0: i32) -> (i32, i32) {
    %c0_i32 = arith.constant 0 : i32
    %c0_i32_0 = arith.constant 0 : i32
    %c0_i32_1 = arith.constant 0 : i32
    return %c0_i32, %c0_i32_0 : i32, i32
  }
  func.func @transform_3(%arg0: i32) -> (i32, i32, i32) {
    %c0_i32 = arith.constant 0 : i32
    %c0_i32_0 = arith.constant 0 : i32
    %c0_i32_1 = arith.constant 0 : i32
    return %arg0, %c0_i32, %c0_i32_0 : i32, i32, i32
  }
}

module attributes {stable_mosaic.version = 11 : i64} {
  func.func @_conv_mm_kernel(%arg0: i32, %arg1: memref<1x81x256xbf16, #tpu.memory_space<vmem>>, %arg2: memref<256x32xbf16, #tpu.memory_space<vmem>>, %arg3: memref<1x32xf32, #tpu.memory_space<vmem>>, %arg4: memref<1x81x32xbf16, #tpu.memory_space<vmem>>) attributes {dimension_semantics = [#tpu.dimension_semantics<parallel>], iteration_bounds = array<i64: 2>, scalar_prefetch = 0 : i64, scratch_operands = 0 : i64, tpu.core_type = #tpu.core_type<tc>, window_params = [{transform_indices = @transform_0, window_bounds = array<i64: 1, 81, 256>}, {pipeline_mode = #tpu.pipeline_mode<synchronous>, transform_indices = @transform_1, window_bounds = array<i64: 256, 32>}, {pipeline_mode = #tpu.pipeline_mode<synchronous>, transform_indices = @transform_2, window_bounds = array<i64: 1, 32>}, {transform_indices = @transform_3, window_bounds = array<i64: 1, 81, 32>}]} {
    %c0 = arith.constant 0 : index
    %c0_0 = arith.constant 0 : index
    %c0_1 = arith.constant 0 : index
    %0 = vector.load %arg1[%c0, %c0_0, %c0_1] : memref<1x81x256xbf16, #tpu.memory_space<vmem>>, vector<1x81x256xbf16>
    %1 = vector.shape_cast %0 : vector<1x81x256xbf16> to vector<81x256xbf16>
    %c0_2 = arith.constant 0 : index
    %c0_3 = arith.constant 0 : index
    %2 = vector.load %arg2[%c0_2, %c0_3] : memref<256x32xbf16, #tpu.memory_space<vmem>>, vector<256x32xbf16>
    %cst = arith.constant dense<0.000000e+00> : vector<81x32xf32>
    %3 = tpu.matmul %1, %2, %cst {dimension_numbers = #tpu.dot_dimension_numbers<[1], [0], [0], [1], [0, 0, 1, 1], [], []>} : vector<81x256xbf16>, vector<256x32xbf16>, vector<81x32xf32> -> vector<81x32xf32>
    %c0_4 = arith.constant 0 : index
    %c0_5 = arith.constant 0 : index
    %4 = vector.load %arg3[%c0_4, %c0_5] : memref<1x32xf32, #tpu.memory_space<vmem>>, vector<1x32xf32>
    %5 = vector.broadcast %4 : vector<1x32xf32> to vector<81x32xf32>
    %6 = arith.addf %3, %5 : vector<81x32xf32>
    %cst_6 = arith.constant 0.000000e+00 : f32
    %7 = vector.broadcast %cst_6 : f32 to vector<81x32xf32>
    %8 = arith.maximumf %6, %7 : vector<81x32xf32>
    %9 = arith.truncf %8 : vector<81x32xf32> to vector<81x32xbf16>
    %c0_7 = arith.constant 0 : index
    %c0_8 = arith.constant 0 : index
    %c0_9 = arith.constant 0 : index
    %10 = vector.load %arg4[%c0_7, %c0_8, %c0_9] : memref<1x81x32xbf16, #tpu.memory_space<vmem>>, vector<1x81x32xbf16>
    %11 = vector.shape_cast %10 : vector<1x81x32xbf16> to vector<81x32xbf16>
    %12 = vector.shape_cast %9 : vector<81x32xbf16> to vector<1x81x32xbf16>
    tpu.vector_store %arg4[%c0_7, %c0_8, %c0_9], %12 {strides = array<i32>} : memref<1x81x32xbf16, #tpu.memory_space<vmem>>, vector<1x81x32xbf16>,
    return
  }
  func.func @transform_0(%arg0: i32) -> (i32, i32, i32) {
    %c0_i32 = arith.constant 0 : i32
    %c0_i32_0 = arith.constant 0 : i32
    %c0_i32_1 = arith.constant 0 : i32
    return %arg0, %c0_i32, %c0_i32_0 : i32, i32, i32
  }
  func.func @transform_1(%arg0: i32) -> (i32, i32) {
    %c0_i32 = arith.constant 0 : i32
    %c0_i32_0 = arith.constant 0 : i32
    %c0_i32_1 = arith.constant 0 : i32
    return %c0_i32, %c0_i32_0 : i32, i32
  }
  func.func @transform_2(%arg0: i32) -> (i32, i32) {
    %c0_i32 = arith.constant 0 : i32
    %c0_i32_0 = arith.constant 0 : i32
    %c0_i32_1 = arith.constant 0 : i32
    return %c0_i32, %c0_i32_0 : i32, i32
  }
  func.func @transform_3(%arg0: i32) -> (i32, i32, i32) {
    %c0_i32 = arith.constant 0 : i32
    %c0_i32_0 = arith.constant 0 : i32
    %c0_i32_1 = arith.constant 0 : i32
    return %arg0, %c0_i32, %c0_i32_0 : i32, i32, i32
  }
}

module attributes {stable_mosaic.version = 11 : i64} {
  func.func @_mlp_kernel(%arg0: memref<2x2592xbf16, #tpu.memory_space<vmem>>, %arg1: memref<2592x256xbf16, #tpu.memory_space<vmem>>, %arg2: memref<1x256xf32, #tpu.memory_space<vmem>>, %arg3: memref<256x6xbf16, #tpu.memory_space<vmem>>, %arg4: memref<1x6xf32, #tpu.memory_space<vmem>>, %arg5: memref<2x6xf32, #tpu.memory_space<vmem>>) attributes {dimension_semantics = [], scalar_prefetch = 0 : i64, scratch_operands = 0 : i64, tpu.core_type = #tpu.core_type<tc>} {
    %c0 = arith.constant 0 : index
    %c0_0 = arith.constant 0 : index
    %0 = vector.load %arg0[%c0, %c0_0] : memref<2x2592xbf16, #tpu.memory_space<vmem>>, vector<2x2592xbf16>
    %c0_1 = arith.constant 0 : index
    %c0_2 = arith.constant 0 : index
    %1 = vector.load %arg1[%c0_1, %c0_2] : memref<2592x256xbf16, #tpu.memory_space<vmem>>, vector<2592x256xbf16>
    %cst = arith.constant dense<0.000000e+00> : vector<2x256xf32>
    %2 = tpu.matmul %0, %1, %cst {dimension_numbers = #tpu.dot_dimension_numbers<[1], [0], [0], [1], [0, 0, 1, 1], [], []>} : vector<2x2592xbf16>, vector<2592x256xbf16>, vector<2x256xf32> -> vector<2x256xf32>
    %c0_3 = arith.constant 0 : index
    %c0_4 = arith.constant 0 : index
    %3 = vector.load %arg2[%c0_3, %c0_4] : memref<1x256xf32, #tpu.memory_space<vmem>>, vector<1x256xf32>
    %4 = vector.broadcast %3 : vector<1x256xf32> to vector<2x256xf32>
    %5 = arith.addf %2, %4 : vector<2x256xf32>
    %cst_5 = arith.constant 0.000000e+00 : f32
    %6 = vector.broadcast %cst_5 : f32 to vector<2x256xf32>
    %7 = arith.maximumf %5, %6 : vector<2x256xf32>
    %8 = arith.truncf %7 : vector<2x256xf32> to vector<2x256xbf16>
    %c0_6 = arith.constant 0 : index
    %c0_7 = arith.constant 0 : index
    %9 = vector.load %arg3[%c0_6, %c0_7] : memref<256x6xbf16, #tpu.memory_space<vmem>>, vector<256x6xbf16>
    %cst_8 = arith.constant dense<0.000000e+00> : vector<2x6xf32>
    %10 = tpu.matmul %8, %9, %cst_8 {dimension_numbers = #tpu.dot_dimension_numbers<[1], [0], [0], [1], [0, 0, 1, 1], [], []>} : vector<2x256xbf16>, vector<256x6xbf16>, vector<2x6xf32> -> vector<2x6xf32>
    %c0_9 = arith.constant 0 : index
    %c0_10 = arith.constant 0 : index
    %11 = vector.load %arg4[%c0_9, %c0_10] : memref<1x6xf32, #tpu.memory_space<vmem>>, vector<1x6xf32>
    %12 = vector.broadcast %11 : vector<1x6xf32> to vector<2x6xf32>
    %13 = arith.addf %10, %12 : vector<2x6xf32>
    %c0_11 = arith.constant 0 : index
    %c0_12 = arith.constant 0 : index
    %14 = vector.load %arg5[%c0_11, %c0_12] : memref<2x6xf32, #tpu.memory_space<vmem>>, vector<2x6xf32>
    tpu.vector_store %arg5[%c0_11, %c0_12], %13 {strides = array<i32>} : memref<2x6xf32, #tpu.memory_space<vmem>>, vector<2x6xf32>,
    return
  }
}

</mosaic_0001>

<bundles_post_ra>
// kernel: dql_forward.3
= control target key start
LH: loop header
LB: loop body
LE: loop exit
PB: predicated region body
PF: predicated region fallthrough
CT: control target
= control target key end

     0   :  { %s1471_s12 = smov 0   ;;  %s1805_s0 = inlined_call_operand.vmem [shape: bf16[2,400,256], index: 0, kind: input, shape index: {}]   ;;  %s1806_s1 = inlined_call_operand.vmem [shape: bf16[256,16], index: 1, kind: input, shape index: {}]   ;;  %s1807_s2 = inlined_call_operand.vmem [shape: f32[1,16], index: 2, kind: input, shape index: {}]   ;;  %s1808_s3 = inlined_call_operand.vmem [shape: bf16[2,400,16], index: 3, kind: output, shape index: {}]  }
   0x1 LB: > { %s1077_s13 = sadd.s32 4294967295, %s1449_s12   ;;  %p1081_p0 = scmp.ge.s32.totalorder %s1449_s12, 1  ;;  %s1449_s12 = sphi %s1471_s12, %s13_s12  }
   0x2   : > { %p137_p1 = scmp.lt.s32.totalorder %s1449_s12, 3 }
   0x4   : > { %p138_p2 = pnand %p1081_p0, %p137_p1 }
   0x5   : > { %p161_p3 = scmp.lt.s32.totalorder (!%p138_p2), %s1077_s13, 1 }
   0x6   : > { %141 = sbr.rel (%p138_p2) target bundleno = 384 (0x180), region = 32 }
   0xb   : > { %v1407_v0 = vld [vmem:[%s1806_s1 + $0x38] sm:$0xff]  ;;  %v1406_v2 = vld [vmem:[%s1806_s1 + $0x30] sm:$0xff]  ;;  %v1405_v4 = vld [vmem:[%s1806_s1 + $0x28] sm:$0xff]  ;;  %s1810_s13 = smov (!%p161_p3, %s1077_s13), 1  ;;  %vm971_vm0 = vcmask 125952  }
   0xc   : > { %v1415_v1 = vld [vmem:[%s1806_s1 + $0x78] sm:$0xff]  ;;  %603 = vmatpush.bf16.msra.mxu0 %v1407_v0  ;;  %1416 = vmatpush.bf16.msra.mxu2 %v1407_v0  ;;  %v1414_v3 = vld [vmem:[%s1806_s1 + $0x70] sm:$0xff]  ;;  %v1413_v5 = vld [vmem:[%s1806_s1 + $0x68] sm:$0xff]  ;;  %s1432_s9 = smul.u32 400, %s1810_s13 }
   0xd   : > { %737 = vmatpush.bf16.msra.mxu1 %v1415_v1  ;;  %1424 = vmatpush.bf16.msra.mxu3 %v1415_v1  ;;  %v1404_v6 = vld [vmem:[%s1806_s1 + $0x20] sm:$0xff]  ;;  %v1403_v8 = vld [vmem:[%s1806_s1 + $0x18] sm:$0xff]  ;;  %v1402_v10 = vld [vmem:[%s1806_s1 + $0x10] sm:$0xff]  ;;  %s1433_s27 = smul.u32 200, %s1810_s13 }
   0xe   : > { %v1412_v7 = vld [vmem:[%s1806_s1 + $0x60] sm:$0xff]  ;;  %v1411_v9 = vld [vmem:[%s1806_s1 + $0x58] sm:$0xff]  ;;  %v1410_v11 = vld [vmem:[%s1806_s1 + $0x50] sm:$0xff]  ;;  %s1524_s18 = scalar_lea.vmem %s1805_s0, %s1432_s9 }
   0xf   : > { %v1401_v12 = vld [vmem:[%s1806_s1 + $0x8] sm:$0xff]  ;;  %v1400_v14 = vld [vmem:[%s1806_s1] sm:$0xff]  ;;  %v1376_v22 = vld [vmem:[%s1524_s18 + $0xd4] sm:$0xf]  ;;  %s1617_s30 = scalar_lea.vmem %s1808_s3, %s1433_s27 }
  0x10   : > { %604 = vmatpush.bf16.msra.mxu0 %v1406_v2  ;;  %1417 = vmatpush.bf16.msra.mxu2 %v1406_v2  ;;  %v1409_v13 = vld [vmem:[%s1806_s1 + $0x48] sm:$0xff]  ;;  %v1408_v15 = vld [vmem:[%s1806_s1 + $0x40] sm:$0xff]  ;;  %v1192_v23 = vld [vmem:[%s1524_s18 + $0xd8] sm:$0xf0] }
  0x11   : > { %738 = vmatpush.bf16.msra.mxu1 %v1414_v3  ;;  %1425 = vmatpush.bf16.msra.mxu3 %v1414_v3  ;;  %v1086_v16 = vld [vmem:[%s1524_s18] sm:$0xf]  ;;  %v1351_v17 = vld [vmem:[%s1524_s18 + $0x4] sm:$0xf0]  ;;  %v1350_v20 = vld [vmem:[%s1524_s18 + $0x4] sm:$0xf]  ;;  %v1195_v27 = vor.u32 %v1376_v22, %v1192_v23 }
  0x12   : > { %v1182_v18 = vld [vmem:[%s1524_s18 + $0xc0] sm:$0xf]  ;;  %v1375_v19 = vld [vmem:[%s1524_s18 + $0xc4] sm:$0xf0]  ;;  %v1088_v21 = vld [vmem:[%s1524_s18 + $0x8] sm:$0xf0]  ;;  %v1087_v24 = vor.u32 %v1351_v17, %v1086_v16 }
  0x13   : > { %v1183_v25 = vor.u32 %v1375_v19, %v1182_v18  ;;  %v1091_v26 = vor.u32 %v1350_v20, %v1088_v21  ;;  %v1094_v28 = vld [vmem:[%s1524_s18 + $0x10] sm:$0xf]  ;;  %v1353_v29 = vld [vmem:[%s1524_s18 + $0x14] sm:$0xf0]  ;;  %v1352_v32 = vld [vmem:[%s1524_s18 + $0x14] sm:$0xf] }
  0x14   : > { %605 = vmatpush.bf16.msra.mxu0 %v1405_v4  ;;  %1418 = vmatpush.bf16.msra.mxu2 %v1405_v4  ;;  %v1190_v30 = vld [vmem:[%s1524_s18 + $0xd0] sm:$0xf]  ;;  %v1377_v31 = vld [vmem:[%s1524_s18 + $0xd4] sm:$0xf0]  ;;  %v1096_v33 = vld [vmem:[%s1524_s18 + $0x18] sm:$0xf0]  ;;  %v1095_v36 = vor.u32 %v1353_v29, %v1094_v28 }
  0x15   : > { %739 = vmatpush.bf16.msra.mxu1 %v1413_v5  ;;  %1426 = vmatpush.bf16.msra.mxu3 %v1413_v5  ;;  %v1378_v34 = vld [vmem:[%s1524_s18 + $0xe4] sm:$0xf]  ;;  %v1200_v35 = vld [vmem:[%s1524_s18 + $0xe8] sm:$0xf0]  ;;  %v1191_v37 = vor.u32 %v1377_v31, %v1190_v30  ;;  %v1099_v38 = vor.u32 %v1352_v32, %v1096_v33  ;;  %v1102_v40 = vld [vmem:[%s1524_s18 + $0x20] sm:$0xf] }
  0x16   : > { %v1203_v39 = vor.u32 %v1378_v34, %v1200_v35  ;;  %v1355_v41 = vld [vmem:[%s1524_s18 + $0x24] sm:$0xf0]  ;;  %v1198_v42 = vld [vmem:[%s1524_s18 + $0xe0] sm:$0xf]  ;;  %v1354_v44 = vld [vmem:[%s1524_s18 + $0x24] sm:$0xf] }
  0x17   : > { %v1379_v43 = vld [vmem:[%s1524_s18 + $0xe4] sm:$0xf0]  ;;  %v1104_v45 = vld [vmem:[%s1524_s18 + $0x28] sm:$0xf0]  ;;  %v1380_v46 = vld [vmem:[%s1524_s18 + $0xf4] sm:$0xf]  ;;  %v1103_v48 = vor.u32 %v1355_v41, %v1102_v40 }
  0x18   : > { %606 = vmatpush.bf16.msra.mxu0 %v1404_v6  ;;  %1419 = vmatpush.bf16.msra.mxu2 %v1404_v6  ;;  %v1208_v47 = vld [vmem:[%s1524_s18 + $0xf8] sm:$0xf0]  ;;  %v1199_v49 = vor.u32 %v1379_v43, %v1198_v42  ;;  %v1107_v50 = vor.u32 %v1354_v44, %v1104_v45  ;;  %v1110_v52 = vld [vmem:[%s1524_s18 + $0x30] sm:$0xf]  ;;  %v1357_v53 = vld [vmem:[%s1524_s18 + $0x34] sm:$0xf0] }
  0x19   : > { %740 = vmatpush.bf16.msra.mxu1 %v1412_v7  ;;  %1427 = vmatpush.bf16.msra.mxu3 %v1412_v7  ;;  %v1211_v51 = vor.u32 %v1380_v46, %v1208_v47  ;;  %v1206_v54 = vld [vmem:[%s1524_s18 + $0xf0] sm:$0xf]  ;;  %v1381_v55 = vld [vmem:[%s1524_s18 + $0xf4] sm:$0xf0]  ;;  %v1356_v56 = vld [vmem:[%s1524_s18 + $0x34] sm:$0xf]  ;;  %v1111_v60 = vor.u32 %v1357_v53, %v1110_v52 }
  0x1a   : > { %v1112_v57 = vld [vmem:[%s1524_s18 + $0x38] sm:$0xf0]  ;;  %v1382_v58 = vld [vmem:[%s1524_s18 + $0x104] sm:$0xf]  ;;  %v1216_v59 = vld [vmem:[%s1524_s18 + $0x108] sm:$0xf0]  ;;  %v1207_v61 = vor.u32 %v1381_v55, %v1206_v54 }
  0x1b   : > { %v1115_v62 = vor.u32 %v1356_v56, %v1112_v57  ;;  %v1219_v63 = vor.u32 %v1382_v58, %v1216_v59  ;;  %v1118_v0 = vld [vmem:[%s1524_s18 + $0x40] sm:$0xf]  ;;  %v1359_v1 = vld [vmem:[%s1524_s18 + $0x44] sm:$0xf0]  ;;  %v1358_v4 = vld [vmem:[%s1524_s18 + $0x44] sm:$0xf] }
  0x1c   : > { %607 = vmatpush.bf16.msra.mxu0 %v1403_v8  ;;  %1420 = vmatpush.bf16.msra.mxu2 %v1403_v8  ;;  %v1214_v2 = vld [vmem:[%s1524_s18 + $0x100] sm:$0xf]  ;;  %v1383_v3 = vld [vmem:[%s1524_s18 + $0x104] sm:$0xf0]  ;;  %v1120_v5 = vld [vmem:[%s1524_s18 + $0x48] sm:$0xf0]  ;;  %v1119_v8 = vor.u32 %v1359_v1, %v1118_v0 }
  0x1d   : > { %741 = vmatpush.bf16.msra.mxu1 %v1411_v9  ;;  %1428 = vmatpush.bf16.msra.mxu3 %v1411_v9  ;;  %v1384_v6 = vld [vmem:[%s1524_s18 + $0x114] sm:$0xf]  ;;  %v1224_v7 = vld [vmem:[%s1524_s18 + $0x118] sm:$0xf0]  ;;  %v1215_v9 = vor.u32 %v1383_v3, %v1214_v2  ;;  %v1386_v18 = vld [vmem:[%s1524_s18 + $0x124] sm:$0xf] }
  0x1e   : > { %v1360_v16 = vld [vmem:[%s1524_s18 + $0x54] sm:$0xf]  ;;  %v1128_v17 = vld [vmem:[%s1524_s18 + $0x58] sm:$0xf0]  ;;  %v1232_v19 = vld [vmem:[%s1524_s18 + $0x128] sm:$0xf0] }
  0x1f   : > { %v1131_v22 = vor.u32 %v1360_v16, %v1128_v17  ;;  %v1235_v23 = vor.u32 %v1386_v18, %v1232_v19  ;;  %v1362_v28 = vld [vmem:[%s1524_s18 + $0x64] sm:$0xf]  ;;  %v1136_v29 = vld [vmem:[%s1524_s18 + $0x68] sm:$0xf0]  ;;  %v1388_v30 = vld [vmem:[%s1524_s18 + $0x134] sm:$0xf] }
  0x20   : > { %608 = vmatpush.bf16.msra.mxu0 %v1402_v10  ;;  %1421 = vmatpush.bf16.msra.mxu2 %v1402_v10  ;;  %v1123_v10 = vor.u32 %v1358_v4, %v1120_v5  ;;  %v1240_v31 = vld [vmem:[%s1524_s18 + $0x138] sm:$0xf0]  ;;  %v1139_v34 = vor.u32 %v1362_v28, %v1136_v29  ;;  %v1364_v40 = vld [vmem:[%s1524_s18 + $0x74] sm:$0xf]  ;;  %v1390_v42 = vld [vmem:[%s1524_s18 + $0x144] sm:$0xf] }
  0x21   : > { %742 = vmatpush.bf16.msra.mxu1 %v1410_v11  ;;  %1429 = vmatpush.bf16.msra.mxu3 %v1410_v11  ;;  %v1227_v11 = vor.u32 %v1384_v6, %v1224_v7  ;;  %v1243_v35 = vor.u32 %v1388_v30, %v1240_v31  ;;  %v1144_v41 = vld [vmem:[%s1524_s18 + $0x78] sm:$0xf0]  ;;  %v1248_v43 = vld [vmem:[%s1524_s18 + $0x148] sm:$0xf0]  ;;  %v1391_v52 = vld [vmem:[%s1524_s18 + $0x144] sm:$0xf0] }
  0x22   : > { %v1147_v46 = vor.u32 %v1364_v40, %v1144_v41  ;;  %v1251_v47 = vor.u32 %v1390_v42, %v1248_v43  ;;  %v1366_v53 = vld [vmem:[%s1524_s18 + $0x84] sm:$0xf]  ;;  %v1152_v54 = vld [vmem:[%s1524_s18 + $0x88] sm:$0xf0]  ;;  %v1392_v55 = vld [vmem:[%s1524_s18 + $0x154] sm:$0xf] }
  0x23   : > { %v1256_v56 = vld [vmem:[%s1524_s18 + $0x158] sm:$0xf0]  ;;  %v1394_v16 = vld [vmem:[%s1524_s18 + $0x164] sm:$0xf]  ;;  %v1264_v17 = vld [vmem:[%s1524_s18 + $0x168] sm:$0xf0] }
  0x24   : > { %609 = vmatpush.bf16.msra.mxu0 %v1401_v12  ;;  %1422 = vmatpush.bf16.msra.mxu2 %v1401_v12  ;;  %v1126_v12 = vld [vmem:[%s1524_s18 + $0x50] sm:$0xf]  ;;  %v1371_v41 = vld [vmem:[%s1524_s18 + $0xa4] sm:$0xf0]  ;;  %v1262_v42 = vld [vmem:[%s1524_s18 + $0x160] sm:$0xf] }
  0x25   : > { %743 = vmatpush.bf16.msra.mxu1 %v1409_v13  ;;  %1430 = vmatpush.bf16.msra.mxu3 %v1409_v13  ;;  %v1361_v13 = vld [vmem:[%s1524_s18 + $0x54] sm:$0xf0]  ;;  %v1395_v43 = vld [vmem:[%s1524_s18 + $0x164] sm:$0xf0] }
  0x26   : > { %v1127_v20 = vor.u32 %v1361_v13, %v1126_v12  ;;  %v1393_v12 = vld [vmem:[%s1524_s18 + $0x154] sm:$0xf0]  ;;  %v1368_v13 = vld [vmem:[%s1524_s18 + $0x94] sm:$0xf] }
  0x28   : > { %610 = vmatpush.bf16.msra.mxu0 %v1400_v14  ;;  %1423 = vmatpush.bf16.msra.mxu2 %v1400_v14  ;;  %v1222_v14 = vld [vmem:[%s1524_s18 + $0x110] sm:$0xf] }
  0x29   : > { %744 = vmatpush.bf16.msra.mxu1 %v1408_v15  ;;  %1431 = vmatpush.bf16.msra.mxu3 %v1408_v15  ;;  %v1385_v15 = vld [vmem:[%s1524_s18 + $0x114] sm:$0xf0] }
  0x2a   : > { %v1223_v21 = vor.u32 %v1385_v15, %v1222_v14  ;;  %v1160_v14 = vld [vmem:[%s1524_s18 + $0x98] sm:$0xf0] }
  0x2b   : > { %611 = vmatmul.bf16.vlgmr.msra.gmra.mxu0 %v1087_v24  ;;  %671 = vmatmul.bf16.vlgmr.msra.gmra.mxu2 %v1183_v25  ;;  %v1134_v24 = vld [vmem:[%s1524_s18 + $0x60] sm:$0xf]  ;;  %v1363_v25 = vld [vmem:[%s1524_s18 + $0x64] sm:$0xf0] }
  0x2c   : > { %745 = vmatmul.bf16.vlgmr.msra.gmra.mxu1 %v1091_v26  ;;  %810 = vmatmul.bf16.vlgmr.msra.gmra.mxu3 %v1195_v27  ;;  %v1230_v26 = vld [vmem:[%s1524_s18 + $0x120] sm:$0xf]  ;;  %v1387_v27 = vld [vmem:[%s1524_s18 + $0x124] sm:$0xf0]  ;;  %v1135_v32 = vor.u32 %v1363_v25, %v1134_v24  ;;  %v1163_v24 = vor.u32 %v1368_v13, %v1160_v14  ;;  %v1267_v25 = vor.u32 %v1394_v16, %v1264_v17  ;;  %v1270_v16 = vld [vmem:[%s1524_s18 + $0x170] sm:$0xf] }
  0x2d   : > { %v1231_v33 = vor.u32 %v1387_v27, %v1230_v26  ;;  %v1397_v17 = vld [vmem:[%s1524_s18 + $0x174] sm:$0xf0] }
  0x3b   : > { %616 = vmatmul.bf16.gmra.mxu0 %v1095_v36  ;;  %676 = vmatmul.bf16.gmra.mxu2 %v1191_v37  ;;  %v1142_v36 = vld [vmem:[%s1524_s18 + $0x70] sm:$0xf]  ;;  %v1365_v37 = vld [vmem:[%s1524_s18 + $0x74] sm:$0xf0] }
  0x3c   : > { %750 = vmatmul.bf16.gmra.mxu1 %v1099_v38  ;;  %815 = vmatmul.bf16.gmra.mxu3 %v1203_v39  ;;  %v1238_v38 = vld [vmem:[%s1524_s18 + $0x130] sm:$0xf]  ;;  %v1389_v39 = vld [vmem:[%s1524_s18 + $0x134] sm:$0xf0]  ;;  %v1143_v44 = vor.u32 %v1365_v37, %v1142_v36 }
  0x3d   : > { %v1239_v45 = vor.u32 %v1389_v39, %v1238_v38  ;;  %v1166_v38 = vld [vmem:[%s1524_s18 + $0xa0] sm:$0xf] }
  0x4b   : > { %621 = vmatmul.bf16.gmra.mxu0 %v1103_v48  ;;  %681 = vmatmul.bf16.gmra.mxu2 %v1199_v49  ;;  %v1602_v48 = vld [vmem:[%s1807_s2] ss:$0 sm:$0xff] }
  0x4c   : > { %755 = vmatmul.bf16.gmra.mxu1 %v1107_v50  ;;  %820 = vmatmul.bf16.gmra.mxu3 %v1211_v51  ;;  %v1150_v49 = vld [vmem:[%s1524_s18 + $0x80] sm:$0xf]  ;;  %v1367_v50 = vld [vmem:[%s1524_s18 + $0x84] sm:$0xf0] }
  0x4d   : > { %v1246_v51 = vld [vmem:[%s1524_s18 + $0x140] sm:$0xf]  ;;  %v1151_v57 = vor.u32 %v1367_v50, %v1150_v49  ;;  %v1396_v49 = vld [vmem:[%s1524_s18 + $0x174] sm:$0xf]  ;;  %v1272_v50 = vld [vmem:[%s1524_s18 + $0x178] sm:$0xf0] }
  0x4e   : > { %v1247_v58 = vor.u32 %v1391_v52, %v1246_v51 }
  0x5b   : > { %626 = vmatmul.bf16.gmra.mxu0 %v1111_v60  ;;  %686 = vmatmul.bf16.gmra.mxu2 %v1207_v61  ;;  %v1155_v60 = vor.u32 %v1366_v53, %v1152_v54  ;;  %v1259_v61 = vor.u32 %v1392_v55, %v1256_v56  ;;  %v1167_v54 = vor.u32 %v1371_v41, %v1166_v38 }
  0x5c   : > { %760 = vmatmul.bf16.gmra.mxu1 %v1115_v62  ;;  %825 = vmatmul.bf16.gmra.mxu3 %v1219_v63  ;;  %v1263_v55 = vor.u32 %v1395_v43, %v1262_v42 }
  0x6b   : > { %631 = vmatmul.bf16.gmra.mxu0 %v1119_v8  ;;  %691 = vmatmul.bf16.gmra.mxu2 %v1215_v9  ;;  %v1158_v9 = vld [vmem:[%s1524_s18 + $0x90] sm:$0xf] }
  0x6c   : > { %765 = vmatmul.bf16.gmra.mxu1 %v1123_v10  ;;  %830 = vmatmul.bf16.gmra.mxu3 %v1227_v11  ;;  %v1369_v10 = vld [vmem:[%s1524_s18 + $0x94] sm:$0xf0]  ;;  %v1254_v11 = vld [vmem:[%s1524_s18 + $0x150] sm:$0xf] }
  0x7b   : > { %636 = vmatmul.bf16.gmra.mxu0 %v1127_v20  ;;  %696 = vmatmul.bf16.gmra.mxu2 %v1223_v21  ;;  %v1159_v20 = vor.u32 %v1369_v10, %v1158_v9  ;;  %v1255_v21 = vor.u32 %v1393_v12, %v1254_v11  ;;  %v1174_v12 = vld [vmem:[%s1524_s18 + $0xb0] sm:$0xf] }
  0x7c   : > { %770 = vmatmul.bf16.gmra.mxu1 %v1131_v22  ;;  %835 = vmatmul.bf16.gmra.mxu3 %v1235_v23 }
  0x8b   : > { %641 = vmatmul.bf16.gmra.mxu0 %v1135_v32  ;;  %701 = vmatmul.bf16.gmra.mxu2 %v1231_v33 }
  0x8c   : > { %775 = vmatmul.bf16.gmra.mxu1 %v1139_v34  ;;  %840 = vmatmul.bf16.gmra.mxu3 %v1243_v35 }
  0x9b   : > { %646 = vmatmul.bf16.gmra.mxu0 %v1143_v44  ;;  %706 = vmatmul.bf16.gmra.mxu2 %v1239_v45  ;;  %v1370_v44 = vld [vmem:[%s1524_s18 + $0xa4] sm:$0xf]  ;;  %v1168_v45 = vld [vmem:[%s1524_s18 + $0xa8] sm:$0xf0] }
  0x9c   : > { %780 = vmatmul.bf16.gmra.mxu1 %v1147_v46  ;;  %845 = vmatmul.bf16.gmra.mxu3 %v1251_v47 }
  0xa8   : > { %v612_v59 = vpop.f32.mrf.mxu0 }
  0xa9   : > { %v613_v62 = vadd.f32 %v1602_v48, %v612_v59  ;;  %v746_v63 = vpop.f32.mrf.mxu1  ;;  %v1275_v59 = vor.u32 %v1396_v49, %v1272_v50 }
  0xab   : > { %v747_v0 = vadd.f32 %v746_v63, %v613_v62  ;;  %651 = vmatmul.bf16.gmra.mxu0 %v1151_v57  ;;  %711 = vmatmul.bf16.gmra.mxu2 %v1247_v58  ;;  %v1171_v58 = vor.u32 %v1370_v44, %v1168_v45 }
  0xac   : > { %785 = vmatmul.bf16.gmra.mxu1 %v1155_v60  ;;  %850 = vmatmul.bf16.gmra.mxu3 %v1259_v61 }
  0xad   : > { %v871_v1 = vmax.f32 %v747_v0, 0.0 }
  0xae   : > { %v1619_v2 = vpop.f32.mrf.mxu2 }
  0xaf   : > { %v921_v3 = vpack.c.bf16 %v871_v1, %v871_v1  ;;  %v811_v4 = vpop.f32.mrf.mxu3 }
  0xb0   : > { %v614_v5 = vpop.f32.mrf.mxu0 }
  0xb1   : > { %972 = vst.msk [vmem:[%s1617_s30] sm:$0xf] %vm971_vm0, %v921_v3  ;;  %v615_v6 = vadd.f32 %v1602_v48, %v614_v5  ;;  %v748_v7 = vpop.f32.mrf.mxu1 }
  0xb3   : > { %v749_v8 = vadd.f32 %v748_v7, %v615_v6 }
  0xb5   : > { %v872_v15 = vmax.f32 %v749_v8, 0.0 }
  0xb6   : > { %v1632_v18 = vpop.f32.mrf.mxu2 }
  0xb7   : > { %v922_v19 = vpack.c.bf16 %v872_v15, %v872_v15  ;;  %v813_v22 = vpop.f32.mrf.mxu3  ;;  %v1373_v15 = vld [vmem:[%s1524_s18 + $0xb4] sm:$0xf0] }
  0xb8   : > { %v617_v23 = vpop.f32.mrf.mxu0 }
  0xb9   : > { %973 = vst.msk [vmem:[%s1617_s30 + $0x4] sm:$0xf] %vm971_vm0, %v922_v19  ;;  %v618_v26 = vadd.f32 %v1602_v48, %v617_v23  ;;  %v751_v27 = vpop.f32.mrf.mxu1  ;;  %v1372_v19 = vld [vmem:[%s1524_s18 + $0xb4] sm:$0xf]  ;;  %v1398_v23 = vld [vmem:[%s1524_s18 + $0x184] sm:$0xf] }
  0xbb   : > { %v752_v28 = vadd.f32 %v751_v27, %v618_v26  ;;  %656 = vmatmul.bf16.gmra.mxu0 %v1159_v20  ;;  %716 = vmatmul.bf16.gmra.mxu2 %v1255_v21  ;;  %v1176_v20 = vld [vmem:[%s1524_s18 + $0xb8] sm:$0xf0] }
  0xbc   : > { %790 = vmatmul.bf16.gmra.mxu1 %v1163_v24  ;;  %855 = vmatmul.bf16.gmra.mxu3 %v1267_v25  ;;  %v1280_v24 = vld [vmem:[%s1524_s18 + $0x188] sm:$0xf0] }
  0xbd   : > { %v873_v29 = vmax.f32 %v752_v28, 0.0  ;;  %v1175_v28 = vor.u32 %v1373_v15, %v1174_v12 }
  0xbe   : > { %v677_v30 = vpop.f32.mrf.mxu2 }
  0xbf   : > { %v923_v31 = vpack.c.bf16 %v873_v29, %v873_v29  ;;  %v678_v32 = vadd.f32 %v1602_v48, %v677_v30  ;;  %v816_v33 = vpop.f32.mrf.mxu3  ;;  %v1271_v29 = vor.u32 %v1397_v17, %v1270_v16 }
  0xc0   : > { %v619_v34 = vpop.f32.mrf.mxu0 }
  0xc1   : > { %974 = vst.msk [vmem:[%s1617_s30 + $0x8] sm:$0xf] %vm971_vm0, %v923_v31  ;;  %v812_v35 = vadd.f32 %v811_v4, %v678_v32  ;;  %v620_v36 = vadd.f32 %v1602_v48, %v619_v34  ;;  %v753_v37 = vpop.f32.mrf.mxu1  ;;  %v1179_v32 = vor.u32 %v1372_v19, %v1176_v20 }
  0xc3   : > { %v897_v39 = vmax.f32 %v812_v35, 0.0  ;;  %v754_v40 = vadd.f32 %v753_v37, %v620_v36 }
  0xc5   : > { %v947_v46 = vpack.c.bf16 %v897_v39, %v897_v39  ;;  %v874_v47 = vmax.f32 %v754_v40, 0.0 }
  0xc6   : > { %v679_v51 = vpop.f32.mrf.mxu2 }
  0xc7   : > { %998 = vst.msk [vmem:[%s1617_s30 + $0x68] sm:$0xf] %vm971_vm0, %v947_v46  ;;  %v924_v52 = vpack.c.bf16 %v874_v47, %v874_v47  ;;  %v680_v53 = vadd.f32 %v1602_v48, %v679_v51  ;;  %v818_v56 = vpop.f32.mrf.mxu3 }
  0xc8   : > { %v622_v57 = vpop.f32.mrf.mxu0 }
  0xc9   : > { %975 = vst.msk [vmem:[%s1617_s30 + $0xc] sm:$0xf] %vm971_vm0, %v924_v52  ;;  %v814_v60 = vadd.f32 %v813_v22, %v680_v53  ;;  %v623_v61 = vadd.f32 %v1602_v48, %v622_v57  ;;  %v756_v62 = vpop.f32.mrf.mxu1  ;;  %v1278_v52 = vld [vmem:[%s1524_s18 + $0x180] sm:$0xf]  ;;  %v1399_v53 = vld [vmem:[%s1524_s18 + $0x184] sm:$0xf0] }
  0xca   : > { %v1184_v57 = vld [vmem:[%s1524_s18 + $0xc8] sm:$0xf0] }
  0xcb   : > { %v898_v63 = vmax.f32 %v814_v60, 0.0  ;;  %v757_v0 = vadd.f32 %v756_v62, %v623_v61  ;;  %661 = vmatmul.bf16.gmra.mxu0 %v1167_v54  ;;  %721 = vmatmul.bf16.gmra.mxu2 %v1263_v55  ;;  %v1279_v61 = vor.u32 %v1399_v53, %v1278_v52 }
  0xcc   : > { %795 = vmatmul.bf16.gmra.mxu1 %v1171_v58  ;;  %860 = vmatmul.bf16.gmra.mxu3 %v1275_v59 }
  0xcd   : > { %v948_v1 = vpack.c.bf16 %v898_v63, %v898_v63  ;;  %v875_v3 = vmax.f32 %v757_v0, 0.0 }
  0xce   : > { %v682_v4 = vpop.f32.mrf.mxu2 }
  0xcf   : > { %999 = vst.msk [vmem:[%s1617_s30 + $0x6c] sm:$0xf] %vm971_vm0, %v948_v1  ;;  %v925_v5 = vpack.c.bf16 %v875_v3, %v875_v3  ;;  %v683_v6 = vadd.f32 %v1602_v48, %v682_v4  ;;  %v821_v7 = vpop.f32.mrf.mxu3 }
  0xd0   : > { %v624_v8 = vpop.f32.mrf.mxu0 }
  0xd1   : > { %976 = vst.msk [vmem:[%s1617_s30 + $0x10] sm:$0xf] %vm971_vm0, %v925_v5  ;;  %v817_v9 = vadd.f32 %v816_v33, %v683_v6  ;;  %v625_v10 = vadd.f32 %v1602_v48, %v624_v8  ;;  %v758_v11 = vpop.f32.mrf.mxu1  ;;  %v1283_v33 = vor.u32 %v1398_v23, %v1280_v24 }
  0xd3   : > { %v899_v13 = vmax.f32 %v817_v9, 0.0  ;;  %v759_v14 = vadd.f32 %v758_v11, %v625_v10 }
  0xd5   : > { %v949_v21 = vpack.c.bf16 %v899_v13, %v899_v13  ;;  %v876_v22 = vmax.f32 %v759_v14, 0.0 }
  0xd6   : > { %v684_v25 = vpop.f32.mrf.mxu2 }
  0xd7   : > { %1000 = vst.msk [vmem:[%s1617_s30 + $0x70] sm:$0xf] %vm971_vm0, %v949_v21  ;;  %v926_v26 = vpack.c.bf16 %v876_v22, %v876_v22  ;;  %v685_v27 = vadd.f32 %v1602_v48, %v684_v25  ;;  %v823_v30 = vpop.f32.mrf.mxu3 }
  0xd8   : > { %v627_v31 = vpop.f32.mrf.mxu0 }
  0xd9   : > { %977 = vst.msk [vmem:[%s1617_s30 + $0x14] sm:$0xf] %vm971_vm0, %v926_v26  ;;  %v819_v34 = vadd.f32 %v818_v56, %v685_v27  ;;  %v628_v35 = vadd.f32 %v1602_v48, %v627_v31  ;;  %v761_v36 = vpop.f32.mrf.mxu1  ;;  %v1374_v56 = vld [vmem:[%s1524_s18 + $0xc4] sm:$0xf] }
  0xda   : > { %v1187_v0 = vor.u32 %v1374_v56, %v1184_v57 }
  0xdb   : > { %v900_v37 = vmax.f32 %v819_v34, 0.0  ;;  %v762_v38 = vadd.f32 %v761_v36, %v628_v35  ;;  %666 = vmatmul.bf16.gmra.mxu0 %v1175_v28  ;;  %726 = vmatmul.bf16.gmra.mxu2 %v1271_v29 }
  0xdc   : > { %800 = vmatmul.bf16.gmra.mxu1 %v1179_v32  ;;  %865 = vmatmul.bf16.gmra.mxu3 %v1283_v33 }
  0xdd   : > { %v950_v39 = vpack.c.bf16 %v900_v37, %v900_v37  ;;  %v877_v40 = vmax.f32 %v762_v38, 0.0 }
  0xde   : > { %v687_v41 = vpop.f32.mrf.mxu2 }
  0xdf   : > { %1001 = vst.msk [vmem:[%s1617_s30 + $0x74] sm:$0xf] %vm971_vm0, %v950_v39  ;;  %v927_v42 = vpack.c.bf16 %v877_v40, %v877_v40  ;;  %v688_v43 = vadd.f32 %v1602_v48, %v687_v41  ;;  %v826_v44 = vpop.f32.mrf.mxu3 }
  0xe0   : > { %v629_v45 = vpop.f32.mrf.mxu0 }
  0xe1   : > { %978 = vst.msk [vmem:[%s1617_s30 + $0x18] sm:$0xf] %vm971_vm0, %v927_v42  ;;  %v822_v46 = vadd.f32 %v821_v7, %v688_v43  ;;  %v630_v47 = vadd.f32 %v1602_v48, %v629_v45  ;;  %v763_v49 = vpop.f32.mrf.mxu1 }
  0xe3   : > { %v901_v50 = vmax.f32 %v822_v46, 0.0  ;;  %v764_v51 = vadd.f32 %v763_v49, %v630_v47 }
  0xe5   : > { %v951_v54 = vpack.c.bf16 %v901_v50, %v901_v50  ;;  %v878_v55 = vmax.f32 %v764_v51, 0.0 }
  0xe6   : > { %v689_v58 = vpop.f32.mrf.mxu2 }
  0xe7   : > { %1002 = vst.msk [vmem:[%s1617_s30 + $0x78] sm:$0xf] %vm971_vm0, %v951_v54  ;;  %v928_v59 = vpack.c.bf16 %v878_v55, %v878_v55  ;;  %v690_v60 = vadd.f32 %v1602_v48, %v689_v58  ;;  %v828_v62 = vpop.f32.mrf.mxu3 }
  0xe8   : > { %v632_v63 = vpop.f32.mrf.mxu0 }
  0xe9   : > { %979 = vst.msk [vmem:[%s1617_s30 + $0x1c] sm:$0xf] %vm971_vm0, %v928_v59  ;;  %v824_v1 = vadd.f32 %v823_v30, %v690_v60  ;;  %v633_v3 = vadd.f32 %v1602_v48, %v632_v63  ;;  %v766_v4 = vpop.f32.mrf.mxu1 }
  0xeb   : > { %v902_v5 = vmax.f32 %v824_v1, 0.0  ;;  %v767_v6 = vadd.f32 %v766_v4, %v633_v3  ;;  %731 = vmatmul.bf16.gmra.mxu2 %v1279_v61 }
  0xec   : > { %805 = vmatmul.bf16.gmra.mxu1 %v1187_v0 }
  0xed   : > { %v952_v7 = vpack.c.bf16 %v902_v5, %v902_v5  ;;  %v879_v8 = vmax.f32 %v767_v6, 0.0 }
  0xee   : > { %v692_v9 = vpop.f32.mrf.mxu2 }
  0xef   : > { %1003 = vst.msk [vmem:[%s1617_s30 + $0x7c] sm:$0xf] %vm971_vm0, %v952_v7  ;;  %v929_v10 = vpack.c.bf16 %v879_v8, %v879_v8  ;;  %v693_v11 = vadd.f32 %v1602_v48, %v692_v9  ;;  %v831_v12 = vpop.f32.mrf.mxu3 }
  0xf0   : > { %v634_v13 = vpop.f32.mrf.mxu0 }
  0xf1   : > { %980 = vst.msk [vmem:[%s1617_s30 + $0x20] sm:$0xf] %vm971_vm0, %v929_v10  ;;  %v827_v14 = vadd.f32 %v826_v44, %v693_v11  ;;  %v635_v15 = vadd.f32 %v1602_v48, %v634_v13  ;;  %v768_v16 = vpop.f32.mrf.mxu1 }
  0xf3   : > { %v903_v17 = vmax.f32 %v827_v14, 0.0  ;;  %v769_v19 = vadd.f32 %v768_v16, %v635_v15 }
  0xf5   : > { %v953_v20 = vpack.c.bf16 %v903_v17, %v903_v17  ;;  %v880_v21 = vmax.f32 %v769_v19, 0.0 }
  0xf6   : > { %v694_v22 = vpop.f32.mrf.mxu2 }
  0xf7   : > { %1004 = vst.msk [vmem:[%s1617_s30 + $0x80] sm:$0xf] %vm971_vm0, %v953_v20  ;;  %v930_v23 = vpack.c.bf16 %v880_v21, %v880_v21  ;;  %v695_v24 = vadd.f32 %v1602_v48, %v694_v22  ;;  %v833_v25 = vpop.f32.mrf.mxu3 }
  0xf8   : > { %v637_v26 = vpop.f32.mrf.mxu0 }
  0xf9   : > { %981 = vst.msk [vmem:[%s1617_s30 + $0x24] sm:$0xf] %vm971_vm0, %v930_v23  ;;  %v829_v27 = vadd.f32 %v828_v62, %v695_v24  ;;  %v638_v28 = vadd.f32 %v1602_v48, %v637_v26  ;;  %v771_v29 = vpop.f32.mrf.mxu1 }
  0xfb   : > { %v904_v30 = vmax.f32 %v829_v27, 0.0  ;;  %v772_v31 = vadd.f32 %v771_v29, %v638_v28 }
  0xfd   : > { %v954_v32 = vpack.c.bf16 %v904_v30, %v904_v30  ;;  %v881_v33 = vmax.f32 %v772_v31, 0.0 }
  0xfe   : > { %v697_v34 = vpop.f32.mrf.mxu2 }
  0xff   : > { %1005 = vst.msk [vmem:[%s1617_s30 + $0x84] sm:$0xf] %vm971_vm0, %v954_v32  ;;  %v931_v35 = vpack.c.bf16 %v881_v33, %v881_v33  ;;  %v698_v36 = vadd.f32 %v1602_v48, %v697_v34  ;;  %v836_v37 = vpop.f32.mrf.mxu3 }
 0x100   : > { %v639_v38 = vpop.f32.mrf.mxu0 }
 0x101   : > { %982 = vst.msk [vmem:[%s1617_s30 + $0x28] sm:$0xf] %vm971_vm0, %v931_v35  ;;  %v832_v39 = vadd.f32 %v831_v12, %v698_v36  ;;  %v640_v40 = vadd.f32 %v1602_v48, %v639_v38  ;;  %v773_v41 = vpop.f32.mrf.mxu1 }
 0x103   : > { %v905_v42 = vmax.f32 %v832_v39, 0.0  ;;  %v774_v43 = vadd.f32 %v773_v41, %v640_v40 }
 0x105   : > { %v955_v44 = vpack.c.bf16 %v905_v42, %v905_v42  ;;  %v882_v45 = vmax.f32 %v774_v43, 0.0 }
 0x106   : > { %v699_v46 = vpop.f32.mrf.mxu2 }
 0x107   : > { %1006 = vst.msk [vmem:[%s1617_s30 + $0x88] sm:$0xf] %vm971_vm0, %v955_v44  ;;  %v932_v47 = vpack.c.bf16 %v882_v45, %v882_v45  ;;  %v700_v49 = vadd.f32 %v1602_v48, %v699_v46  ;;  %v838_v50 = vpop.f32.mrf.mxu3 }
 0x108   : > { %v642_v51 = vpop.f32.mrf.mxu0 }
 0x109   : > { %983 = vst.msk [vmem:[%s1617_s30 + $0x2c] sm:$0xf] %vm971_vm0, %v932_v47  ;;  %v834_v52 = vadd.f32 %v833_v25, %v700_v49  ;;  %v643_v53 = vadd.f32 %v1602_v48, %v642_v51  ;;  %v776_v54 = vpop.f32.mrf.mxu1 }
 0x10b   : > { %v906_v55 = vmax.f32 %v834_v52, 0.0  ;;  %v777_v56 = vadd.f32 %v776_v54, %v643_v53 }
 0x10d   : > { %v956_v57 = vpack.c.bf16 %v906_v55, %v906_v55  ;;  %v883_v58 = vmax.f32 %v777_v56, 0.0 }
 0x10e   : > { %v702_v59 = vpop.f32.mrf.mxu2 }
 0x10f   : > { %1007 = vst.msk [vmem:[%s1617_s30 + $0x8c] sm:$0xf] %vm971_vm0, %v956_v57  ;;  %v933_v60 = vpack.c.bf16 %v883_v58, %v883_v58  ;;  %v703_v61 = vadd.f32 %v1602_v48, %v702_v59  ;;  %v841_v62 = vpop.f32.mrf.mxu3 }
 0x110   : > { %v644_v63 = vpop.f32.mrf.mxu0 }
 0x111   : > { %984 = vst.msk [vmem:[%s1617_s30 + $0x30] sm:$0xf] %vm971_vm0, %v933_v60  ;;  %v837_v0 = vadd.f32 %v836_v37, %v703_v61  ;;  %v645_v1 = vadd.f32 %v1602_v48, %v644_v63  ;;  %v778_v3 = vpop.f32.mrf.mxu1 }
 0x113   : > { %v907_v4 = vmax.f32 %v837_v0, 0.0  ;;  %v779_v5 = vadd.f32 %v778_v3, %v645_v1 }
 0x115   : > { %v957_v6 = vpack.c.bf16 %v907_v4, %v907_v4  ;;  %v884_v7 = vmax.f32 %v779_v5, 0.0 }
 0x116   : > { %v704_v8 = vpop.f32.mrf.mxu2 }
 0x117   : > { %1008 = vst.msk [vmem:[%s1617_s30 + $0x90] sm:$0xf] %vm971_vm0, %v957_v6  ;;  %v934_v9 = vpack.c.bf16 %v884_v7, %v884_v7  ;;  %v705_v10 = vadd.f32 %v1602_v48, %v704_v8  ;;  %v843_v11 = vpop.f32.mrf.mxu3 }
 0x118   : > { %v647_v12 = vpop.f32.mrf.mxu0 }
 0x119   : > { %985 = vst.msk [vmem:[%s1617_s30 + $0x34] sm:$0xf] %vm971_vm0, %v934_v9  ;;  %v839_v13 = vadd.f32 %v838_v50, %v705_v10  ;;  %v648_v14 = vadd.f32 %v1602_v48, %v647_v12  ;;  %v781_v15 = vpop.f32.mrf.mxu1 }
 0x11b   : > { %v908_v16 = vmax.f32 %v839_v13, 0.0  ;;  %v782_v17 = vadd.f32 %v781_v15, %v648_v14 }
 0x11d   : > { %v958_v19 = vpack.c.bf16 %v908_v16, %v908_v16  ;;  %v885_v20 = vmax.f32 %v782_v17, 0.0 }
 0x11e   : > { %v707_v21 = vpop.f32.mrf.mxu2 }
 0x11f   : > { %1009 = vst.msk [vmem:[%s1617_s30 + $0x94] sm:$0xf] %vm971_vm0, %v958_v19  ;;  %v935_v22 = vpack.c.bf16 %v885_v20, %v885_v20  ;;  %v708_v23 = vadd.f32 %v1602_v48, %v707_v21  ;;  %v846_v24 = vpop.f32.mrf.mxu3 }
 0x120   : > { %v649_v25 = vpop.f32.mrf.mxu0 }
 0x121   : > { %986 = vst.msk [vmem:[%s1617_s30 + $0x38] sm:$0xf] %vm971_vm0, %v935_v22  ;;  %v842_v26 = vadd.f32 %v841_v62, %v708_v23  ;;  %v650_v27 = vadd.f32 %v1602_v48, %v649_v25  ;;  %v783_v28 = vpop.f32.mrf.mxu1 }
 0x123   : > { %v909_v29 = vmax.f32 %v842_v26, 0.0  ;;  %v784_v30 = vadd.f32 %v783_v28, %v650_v27 }
 0x125   : > { %v959_v31 = vpack.c.bf16 %v909_v29, %v909_v29  ;;  %v886_v32 = vmax.f32 %v784_v30, 0.0 }
 0x126   : > { %v709_v33 = vpop.f32.mrf.mxu2 }
 0x127   : > { %1010 = vst.msk [vmem:[%s1617_s30 + $0x98] sm:$0xf] %vm971_vm0, %v959_v31  ;;  %v936_v34 = vpack.c.bf16 %v886_v32, %v886_v32  ;;  %v710_v35 = vadd.f32 %v1602_v48, %v709_v33  ;;  %v848_v37 = vpop.f32.mrf.mxu3 }
 0x128   : > { %v652_v36 = vpop.f32.mrf.mxu0 }
 0x129   : > { %987 = vst.msk [vmem:[%s1617_s30 + $0x3c] sm:$0xf] %vm971_vm0, %v936_v34  ;;  %v844_v38 = vadd.f32 %v843_v11, %v710_v35  ;;  %v653_v39 = vadd.f32 %v1602_v48, %v652_v36  ;;  %v786_v40 = vpop.f32.mrf.mxu1 }
 0x12b   : > { %v910_v41 = vmax.f32 %v844_v38, 0.0  ;;  %v787_v42 = vadd.f32 %v786_v40, %v653_v39 }
 0x12d   : > { %v960_v43 = vpack.c.bf16 %v910_v41, %v910_v41  ;;  %v887_v44 = vmax.f32 %v787_v42, 0.0 }
 0x12e   : > { %v712_v45 = vpop.f32.mrf.mxu2 }
 0x12f   : > { %1011 = vst.msk [vmem:[%s1617_s30 + $0x9c] sm:$0xf] %vm971_vm0, %v960_v43  ;;  %v937_v46 = vpack.c.bf16 %v887_v44, %v887_v44  ;;  %v713_v47 = vadd.f32 %v1602_v48, %v712_v45  ;;  %v851_v53 = vpop.f32.mrf.mxu3 }
 0x130   : > { %v654_v49 = vpop.f32.mrf.mxu0 }
 0x131   : > { %988 = vst.msk [vmem:[%s1617_s30 + $0x40] sm:$0xf] %vm971_vm0, %v937_v46  ;;  %v847_v50 = vadd.f32 %v846_v24, %v713_v47  ;;  %v655_v51 = vadd.f32 %v1602_v48, %v654_v49  ;;  %v788_v52 = vpop.f32.mrf.mxu1 }
 0x133   : > { %v911_v54 = vmax.f32 %v847_v50, 0.0  ;;  %v789_v55 = vadd.f32 %v788_v52, %v655_v51 }
 0x135   : > { %v961_v56 = vpack.c.bf16 %v911_v54, %v911_v54  ;;  %v888_v57 = vmax.f32 %v789_v55, 0.0 }
 0x136   : > { %v714_v58 = vpop.f32.mrf.mxu2 }
 0x137   : > { %1012 = vst.msk [vmem:[%s1617_s30 + $0xa0] sm:$0xf] %vm971_vm0, %v961_v56  ;;  %v938_v59 = vpack.c.bf16 %v888_v57, %v888_v57  ;;  %v715_v60 = vadd.f32 %v1602_v48, %v714_v58  ;;  %v853_v4 = vpop.f32.mrf.mxu3 }
 0x138   : > { %v657_v61 = vpop.f32.mrf.mxu0 }
 0x139   : > { %989 = vst.msk [vmem:[%s1617_s30 + $0x44] sm:$0xf] %vm971_vm0, %v938_v59  ;;  %v849_v62 = vadd.f32 %v848_v37, %v715_v60  ;;  %v658_v63 = vadd.f32 %v1602_v48, %v657_v61  ;;  %v791_v0 = vpop.f32.mrf.mxu1 }
 0x13b   : > { %v912_v1 = vmax.f32 %v849_v62, 0.0  ;;  %v792_v3 = vadd.f32 %v791_v0, %v658_v63 }
 0x13d   : > { %v962_v5 = vpack.c.bf16 %v912_v1, %v912_v1  ;;  %v889_v6 = vmax.f32 %v792_v3, 0.0 }
 0x13e   : > { %v717_v7 = vpop.f32.mrf.mxu2 }
 0x13f   : > { %1013 = vst.msk [vmem:[%s1617_s30 + $0xa4] sm:$0xf] %vm971_vm0, %v962_v5  ;;  %v939_v8 = vpack.c.bf16 %v889_v6, %v889_v6  ;;  %v718_v9 = vadd.f32 %v1602_v48, %v717_v7  ;;  %v856_v20 = vpop.f32.mrf.mxu3 }
 0x140   : > { %v659_v10 = vpop.f32.mrf.mxu0 }
 0x141   : > { %990 = vst.msk [vmem:[%s1617_s30 + $0x48] sm:$0xf] %vm971_vm0, %v939_v8  ;;  %v852_v11 = vadd.f32 %v851_v53, %v718_v9  ;;  %v660_v12 = vadd.f32 %v1602_v48, %v659_v10  ;;  %v793_v13 = vpop.f32.mrf.mxu1  ;;  %v673_v8 = vadd.f32 %v1602_v48, %v1619_v2  ;;  %v675_v2 = vadd.f32 %v1602_v48, %v1632_v18 }
 0x143   : > { %v913_v14 = vmax.f32 %v852_v11, 0.0  ;;  %v794_v15 = vadd.f32 %v793_v13, %v660_v12 }
 0x145   : > { %v963_v16 = vpack.c.bf16 %v913_v14, %v913_v14  ;;  %v890_v17 = vmax.f32 %v794_v15, 0.0 }
 0x146   : > { %v719_v19 = vpop.f32.mrf.mxu2 }
 0x147   : > { %1014 = vst.msk [vmem:[%s1617_s30 + $0xa8] sm:$0xf] %vm971_vm0, %v963_v16  ;;  %v940_v21 = vpack.c.bf16 %v890_v17, %v890_v17  ;;  %v720_v22 = vadd.f32 %v1602_v48, %v719_v19  ;;  %v858_v35 = vpop.f32.mrf.mxu3 }
 0x148   : > { %v662_v23 = vpop.f32.mrf.mxu0 }
 0x149   : > { %991 = vst.msk [vmem:[%s1617_s30 + $0x4c] sm:$0xf] %vm971_vm0, %v940_v21  ;;  %v854_v24 = vadd.f32 %v853_v4, %v720_v22  ;;  %v663_v25 = vadd.f32 %v1602_v48, %v662_v23  ;;  %v796_v26 = vpop.f32.mrf.mxu1 }
 0x14b   : > { %v914_v27 = vmax.f32 %v854_v24, 0.0  ;;  %v797_v28 = vadd.f32 %v796_v26, %v663_v25 }
 0x14d   : > { %v964_v29 = vpack.c.bf16 %v914_v27, %v914_v27  ;;  %v891_v30 = vmax.f32 %v797_v28, 0.0 }
 0x14e   : > { %v722_v31 = vpop.f32.mrf.mxu2 }
 0x14f   : > { %1015 = vst.msk [vmem:[%s1617_s30 + $0xac] sm:$0xf] %vm971_vm0, %v964_v29  ;;  %v941_v32 = vpack.c.bf16 %v891_v30, %v891_v30  ;;  %v723_v33 = vadd.f32 %v1602_v48, %v722_v31  ;;  %v861_v51 = vpop.f32.mrf.mxu3 }
 0x150   : > { %v664_v34 = vpop.f32.mrf.mxu0 }
 0x151   : > { %992 = vst.msk [vmem:[%s1617_s30 + $0x50] sm:$0xf] %vm971_vm0, %v941_v32  ;;  %v857_v36 = vadd.f32 %v856_v20, %v723_v33  ;;  %v665_v37 = vadd.f32 %v1602_v48, %v664_v34  ;;  %v798_v38 = vpop.f32.mrf.mxu1 }
 0x153   : > { %v915_v39 = vmax.f32 %v857_v36, 0.0  ;;  %v799_v40 = vadd.f32 %v798_v38, %v665_v37 }
 0x155   : > { %v965_v41 = vpack.c.bf16 %v915_v39, %v915_v39  ;;  %v892_v42 = vmax.f32 %v799_v40, 0.0 }
 0x156   : > { %v724_v43 = vpop.f32.mrf.mxu2 }
 0x157   : > { %1016 = vst.msk [vmem:[%s1617_s30 + $0xb0] sm:$0xf] %vm971_vm0, %v965_v41  ;;  %v942_v44 = vpack.c.bf16 %v892_v42, %v892_v42  ;;  %v725_v45 = vadd.f32 %v1602_v48, %v724_v43  ;;  %v863_v1 = vpop.f32.mrf.mxu3 }
 0x158   : > { %v667_v46 = vpop.f32.mrf.mxu0 }
 0x159   : > { %993 = vst.msk [vmem:[%s1617_s30 + $0x54] sm:$0xf] %vm971_vm0, %v942_v44  ;;  %v859_v47 = vadd.f32 %v858_v35, %v725_v45  ;;  %v668_v49 = vadd.f32 %v1602_v48, %v667_v46  ;;  %v801_v50 = vpop.f32.mrf.mxu1 }
 0x15b   : > { %v916_v52 = vmax.f32 %v859_v47, 0.0  ;;  %v802_v53 = vadd.f32 %v801_v50, %v668_v49 }
 0x15d   : > { %v966_v54 = vpack.c.bf16 %v916_v52, %v916_v52  ;;  %v893_v55 = vmax.f32 %v802_v53, 0.0 }
 0x15e   : > { %v727_v56 = vpop.f32.mrf.mxu2 }
 0x15f   : > { %1017 = vst.msk [vmem:[%s1617_s30 + $0xb4] sm:$0xf] %vm971_vm0, %v966_v54  ;;  %v943_v57 = vpack.c.bf16 %v893_v55, %v893_v55  ;;  %v728_v58 = vadd.f32 %v1602_v48, %v727_v56  ;;  %v866_v16 = vpop.f32.mrf.mxu3 }
 0x160   : > { %v669_v59 = vpop.f32.mrf.mxu0 }
 0x161   : > { %994 = vst.msk [vmem:[%s1617_s30 + $0x58] sm:$0xf] %vm971_vm0, %v943_v57  ;;  %v862_v60 = vadd.f32 %v861_v51, %v728_v58  ;;  %v670_v61 = vadd.f32 %v1602_v48, %v669_v59  ;;  %v803_v62 = vpop.f32.mrf.mxu1 }
 0x163   : > { %v917_v63 = vmax.f32 %v862_v60, 0.0  ;;  %v804_v0 = vadd.f32 %v803_v62, %v670_v61 }
 0x165   : > { %v967_v3 = vpack.c.bf16 %v917_v63, %v917_v63  ;;  %v894_v4 = vmax.f32 %v804_v0, 0.0 }
 0x166   : > { %v729_v5 = vpop.f32.mrf.mxu2 }
 0x167   : > { %1018 = vst.msk [vmem:[%s1617_s30 + $0xb8] sm:$0xf] %vm971_vm0, %v967_v3  ;;  %v944_v6 = vpack.c.bf16 %v894_v4, %v894_v4  ;;  %v730_v7 = vadd.f32 %v1602_v48, %v729_v5  ;;  %v868_v29 = vpop.f32.mrf.mxu3 }
 0x169   : > { %995 = vst.msk [vmem:[%s1617_s30 + $0x5c] sm:$0xf] %vm971_vm0, %v944_v6  ;;  %v864_v9 = vadd.f32 %v863_v1, %v730_v7  ;;  %v806_v10 = vpop.f32.mrf.mxu1 }
 0x16a   : > { %v807_v11 = vadd.f32 %v806_v10, %v673_v8 }
 0x16b   : > { %v918_v12 = vmax.f32 %v864_v9, 0.0 }
 0x16c   : > { %v895_v13 = vmax.f32 %v807_v11, 0.0 }
 0x16d   : > { %v968_v14 = vpack.c.bf16 %v918_v12, %v918_v12 }
 0x16e   : > { %v945_v15 = vpack.c.bf16 %v895_v13, %v895_v13  ;;  %v732_v17 = vpop.f32.mrf.mxu2 }
 0x16f   : > { %1019 = vst.msk [vmem:[%s1617_s30 + $0xbc] sm:$0xf] %vm971_vm0, %v968_v14  ;;  %v733_v19 = vadd.f32 %v1602_v48, %v732_v17 }
 0x170   : > { %996 = vst.msk [vmem:[%s1617_s30 + $0x60] sm:$0xf] %vm971_vm0, %v945_v15 }
 0x171   : > { %v867_v20 = vadd.f32 %v866_v16, %v733_v19  ;;  %v808_v21 = vpop.f32.mrf.mxu1 }
 0x172   : > { %v809_v22 = vadd.f32 %v808_v21, %v675_v2 }
 0x173   : > { %v919_v23 = vmax.f32 %v867_v20, 0.0 }
 0x174   : > { %v896_v24 = vmax.f32 %v809_v22, 0.0 }
 0x175   : > { %v969_v25 = vpack.c.bf16 %v919_v23, %v919_v23 }
 0x176   : > { %v946_v26 = vpack.c.bf16 %v896_v24, %v896_v24  ;;  %v734_v27 = vpop.f32.mrf.mxu2 }
 0x177   : > { %1020 = vst.msk [vmem:[%s1617_s30 + $0xc0] sm:$0xf] %vm971_vm0, %v969_v25  ;;  %v735_v28 = vadd.f32 %v1602_v48, %v734_v27 }
 0x178   : > { %997 = vst.msk [vmem:[%s1617_s30 + $0x64] sm:$0xf] %vm971_vm0, %v946_v26 }
 0x179   : > { %v869_v30 = vadd.f32 %v868_v29, %v735_v28 }
 0x17b   : > { %v920_v18 = vmax.f32 %v869_v30, 0.0 }
 0x17d   : > { %v970_v31 = vpack.c.bf16 %v920_v18, %v920_v18 }
 0x17f   : > { %1021 = vst.msk [vmem:[%s1617_s30 + $0xc4] sm:$0xf] %vm971_vm0, %v970_v31 }
 0x180 PF: > { %s13_s12 = sadd.s32 1, %s1449_s12  }
 0x181   : > { %p10_p4 = scmp.ge.s32.totalorder %s13_s12, 4  }
 0x183   :  { %12 = sbr.rel (!%p10_p4) target bundleno = 1 (0x1), region = 62 }

// kernel: dql_forward.4
= control target key start
LH: loop header
LB: loop body
LE: loop exit
PB: predicated region body
PF: predicated region fallthrough
CT: control target
= control target key end

     0   :  { %s735_s12 = smov 0   ;;  %s867_s0 = inlined_call_operand.vmem [shape: bf16[2,81,256], index: 0, kind: input, shape index: {}]   ;;  %s868_s1 = inlined_call_operand.vmem [shape: bf16[256,32], index: 1, kind: input, shape index: {}]   ;;  %s869_s2 = inlined_call_operand.vmem [shape: f32[1,32], index: 2, kind: input, shape index: {}]   ;;  %s870_s3 = inlined_call_operand.vmem [shape: bf16[2,81,32], index: 3, kind: output, shape index: {}]  }
   0x1 LB: > { %s541_s13 = sadd.s32 4294967295, %s713_s12   ;;  %p545_p0 = scmp.ge.s32.totalorder %s713_s12, 1  ;;  %s713_s12 = sphi %s735_s12, %s13_s12  }
   0x2   : > { %p137_p1 = scmp.lt.s32.totalorder %s713_s12, 3 }
   0x4   : > { %p138_p2 = pnand %p545_p0, %p137_p1 }
   0x5   : > { %p161_p3 = scmp.lt.s32.totalorder (!%p138_p2), %s541_s13, 1 }
   0x6   : > { %141 = sbr.rel (%p138_p2) target bundleno = 218 (0xda), region = 32 }
   0xb   : > { %v671_v0 = vld [vmem:[%s868_s1 + $0x38] sm:$0xff]  ;;  %v670_v2 = vld [vmem:[%s868_s1 + $0x30] sm:$0xff]  ;;  %v669_v4 = vld [vmem:[%s868_s1 + $0x28] sm:$0xff]  ;;  %s872_s13 = smov (!%p161_p3, %s541_s13), 1  ;;  %vm469_vm0 = vcmask 257024   ;;  %vm480_vm1 = vcmask 253952  }
   0xc   : > { %v679_v1 = vld [vmem:[%s868_s1 + $0x78] sm:$0xff]  ;;  %371 = vmatpush.bf16.msra.mxu0 %v671_v0  ;;  %680 = vmatpush.bf16.msra.mxu2 %v671_v0  ;;  %v678_v3 = vld [vmem:[%s868_s1 + $0x70] sm:$0xff]  ;;  %v677_v5 = vld [vmem:[%s868_s1 + $0x68] sm:$0xff]  ;;  %s696_s9 = smul.u32 88, %s872_s13  ;;  %vm481_vm2 = vsmask.f32 256 }
   0xd   : > { %409 = vmatpush.bf16.msra.mxu1 %v679_v1  ;;  %688 = vmatpush.bf16.msra.mxu3 %v679_v1  ;;  %v668_v6 = vld [vmem:[%s868_s1 + $0x20] sm:$0xff]  ;;  %v667_v8 = vld [vmem:[%s868_s1 + $0x18] sm:$0xff]  ;;  %v666_v10 = vld [vmem:[%s868_s1 + $0x10] sm:$0xff]  ;;  %s697_s27 = smul.u32 44, %s872_s13 }
   0xe   : > { %v676_v7 = vld [vmem:[%s868_s1 + $0x60] sm:$0xff]  ;;  %v675_v9 = vld [vmem:[%s868_s1 + $0x58] sm:$0xff]  ;;  %v674_v11 = vld [vmem:[%s868_s1 + $0x50] sm:$0xff]  ;;  %s788_s18 = scalar_lea.vmem %s867_s0, %s696_s9 }
   0xf   : > { %v665_v12 = vld [vmem:[%s868_s1 + $0x8] sm:$0xff]  ;;  %v664_v14 = vld [vmem:[%s868_s1] sm:$0xff]  ;;  %v574_v18 = vld [vmem:[%s788_s18 + $0x30] sm:$0xf]  ;;  %s830_s30 = scalar_lea.vmem %s870_s3, %s697_s27 }
  0x10   : > { %372 = vmatpush.bf16.msra.mxu0 %v670_v2  ;;  %681 = vmatpush.bf16.msra.mxu2 %v670_v2  ;;  %v673_v13 = vld [vmem:[%s868_s1 + $0x48] sm:$0xff]  ;;  %v672_v15 = vld [vmem:[%s868_s1 + $0x40] sm:$0xff]  ;;  %v661_v19 = vld [vmem:[%s788_s18 + $0x34] sm:$0xf0] }
  0x11   : > { %410 = vmatpush.bf16.msra.mxu1 %v678_v3  ;;  %689 = vmatpush.bf16.msra.mxu3 %v678_v3  ;;  %v550_v16 = vld [vmem:[%s788_s18] sm:$0xf]  ;;  %v655_v17 = vld [vmem:[%s788_s18 + $0x4] sm:$0xf0]  ;;  %v654_v20 = vld [vmem:[%s788_s18 + $0x4] sm:$0xf]  ;;  %v575_v25 = vor.u32 %v661_v19, %v574_v18 }
  0x12   : > { %v552_v21 = vld [vmem:[%s788_s18 + $0x8] sm:$0xf0]  ;;  %v660_v22 = vld [vmem:[%s788_s18 + $0x34] sm:$0xf]  ;;  %v576_v23 = vld [vmem:[%s788_s18 + $0x38] sm:$0xf0]  ;;  %v551_v24 = vor.u32 %v655_v17, %v550_v16 }
  0x13   : > { %v555_v26 = vor.u32 %v654_v20, %v552_v21  ;;  %v579_v27 = vor.u32 %v660_v22, %v576_v23  ;;  %v558_v28 = vld [vmem:[%s788_s18 + $0x10] sm:$0xf]  ;;  %v657_v29 = vld [vmem:[%s788_s18 + $0x14] sm:$0xf0]  ;;  %v582_v30 = vld [vmem:[%s788_s18 + $0x40] sm:$0xf] }
  0x14   : > { %373 = vmatpush.bf16.msra.mxu0 %v669_v4  ;;  %682 = vmatpush.bf16.msra.mxu2 %v669_v4  ;;  %v663_v31 = vld [vmem:[%s788_s18 + $0x44] sm:$0xf0]  ;;  %v656_v32 = vld [vmem:[%s788_s18 + $0x14] sm:$0xf]  ;;  %v560_v33 = vld [vmem:[%s788_s18 + $0x18] sm:$0xf0]  ;;  %v559_v36 = vor.u32 %v657_v29, %v558_v28 }
  0x15   : > { %411 = vmatpush.bf16.msra.mxu1 %v677_v5  ;;  %690 = vmatpush.bf16.msra.mxu3 %v677_v5  ;;  %v662_v34 = vld [vmem:[%s788_s18 + $0x44] sm:$0xf]  ;;  %v584_v35 = vld [vmem:[%s788_s18 + $0x48] sm:$0xf0]  ;;  %v583_v37 = vor.u32 %v663_v31, %v582_v30  ;;  %v563_v38 = vor.u32 %v656_v32, %v560_v33  ;;  %v181_v40 = vld [vmem:[%s788_s18 + $0x50] sm:$0x11] }
  0x16   : > { %v587_v39 = vor.u32 %v662_v34, %v584_v35  ;;  %v249_v41 = vunpack.c.l.b16 %v181_v40  ;;  %v566_v42 = vld [vmem:[%s788_s18 + $0x20] sm:$0xf]  ;;  %v659_v43 = vld [vmem:[%s788_s18 + $0x24] sm:$0xf0]  ;;  %v250_v44 = vunpack.c.h.b16 %v181_v40  ;;  %v658_v45 = vld [vmem:[%s788_s18 + $0x24] sm:$0xf] }
  0x17   : > { %v568_v46 = vld [vmem:[%s788_s18 + $0x28] sm:$0xf0]  ;;  %v567_v47 = vor.u32 %v659_v43, %v566_v42  ;;  %v823_v51 = vld [vmem:[%s869_s2] ss:$0 sm:$0xff]  ;;  %vm482_vm3 = vmand %vm480_vm1, %vm481_vm2 }
  0x18   : > { %374 = vmatpush.bf16.msra.mxu0 %v668_v6  ;;  %683 = vmatpush.bf16.msra.mxu2 %v668_v6  ;;  %v261_v48 = vpack.c.b16 %v249_v41, %v249_v41  ;;  %v571_v49 = vor.u32 %v658_v45, %v568_v46  ;;  %v262_v50 = vpack.c.b16 %v250_v44, %v250_v44 }
  0x19   : > { %412 = vmatpush.bf16.msra.mxu1 %v676_v7  ;;  %691 = vmatpush.bf16.msra.mxu3 %v676_v7 }
  0x1c   : > { %375 = vmatpush.bf16.msra.mxu0 %v667_v8  ;;  %684 = vmatpush.bf16.msra.mxu2 %v667_v8 }
  0x1d   : > { %413 = vmatpush.bf16.msra.mxu1 %v675_v9  ;;  %692 = vmatpush.bf16.msra.mxu3 %v675_v9 }
  0x20   : > { %376 = vmatpush.bf16.msra.mxu0 %v666_v10  ;;  %685 = vmatpush.bf16.msra.mxu2 %v666_v10 }
  0x21   : > { %414 = vmatpush.bf16.msra.mxu1 %v674_v11  ;;  %693 = vmatpush.bf16.msra.mxu3 %v674_v11 }
  0x24   : > { %377 = vmatpush.bf16.msra.mxu0 %v665_v12  ;;  %686 = vmatpush.bf16.msra.mxu2 %v665_v12 }
  0x25   : > { %415 = vmatpush.bf16.msra.mxu1 %v673_v13  ;;  %694 = vmatpush.bf16.msra.mxu3 %v673_v13 }
  0x28   : > { %378 = vmatpush.bf16.msra.mxu0 %v664_v14  ;;  %687 = vmatpush.bf16.msra.mxu2 %v664_v14 }
  0x29   : > { %416 = vmatpush.bf16.msra.mxu1 %v672_v15  ;;  %695 = vmatpush.bf16.msra.mxu3 %v672_v15 }
  0x2b   : > { %379 = vmatmul.bf16.vlgmr.msra.gmra.mxu0 %v551_v24  ;;  %394 = vmatmul.bf16.vlgmr.msra.gmra.mxu2 %v575_v25 }
  0x2c   : > { %417 = vmatmul.bf16.vlgmr.msra.gmra.mxu1 %v555_v26  ;;  %432 = vmatmul.bf16.vlgmr.msra.gmra.mxu3 %v579_v27 }
  0x3b   : > { %384 = vmatmul.bf16.gmra.mxu0 %v559_v36  ;;  %399 = vmatmul.bf16.gmra.mxu2 %v583_v37 }
  0x3c   : > { %422 = vmatmul.bf16.gmra.mxu1 %v563_v38  ;;  %437 = vmatmul.bf16.gmra.mxu3 %v587_v39 }
  0x4b   : > { %389 = vmatmul.bf16.gmra.mxu0 %v567_v47  ;;  %404 = vmatmul.bf16.gmra.mxu2 %v261_v48 }
  0x4c   : > { %427 = vmatmul.bf16.gmra.mxu1 %v571_v49  ;;  %442 = vmatmul.bf16.gmra.mxu3 %v262_v50 }
  0xa8   : > { %v380_v52 = vpop.f32.mrf.mxu0 }
  0xa9   : > { %v381_v53 = vadd.f32 %v823_v51, %v380_v52  ;;  %v418_v54 = vpop.f32.mrf.mxu1  ;;  %v483_v52 = vld [vmem:[%s830_s30 + $0x28] sm:$0x1] }
  0xab   : > { %v419_v55 = vadd.f32 %v418_v54, %v381_v53 }
  0xad   : > { %v447_v56 = vmax.f32 %v419_v55, 0.0 }
  0xae   : > { %v395_v57 = vpop.f32.mrf.mxu2 }
  0xaf   : > { %v458_v58 = vpack.c.bf16 %v447_v56, %v447_v56  ;;  %v396_v59 = vadd.f32 %v823_v51, %v395_v57  ;;  %v433_v60 = vpop.f32.mrf.mxu3 }
  0xb0   : > { %v382_v61 = vpop.f32.mrf.mxu0 }
  0xb1   : > { %470 = vst.msk [vmem:[%s830_s30] sm:$0xf] %vm469_vm0, %v458_v58  ;;  %v434_v62 = vadd.f32 %v433_v60, %v396_v59  ;;  %v383_v63 = vadd.f32 %v823_v51, %v382_v61  ;;  %v420_v0 = vpop.f32.mrf.mxu1 }
  0xb3   : > { %v453_v1 = vmax.f32 %v434_v62, 0.0  ;;  %v421_v2 = vadd.f32 %v420_v0, %v383_v63 }
  0xb5   : > { %v464_v3 = vpack.c.bf16 %v453_v1, %v453_v1  ;;  %v448_v4 = vmax.f32 %v421_v2, 0.0 }
  0xb6   : > { %v397_v5 = vpop.f32.mrf.mxu2 }
  0xb7   : > { %476 = vst.msk [vmem:[%s830_s30 + $0x18] sm:$0xf] %vm469_vm0, %v464_v3  ;;  %v459_v6 = vpack.c.bf16 %v448_v4, %v448_v4  ;;  %v398_v7 = vadd.f32 %v823_v51, %v397_v5  ;;  %v435_v8 = vpop.f32.mrf.mxu3 }
  0xb8   : > { %v385_v9 = vpop.f32.mrf.mxu0 }
  0xb9   : > { %471 = vst.msk [vmem:[%s830_s30 + $0x4] sm:$0xf] %vm469_vm0, %v459_v6  ;;  %v436_v10 = vadd.f32 %v435_v8, %v398_v7  ;;  %v386_v11 = vadd.f32 %v823_v51, %v385_v9  ;;  %v423_v12 = vpop.f32.mrf.mxu1 }
  0xbb   : > { %v454_v13 = vmax.f32 %v436_v10, 0.0  ;;  %v424_v14 = vadd.f32 %v423_v12, %v386_v11 }
  0xbd   : > { %v465_v15 = vpack.c.bf16 %v454_v13, %v454_v13  ;;  %v449_v16 = vmax.f32 %v424_v14, 0.0 }
  0xbe   : > { %v400_v17 = vpop.f32.mrf.mxu2 }
  0xbf   : > { %477 = vst.msk [vmem:[%s830_s30 + $0x1c] sm:$0xf] %vm469_vm0, %v465_v15  ;;  %v460_v18 = vpack.c.bf16 %v449_v16, %v449_v16  ;;  %v401_v19 = vadd.f32 %v823_v51, %v400_v17  ;;  %v438_v20 = vpop.f32.mrf.mxu3 }
  0xc0   : > { %v387_v21 = vpop.f32.mrf.mxu0 }
  0xc1   : > { %472 = vst.msk [vmem:[%s830_s30 + $0x8] sm:$0xf] %vm469_vm0, %v460_v18  ;;  %v439_v22 = vadd.f32 %v438_v20, %v401_v19  ;;  %v388_v23 = vadd.f32 %v823_v51, %v387_v21  ;;  %v425_v24 = vpop.f32.mrf.mxu1 }
  0xc3   : > { %v455_v25 = vmax.f32 %v439_v22, 0.0  ;;  %v426_v26 = vadd.f32 %v425_v24, %v388_v23 }
  0xc5   : > { %v466_v27 = vpack.c.bf16 %v455_v25, %v455_v25  ;;  %v450_v28 = vmax.f32 %v426_v26, 0.0 }
  0xc6   : > { %v402_v29 = vpop.f32.mrf.mxu2 }
  0xc7   : > { %478 = vst.msk [vmem:[%s830_s30 + $0x20] sm:$0xf] %vm469_vm0, %v466_v27  ;;  %v461_v30 = vpack.c.bf16 %v450_v28, %v450_v28  ;;  %v403_v31 = vadd.f32 %v823_v51, %v402_v29  ;;  %v440_v32 = vpop.f32.mrf.mxu3 }
  0xc8   : > { %v390_v33 = vpop.f32.mrf.mxu0 }
  0xc9   : > { %473 = vst.msk [vmem:[%s830_s30 + $0xc] sm:$0xf] %vm469_vm0, %v461_v30  ;;  %v441_v34 = vadd.f32 %v440_v32, %v403_v31  ;;  %v391_v35 = vadd.f32 %v823_v51, %v390_v33  ;;  %v428_v36 = vpop.f32.mrf.mxu1 }
  0xcb   : > { %v456_v37 = vmax.f32 %v441_v34, 0.0  ;;  %v429_v38 = vadd.f32 %v428_v36, %v391_v35 }
  0xcd   : > { %v467_v39 = vpack.c.bf16 %v456_v37, %v456_v37  ;;  %v451_v40 = vmax.f32 %v429_v38, 0.0 }
  0xce   : > { %v405_v41 = vpop.f32.mrf.mxu2 }
  0xcf   : > { %479 = vst.msk [vmem:[%s830_s30 + $0x24] sm:$0xf] %vm469_vm0, %v467_v39  ;;  %v462_v42 = vpack.c.bf16 %v451_v40, %v451_v40  ;;  %v406_v43 = vadd.f32 %v823_v51, %v405_v41  ;;  %v443_v44 = vpop.f32.mrf.mxu3 }
  0xd0   : > { %v392_v45 = vpop.f32.mrf.mxu0 }
  0xd1   : > { %474 = vst.msk [vmem:[%s830_s30 + $0x10] sm:$0xf] %vm469_vm0, %v462_v42  ;;  %v444_v46 = vadd.f32 %v443_v44, %v406_v43  ;;  %v393_v47 = vadd.f32 %v823_v51, %v392_v45  ;;  %v430_v48 = vpop.f32.mrf.mxu1 }
  0xd3   : > { %v457_v49 = vmax.f32 %v444_v46, 0.0  ;;  %v431_v50 = vadd.f32 %v430_v48, %v393_v47 }
  0xd5   : > { %v468_v53 = vpack.c.bf16 %v457_v49, %v457_v49  ;;  %v452_v54 = vmax.f32 %v431_v50, 0.0 }
  0xd6   : > { %v407_v55 = vpop.f32.mrf.mxu2 }
  0xd7   : > { %v484_v56 = vsel %vm482_vm3, %v468_v53, %v483_v52  ;;  %v463_v57 = vpack.c.bf16 %v452_v54, %v452_v54  ;;  %v445_v58 = vpop.f32.mrf.mxu3 }
  0xd8   : > { %485 = vst [vmem:[%s830_s30 + $0x28] sm:$0x1] %v484_v56 }
  0xd9   : > { %475 = vst.msk [vmem:[%s830_s30 + $0x14] sm:$0xf] %vm469_vm0, %v463_v57 }
  0xda PF: > { %s13_s12 = sadd.s32 1, %s713_s12  }
  0xdb   : > { %p10_p4 = scmp.ge.s32.totalorder %s13_s12, 4  }
  0xdd   :  { %12 = sbr.rel (!%p10_p4) target bundleno = 1 (0x1), region = 62 }

// kernel: dql_forward.5
= control target key start
LH: loop header
LB: loop body
LE: loop exit
PB: predicated region body
PF: predicated region fallthrough
CT: control target
= control target key end

     0   :  { %s6630_s0 = inlined_call_operand.vmem [shape: bf16[2,2592], index: 0, kind: input, shape index: {}]   ;;  %s6631_s1 = inlined_call_operand.vmem [shape: bf16[2592,256], index: 1, kind: input, shape index: {}]   ;;  %s6632_s2 = inlined_call_operand.vmem [shape: f32[1,256], index: 2, kind: input, shape index: {}]   ;;  %s6633_s3 = inlined_call_operand.vmem [shape: bf16[256,6], index: 3, kind: input, shape index: {}]   ;;  %s6634_s4 = inlined_call_operand.vmem [shape: f32[1,6], index: 4, kind: input, shape index: {}]   ;;  %s6635_s5 = inlined_call_operand.hbm [shape: f32[2,6], index: 5, kind: output, shape index: {}]  }
   0x1   :  { %v2809_v0 = vld [vmem:[%s6631_s1 + $0x70] sm:$0xf]  ;;  %v4128_v1 = vld [vmem:[%s6631_s1 + $0x74] sm:$0xf0]  ;;  %v2801_v11 = vld [vmem:[%s6631_s1 + $0x60] sm:$0xf] }
   0x2   :  { %v2873_v2 = vld [vmem:[%s6631_s1 + $0xf0] sm:$0xf]  ;;  %v2810_v3 = vor.u32 %v4128_v1, %v2809_v0  ;;  %v4144_v4 = vld [vmem:[%s6631_s1 + $0xf4] sm:$0xf0]  ;;  %v4126_v13 = vld [vmem:[%s6631_s1 + $0x64] sm:$0xf0] }
   0x3   :  { %v2937_v5 = vld [vmem:[%s6631_s1 + $0x170] sm:$0xf]  ;;  %v4160_v6 = vld [vmem:[%s6631_s1 + $0x174] sm:$0xf0]  ;;  %v2874_v7 = vor.u32 %v4144_v4, %v2873_v2  ;;  %v2865_v14 = vld [vmem:[%s6631_s1 + $0xe0] sm:$0xf]  ;;  %v2802_v16 = vor.u32 %v4126_v13, %v2801_v11 }
   0x4   :  { %v2938_v8 = vor.u32 %v4160_v6, %v2937_v5  ;;  %v3001_v9 = vld [vmem:[%s6631_s1 + $0x1f0] sm:$0xf]  ;;  %v4176_v10 = vld [vmem:[%s6631_s1 + $0x1f4] sm:$0xf0]  ;;  %2025 = vmatpush.bf16.msra.mxu0 %v2810_v3  ;;  %v4142_v15 = vld [vmem:[%s6631_s1 + $0xe4] sm:$0xf0] }
   0x5   :  { %v3002_v12 = vor.u32 %v4176_v10, %v3001_v9  ;;  %2038 = vmatpush.bf16.msra.mxu1 %v2874_v7  ;;  %v2866_v17 = vor.u32 %v4142_v15, %v2865_v14  ;;  %v2929_v18 = vld [vmem:[%s6631_s1 + $0x160] sm:$0xf]  ;;  %v4158_v19 = vld [vmem:[%s6631_s1 + $0x164] sm:$0xf0]  ;;  %v2793_v23 = vld [vmem:[%s6631_s1 + $0x50] sm:$0xf] }
   0x6   :  { %2051 = vmatpush.bf16.msra.mxu2 %v2938_v8  ;;  %v2993_v20 = vld [vmem:[%s6631_s1 + $0x1e0] sm:$0xf]  ;;  %v2930_v21 = vor.u32 %v4158_v19, %v2929_v18  ;;  %v4174_v22 = vld [vmem:[%s6631_s1 + $0x1e4] sm:$0xf0]  ;;  %v4124_v24 = vld [vmem:[%s6631_s1 + $0x54] sm:$0xf0] }
   0x7   :  { %2064 = vmatpush.bf16.msra.mxu3 %v3002_v12  ;;  %v2994_v25 = vor.u32 %v4174_v22, %v2993_v20  ;;  %v2857_v26 = vld [vmem:[%s6631_s1 + $0xd0] sm:$0xf]  ;;  %v4140_v27 = vld [vmem:[%s6631_s1 + $0xd4] sm:$0xf0]  ;;  %v2794_v29 = vor.u32 %v4124_v24, %v2793_v23  ;;  %v2785_v35 = vld [vmem:[%s6631_s1 + $0x40] sm:$0xf] }
   0x8   :  { %v2921_v28 = vld [vmem:[%s6631_s1 + $0x150] sm:$0xf]  ;;  %2026 = vmatpush.bf16.msra.mxu0 %v2802_v16  ;;  %v4156_v30 = vld [vmem:[%s6631_s1 + $0x154] sm:$0xf0]  ;;  %v2858_v33 = vor.u32 %v4140_v27, %v2857_v26  ;;  %v4122_v36 = vld [vmem:[%s6631_s1 + $0x44] sm:$0xf0] }
   0x9   :  { %v2985_v31 = vld [vmem:[%s6631_s1 + $0x1d0] sm:$0xf]  ;;  %v4172_v32 = vld [vmem:[%s6631_s1 + $0x1d4] sm:$0xf0]  ;;  %2039 = vmatpush.bf16.msra.mxu1 %v2866_v17  ;;  %v2922_v34 = vor.u32 %v4156_v30, %v2921_v28  ;;  %v2849_v37 = vld [vmem:[%s6631_s1 + $0xc0] sm:$0xf]  ;;  %v2786_v44 = vor.u32 %v4122_v36, %v2785_v35 }
   0xa   :  { %2052 = vmatpush.bf16.msra.mxu2 %v2930_v21  ;;  %v2986_v38 = vor.u32 %v4172_v32, %v2985_v31  ;;  %v4138_v39 = vld [vmem:[%s6631_s1 + $0xc4] sm:$0xf0]  ;;  %v2913_v40 = vld [vmem:[%s6631_s1 + $0x140] sm:$0xf]  ;;  %v2777_v47 = vld [vmem:[%s6631_s1 + $0x30] sm:$0xf] }
   0xb   :  { %2065 = vmatpush.bf16.msra.mxu3 %v2994_v25  ;;  %v4154_v41 = vld [vmem:[%s6631_s1 + $0x144] sm:$0xf0]  ;;  %v2977_v42 = vld [vmem:[%s6631_s1 + $0x1c0] sm:$0xf]  ;;  %v2850_v45 = vor.u32 %v4138_v39, %v2849_v37  ;;  %v4120_v48 = vld [vmem:[%s6631_s1 + $0x34] sm:$0xf0] }
   0xc   :  { %v4170_v43 = vld [vmem:[%s6631_s1 + $0x1c4] sm:$0xf0]  ;;  %2027 = vmatpush.bf16.msra.mxu0 %v2794_v29  ;;  %v2914_v46 = vor.u32 %v4154_v41, %v2913_v40  ;;  %v2841_v49 = vld [vmem:[%s6631_s1 + $0xb0] sm:$0xf]  ;;  %v4136_v51 = vld [vmem:[%s6631_s1 + $0xb4] sm:$0xf0]  ;;  %v2778_v56 = vor.u32 %v4120_v48, %v2777_v47 }
   0xd   :  { %2040 = vmatpush.bf16.msra.mxu1 %v2858_v33  ;;  %v2978_v50 = vor.u32 %v4170_v43, %v2977_v42  ;;  %v2905_v52 = vld [vmem:[%s6631_s1 + $0x130] sm:$0xf]  ;;  %v4152_v53 = vld [vmem:[%s6631_s1 + $0x134] sm:$0xf0]  ;;  %v2842_v57 = vor.u32 %v4136_v51, %v2841_v49  ;;  %v2769_v59 = vld [vmem:[%s6631_s1 + $0x20] sm:$0xf] }
   0xe   :  { %2053 = vmatpush.bf16.msra.mxu2 %v2922_v34  ;;  %v2969_v54 = vld [vmem:[%s6631_s1 + $0x1b0] sm:$0xf]  ;;  %v4168_v55 = vld [vmem:[%s6631_s1 + $0x1b4] sm:$0xf0]  ;;  %v2906_v58 = vor.u32 %v4152_v53, %v2905_v52  ;;  %v4118_v60 = vld [vmem:[%s6631_s1 + $0x24] sm:$0xf0] }
   0xf   :  { %2066 = vmatpush.bf16.msra.mxu3 %v2986_v38  ;;  %v2833_v61 = vld [vmem:[%s6631_s1 + $0xa0] sm:$0xf]  ;;  %v2970_v62 = vor.u32 %v4168_v55, %v2969_v54  ;;  %v4134_v63 = vld [vmem:[%s6631_s1 + $0xa4] sm:$0xf0]  ;;  %v2770_v4 = vor.u32 %v4118_v60, %v2769_v59  ;;  %v2761_v7 = vld [vmem:[%s6631_s1 + $0x10] sm:$0xf] }
  0x10   :  { %2028 = vmatpush.bf16.msra.mxu0 %v2786_v44  ;;  %v2897_v0 = vld [vmem:[%s6631_s1 + $0x120] sm:$0xf]  ;;  %v4150_v1 = vld [vmem:[%s6631_s1 + $0x124] sm:$0xf0]  ;;  %v2834_v5 = vor.u32 %v4134_v63, %v2833_v61  ;;  %v4116_v8 = vld [vmem:[%s6631_s1 + $0x14] sm:$0xf0] }
  0x11   :  { %2041 = vmatpush.bf16.msra.mxu1 %v2850_v45  ;;  %v2961_v2 = vld [vmem:[%s6631_s1 + $0x1a0] sm:$0xf]  ;;  %v4166_v3 = vld [vmem:[%s6631_s1 + $0x1a4] sm:$0xf0]  ;;  %v2898_v6 = vor.u32 %v4150_v1, %v2897_v0  ;;  %v2825_v9 = vld [vmem:[%s6631_s1 + $0x90] sm:$0xf]  ;;  %v2762_v16 = vor.u32 %v4116_v8, %v2761_v7 }
  0x12   :  { %2054 = vmatpush.bf16.msra.mxu2 %v2914_v46  ;;  %v2962_v10 = vor.u32 %v4166_v3, %v2961_v2  ;;  %v4132_v11 = vld [vmem:[%s6631_s1 + $0x94] sm:$0xf0]  ;;  %v2889_v12 = vld [vmem:[%s6631_s1 + $0x110] sm:$0xf]  ;;  %v2753_v17 = vld [vmem:[%s6631_s1] sm:$0xf] }
  0x13   :  { %2067 = vmatpush.bf16.msra.mxu3 %v2978_v50  ;;  %v4148_v13 = vld [vmem:[%s6631_s1 + $0x114] sm:$0xf0]  ;;  %v2953_v14 = vld [vmem:[%s6631_s1 + $0x190] sm:$0xf]  ;;  %v4114_v18 = vld [vmem:[%s6631_s1 + $0x4] sm:$0xf0]  ;;  %v2826_v19 = vor.u32 %v4132_v11, %v2825_v9 }
  0x14   :  { %2029 = vmatpush.bf16.msra.mxu0 %v2778_v56  ;;  %v4164_v15 = vld [vmem:[%s6631_s1 + $0x194] sm:$0xf0]  ;;  %v2890_v20 = vor.u32 %v4148_v13, %v2889_v12  ;;  %v2817_v21 = vld [vmem:[%s6631_s1 + $0x80] sm:$0xf]  ;;  %v4130_v22 = vld [vmem:[%s6631_s1 + $0x84] sm:$0xf0]  ;;  %v2754_v31 = vor.u32 %v4114_v18, %v2753_v17 }
  0x15   :  { %2042 = vmatpush.bf16.msra.mxu1 %v2842_v57  ;;  %v2881_v23 = vld [vmem:[%s6631_s1 + $0x100] sm:$0xf]  ;;  %v2954_v24 = vor.u32 %v4164_v15, %v2953_v14  ;;  %v4146_v25 = vld [vmem:[%s6631_s1 + $0x104] sm:$0xf0]  ;;  %v3065_v28 = vld [vmem:[%s6631_s1 + $0x270] sm:$0xf]  ;;  %v2818_v35 = vor.u32 %v4130_v22, %v2817_v21 }
  0x16   :  { %2055 = vmatpush.bf16.msra.mxu2 %v2906_v58  ;;  %v2945_v26 = vld [vmem:[%s6631_s1 + $0x180] sm:$0xf]  ;;  %v4162_v27 = vld [vmem:[%s6631_s1 + $0x184] sm:$0xf0]  ;;  %v4192_v29 = vld [vmem:[%s6631_s1 + $0x274] sm:$0xf0]  ;;  %v2882_v36 = vor.u32 %v4146_v25, %v2881_v23 }
  0x17   :  { %2068 = vmatpush.bf16.msra.mxu3 %v2970_v62  ;;  %v3129_v30 = vld [vmem:[%s6631_s1 + $0x2f0] sm:$0xf]  ;;  %v4208_v32 = vld [vmem:[%s6631_s1 + $0x2f4] sm:$0xf0]  ;;  %v2946_v39 = vor.u32 %v4162_v27, %v2945_v26  ;;  %v3066_v40 = vor.u32 %v4192_v29, %v3065_v28  ;;  %v3057_v43 = vld [vmem:[%s6631_s1 + $0x260] sm:$0xf] }
  0x18   :  { %2030 = vmatpush.bf16.msra.mxu0 %v2770_v4  ;;  %v3193_v33 = vld [vmem:[%s6631_s1 + $0x370] sm:$0xf]  ;;  %v4224_v34 = vld [vmem:[%s6631_s1 + $0x374] sm:$0xf0]  ;;  %v3130_v41 = vor.u32 %v4208_v32, %v3129_v30  ;;  %v4190_v44 = vld [vmem:[%s6631_s1 + $0x264] sm:$0xf0] }
  0x19   :  { %2043 = vmatpush.bf16.msra.mxu1 %v2834_v5  ;;  %v3257_v37 = vld [vmem:[%s6631_s1 + $0x3f0] sm:$0xf]  ;;  %v4240_v38 = vld [vmem:[%s6631_s1 + $0x3f4] sm:$0xf0]  ;;  %v3194_v42 = vor.u32 %v4224_v34, %v3193_v33  ;;  %v3121_v45 = vld [vmem:[%s6631_s1 + $0x2e0] sm:$0xf]  ;;  %v3058_v52 = vor.u32 %v4190_v44, %v3057_v43 }
  0x1a   :  { %2056 = vmatpush.bf16.msra.mxu2 %v2898_v6  ;;  %v3258_v46 = vor.u32 %v4240_v38, %v3257_v37  ;;  %v4206_v47 = vld [vmem:[%s6631_s1 + $0x2e4] sm:$0xf0]  ;;  %v3185_v48 = vld [vmem:[%s6631_s1 + $0x360] sm:$0xf]  ;;  %v3049_v53 = vld [vmem:[%s6631_s1 + $0x250] sm:$0xf] }
  0x1b   :  { %2069 = vmatpush.bf16.msra.mxu3 %v2962_v10  ;;  %v4222_v49 = vld [vmem:[%s6631_s1 + $0x364] sm:$0xf0]  ;;  %v3249_v50 = vld [vmem:[%s6631_s1 + $0x3e0] sm:$0xf]  ;;  %v4188_v54 = vld [vmem:[%s6631_s1 + $0x254] sm:$0xf0]  ;;  %v3122_v55 = vor.u32 %v4206_v47, %v3121_v45 }
  0x1c   :  { %2031 = vmatpush.bf16.msra.mxu0 %v2762_v16  ;;  %v4238_v51 = vld [vmem:[%s6631_s1 + $0x3e4] sm:$0xf0]  ;;  %v3186_v56 = vor.u32 %v4222_v49, %v3185_v48  ;;  %v3113_v57 = vld [vmem:[%s6631_s1 + $0x2d0] sm:$0xf]  ;;  %v4204_v58 = vld [vmem:[%s6631_s1 + $0x2d4] sm:$0xf0]  ;;  %v3050_v1 = vor.u32 %v4188_v54, %v3049_v53 }
  0x1d   :  { %2044 = vmatpush.bf16.msra.mxu1 %v2826_v19  ;;  %v22_v59 = vld [vmem:[%s6630_s0] sm:$0xff]  ;;  %v3250_v60 = vor.u32 %v4238_v51, %v3249_v50  ;;  %v3177_v61 = vld [vmem:[%s6631_s1 + $0x350] sm:$0xf]  ;;  %v4220_v62 = vld [vmem:[%s6631_s1 + $0x354] sm:$0xf0]  ;;  %v3114_v2 = vor.u32 %v4204_v58, %v3113_v57 }
  0x1e   :  { %2057 = vmatpush.bf16.msra.mxu2 %v2890_v20  ;;  %356 = vst [vmem:[#allocation1] ss:$9 sm:$0xff] %v22_v59  ;;  %v3241_v63 = vld [vmem:[%s6631_s1 + $0x3d0] sm:$0xf]  ;;  %v4236_v0 = vld [vmem:[%s6631_s1 + $0x3d4] sm:$0xf0]  ;;  %v3178_v3 = vor.u32 %v4220_v62, %v3177_v61 }
  0x1f   :  { %2070 = vmatpush.bf16.msra.mxu3 %v2954_v24  ;;  %v3041_v4 = vld [vmem:[%s6631_s1 + $0x240] sm:$0xf]  ;;  %v4186_v5 = vld [vmem:[%s6631_s1 + $0x244] sm:$0xf0]  ;;  %v3242_v7 = vor.u32 %v4236_v0, %v3241_v63  ;;  %v3033_v13 = vld [vmem:[%s6631_s1 + $0x230] sm:$0xf] }
  0x20   :  { %2032 = vmatpush.bf16.msra.mxu0 %v2754_v31  ;;  %v3105_v6 = vld [vmem:[%s6631_s1 + $0x2c0] sm:$0xf]  ;;  %v4202_v8 = vld [vmem:[%s6631_s1 + $0x2c4] sm:$0xf0]  ;;  %v3042_v14 = vor.u32 %v4186_v5, %v3041_v4  ;;  %v4184_v15 = vld [vmem:[%s6631_s1 + $0x234] sm:$0xf0] }
  0x21   :  { %2045 = vmatpush.bf16.msra.mxu1 %v2818_v35  ;;  %v3169_v9 = vld [vmem:[%s6631_s1 + $0x340] sm:$0xf]  ;;  %v4218_v10 = vld [vmem:[%s6631_s1 + $0x344] sm:$0xf0]  ;;  %v3097_v16 = vld [vmem:[%s6631_s1 + $0x2b0] sm:$0xf]  ;;  %v3106_v18 = vor.u32 %v4202_v8, %v3105_v6  ;;  %v3034_v29 = vor.u32 %v4184_v15, %v3033_v13 }
  0x22   :  { %2058 = vmatpush.bf16.msra.mxu2 %v2882_v36  ;;  %v3233_v11 = vld [vmem:[%s6631_s1 + $0x3c0] sm:$0xf]  ;;  %v4234_v12 = vld [vmem:[%s6631_s1 + $0x3c4] sm:$0xf0]  ;;  %v4200_v17 = vld [vmem:[%s6631_s1 + $0x2b4] sm:$0xf0]  ;;  %v3170_v19 = vor.u32 %v4218_v10, %v3169_v9 }
  0x23   :  { %2071 = vmatpush.bf16.msra.mxu3 %v2946_v39  ;;  %v3234_v23 = vor.u32 %v4234_v12, %v3233_v11  ;;  %v3161_v24 = vld [vmem:[%s6631_s1 + $0x330] sm:$0xf]  ;;  %v4216_v25 = vld [vmem:[%s6631_s1 + $0x334] sm:$0xf0]  ;;  %v3025_v30 = vld [vmem:[%s6631_s1 + $0x220] sm:$0xf]  ;;  %v3098_v31 = vor.u32 %v4200_v17, %v3097_v16 }
  0x24   :  { %2077 = vmatpush.bf16.msrb.mxu0 %v3066_v40  ;;  %v3225_v27 = vld [vmem:[%s6631_s1 + $0x3b0] sm:$0xf]  ;;  %v4232_v28 = vld [vmem:[%s6631_s1 + $0x3b4] sm:$0xf0]  ;;  %v3162_v32 = vor.u32 %v4216_v25, %v3161_v24  ;;  %v4182_v33 = vld [vmem:[%s6631_s1 + $0x224] sm:$0xf0] }
  0x25   :  { %2090 = vmatpush.bf16.msrb.mxu1 %v3130_v41  ;;  %v4821_v20 = vld [vmem:[#allocation1 + $0x12] sm:$0xff]  ;;  %v4823_v21 = vld [vmem:[#allocation1] sm:$0xff]  ;;  %v4834_v26 = vld [vmem:[#allocation1 + $0x9] sm:$0xff]  ;;  %v3226_v36 = vor.u32 %v4232_v28, %v3225_v27  ;;  %v3026_v43 = vor.u32 %v4182_v33, %v3025_v30 }
  0x26   :  { %2103 = vmatpush.bf16.msrb.mxu2 %v3194_v42  ;;  %v4825_v22 = vld [vmem:[#allocation1 + $0x1b] sm:$0xff]  ;;  %2033 = vmatmul.bf16.vlgmr.msra.gmra.mxu0 %v4823_v21  ;;  %v4198_v35 = vld [vmem:[%s6631_s1 + $0x2a4] sm:$0xf0]  ;;  %v3017_v41 = vld [vmem:[%s6631_s1 + $0x210] sm:$0xf] }
  0x27   :  { %2116 = vmatpush.bf16.msrb.mxu3 %v3258_v46  ;;  %2059 = vmatmul.bf16.vlgmr.msra.gmra.mxu2 %v4821_v20  ;;  %v3089_v34 = vld [vmem:[%s6631_s1 + $0x2a0] sm:$0xf]  ;;  %v4214_v38 = vld [vmem:[%s6631_s1 + $0x324] sm:$0xf0]  ;;  %v4180_v42 = vld [vmem:[%s6631_s1 + $0x214] sm:$0xf0] }
  0x28   :  { %2078 = vmatpush.bf16.msrb.mxu0 %v3058_v52  ;;  %2072 = vmatmul.bf16.vlgmr.msra.gmra.mxu3 %v4825_v22  ;;  %v3153_v37 = vld [vmem:[%s6631_s1 + $0x320] sm:$0xf]  ;;  %v4230_v40 = vld [vmem:[%s6631_s1 + $0x3a4] sm:$0xf0]  ;;  %v3081_v44 = vld [vmem:[%s6631_s1 + $0x290] sm:$0xf]  ;;  %v3090_v47 = vor.u32 %v4198_v35, %v3089_v34  ;;  %v3018_v58 = vor.u32 %v4180_v42, %v3017_v41 }
  0x29   :  { %2091 = vmatpush.bf16.msrb.mxu1 %v3122_v55  ;;  %v3217_v39 = vld [vmem:[%s6631_s1 + $0x3a0] sm:$0xf]  ;;  %v4196_v45 = vld [vmem:[%s6631_s1 + $0x294] sm:$0xf0]  ;;  %v3145_v46 = vld [vmem:[%s6631_s1 + $0x310] sm:$0xf]  ;;  %v3154_v48 = vor.u32 %v4214_v38, %v3153_v37 }
  0x2a   :  { %2104 = vmatpush.bf16.msrb.mxu2 %v3186_v56  ;;  %2046 = vmatmul.bf16.vlgmr.msra.gmra.mxu1 %v4834_v26  ;;  %v4212_v49 = vld [vmem:[%s6631_s1 + $0x314] sm:$0xf0]  ;;  %v4889_v51 = vld [vmem:[#allocation1 + $0x24] sm:$0xff]  ;;  %v3218_v52 = vor.u32 %v4230_v40, %v3217_v39  ;;  %v4896_v55 = vld [vmem:[#allocation1 + $0x2d] sm:$0xff]  ;;  %v3082_v61 = vor.u32 %v4196_v45, %v3081_v44 }
  0x2b   :  { %2117 = vmatpush.bf16.msrb.mxu3 %v3250_v60  ;;  %v4887_v50 = vld [vmem:[#allocation1 + $0x36] sm:$0xff]  ;;  %v4891_v53 = vld [vmem:[#allocation1 + $0x3f] sm:$0xff]  ;;  %v23_v54 = vld [vmem:[%s6630_s0 + $0x8] sm:$0xff]  ;;  %v3146_v62 = vor.u32 %v4212_v49, %v3145_v46 }
  0x2c   :  { %2079 = vmatpush.bf16.msrb.mxu0 %v3050_v1  ;;  %v3209_v56 = vld [vmem:[%s6631_s1 + $0x390] sm:$0xf]  ;;  %v4228_v57 = vld [vmem:[%s6631_s1 + $0x394] sm:$0xf0]  ;;  %366 = vst [vmem:[#allocation1] ss:$9 sm:$0xff] %v23_v54 }
  0x2d   :  { %2092 = vmatpush.bf16.msrb.mxu1 %v3114_v2  ;;  %v3009_v59 = vld [vmem:[%s6631_s1 + $0x200] sm:$0xf]  ;;  %v4178_v60 = vld [vmem:[%s6631_s1 + $0x204] sm:$0xf0]  ;;  %v3210_v2 = vor.u32 %v4228_v57, %v3209_v56  ;;  %v3321_v6 = vld [vmem:[%s6631_s1 + $0x470] sm:$0xf] }
  0x2e   :  { %2105 = vmatpush.bf16.msrb.mxu2 %v3178_v3  ;;  %v3073_v63 = vld [vmem:[%s6631_s1 + $0x280] sm:$0xf]  ;;  %v4194_v0 = vld [vmem:[%s6631_s1 + $0x284] sm:$0xf0]  ;;  %v3385_v8 = vld [vmem:[%s6631_s1 + $0x4f0] sm:$0xf]  ;;  %v3010_v9 = vor.u32 %v4178_v60, %v3009_v59 }
  0x2f   :  { %2118 = vmatpush.bf16.msrb.mxu3 %v3242_v7  ;;  %v3137_v1 = vld [vmem:[%s6631_s1 + $0x300] sm:$0xf]  ;;  %v4210_v3 = vld [vmem:[%s6631_s1 + $0x304] sm:$0xf0]  ;;  %v4256_v7 = vld [vmem:[%s6631_s1 + $0x474] sm:$0xf0]  ;;  %v3074_v13 = vor.u32 %v4194_v0, %v3073_v63 }
  0x30   :  { %2080 = vmatpush.bf16.msrb.mxu0 %v3042_v14  ;;  %v3201_v4 = vld [vmem:[%s6631_s1 + $0x380] sm:$0xf]  ;;  %v4226_v5 = vld [vmem:[%s6631_s1 + $0x384] sm:$0xf0]  ;;  %v4272_v10 = vld [vmem:[%s6631_s1 + $0x4f4] sm:$0xf0]  ;;  %v3138_v14 = vor.u32 %v4210_v3, %v3137_v1 }
  0x31   :  { %2093 = vmatpush.bf16.msrb.mxu1 %v3106_v18  ;;  %v3449_v11 = vld [vmem:[%s6631_s1 + $0x570] sm:$0xf]  ;;  %v4288_v12 = vld [vmem:[%s6631_s1 + $0x574] sm:$0xf0]  ;;  %v3202_v17 = vor.u32 %v4226_v5, %v3201_v4  ;;  %v3322_v18 = vor.u32 %v4256_v7, %v3321_v6  ;;  %v3313_v24 = vld [vmem:[%s6631_s1 + $0x460] sm:$0xf] }
  0x32   :  { %2106 = vmatpush.bf16.msrb.mxu2 %v3170_v19  ;;  %v3513_v15 = vld [vmem:[%s6631_s1 + $0x5f0] sm:$0xf]  ;;  %v4304_v16 = vld [vmem:[%s6631_s1 + $0x5f4] sm:$0xf0]  ;;  %v3386_v19 = vor.u32 %v4272_v10, %v3385_v8  ;;  %v4254_v25 = vld [vmem:[%s6631_s1 + $0x464] sm:$0xf0] }
  0x33   :  { %2119 = vmatpush.bf16.msrb.mxu3 %v3234_v23  ;;  %v3450_v23 = vor.u32 %v4288_v12, %v3449_v11  ;;  %v3377_v27 = vld [vmem:[%s6631_s1 + $0x4e0] sm:$0xf]  ;;  %v3514_v28 = vor.u32 %v4304_v16, %v3513_v15  ;;  %v4302_v33 = vld [vmem:[%s6631_s1 + $0x5e4] sm:$0xf0]  ;;  %v3314_v34 = vor.u32 %v4254_v25, %v3313_v24  ;;  %v3305_v37 = vld [vmem:[%s6631_s1 + $0x450] sm:$0xf] }
  0x34   :  { %2081 = vmatpush.bf16.msrb.mxu0 %v3034_v29  ;;  %v4270_v29 = vld [vmem:[%s6631_s1 + $0x4e4] sm:$0xf0]  ;;  %v3441_v30 = vld [vmem:[%s6631_s1 + $0x560] sm:$0xf]  ;;  %v4252_v38 = vld [vmem:[%s6631_s1 + $0x454] sm:$0xf0] }
  0x35   :  { %2094 = vmatpush.bf16.msrb.mxu1 %v3098_v31  ;;  %v4286_v31 = vld [vmem:[%s6631_s1 + $0x564] sm:$0xf0]  ;;  %v3378_v35 = vor.u32 %v4270_v29, %v3377_v27  ;;  %v3369_v39 = vld [vmem:[%s6631_s1 + $0x4d0] sm:$0xf]  ;;  %v4268_v41 = vld [vmem:[%s6631_s1 + $0x4d4] sm:$0xf0]  ;;  %v3306_v46 = vor.u32 %v4252_v38, %v3305_v37 }
  0x36   :  { %2107 = vmatpush.bf16.msrb.mxu2 %v3162_v32  ;;  %v3505_v32 = vld [vmem:[%s6631_s1 + $0x5e0] sm:$0xf]  ;;  %v3433_v42 = vld [vmem:[%s6631_s1 + $0x550] sm:$0xf]  ;;  %v4300_v45 = vld [vmem:[%s6631_s1 + $0x5d4] sm:$0xf0] }
  0x37   :  { %2120 = vmatpush.bf16.msrb.mxu3 %v3226_v36  ;;  %v3442_v36 = vor.u32 %v4286_v31, %v3441_v30  ;;  %v3506_v40 = vor.u32 %v4302_v33, %v3505_v32  ;;  %v3497_v44 = vld [vmem:[%s6631_s1 + $0x5d0] sm:$0xf]  ;;  %v3297_v49 = vld [vmem:[%s6631_s1 + $0x440] sm:$0xf]  ;;  %v4266_v57 = vld [vmem:[%s6631_s1 + $0x4c4] sm:$0xf0] }
  0x38   :  { %2082 = vmatpush.bf16.msrb.mxu0 %v3026_v43  ;;  %v4284_v43 = vld [vmem:[%s6631_s1 + $0x554] sm:$0xf0]  ;;  %v3361_v54 = vld [vmem:[%s6631_s1 + $0x4c0] sm:$0xf]  ;;  %v3498_v56 = vor.u32 %v4300_v45, %v3497_v44  ;;  %v4282_v59 = vld [vmem:[%s6631_s1 + $0x544] sm:$0xf0] }
  0x39   :  { %2095 = vmatpush.bf16.msrb.mxu1 %v3090_v47  ;;  %v3370_v47 = vor.u32 %v4268_v41, %v3369_v39  ;;  %v3489_v60 = vld [vmem:[%s6631_s1 + $0x5c0] sm:$0xf]  ;;  %v3362_v63 = vor.u32 %v4266_v57, %v3361_v54  ;;  %v3289_v1 = vld [vmem:[%s6631_s1 + $0x430] sm:$0xf]  ;;  %v4264_v5 = vld [vmem:[%s6631_s1 + $0x4b4] sm:$0xf0] }
  0x3a   :  { %2108 = vmatpush.bf16.msrb.mxu2 %v3154_v48  ;;  %v3434_v48 = vor.u32 %v4284_v43, %v3433_v42  ;;  %v3353_v3 = vld [vmem:[%s6631_s1 + $0x4b0] sm:$0xf]  ;;  %v4280_v7 = vld [vmem:[%s6631_s1 + $0x534] sm:$0xf0]  ;;  %v3345_v15 = vld [vmem:[%s6631_s1 + $0x4a0] sm:$0xf] }
  0x3b   :  { %2121 = vmatpush.bf16.msrb.mxu3 %v3218_v52  ;;  %v4250_v52 = vld [vmem:[%s6631_s1 + $0x444] sm:$0xf0]  ;;  %v3417_v6 = vld [vmem:[%s6631_s1 + $0x530] sm:$0xf]  ;;  %v3354_v11 = vor.u32 %v4264_v5, %v3353_v3  ;;  %v4244_v30 = vld [vmem:[%s6631_s1 + $0x414] sm:$0xf0] }
  0x3c   :  { %2083 = vmatpush.bf16.msrb.mxu0 %v3018_v58  ;;  %v3425_v58 = vld [vmem:[%s6631_s1 + $0x540] sm:$0xf]  ;;  %v3481_v8 = vld [vmem:[%s6631_s1 + $0x5b0] sm:$0xf]  ;;  %v3418_v12 = vor.u32 %v4280_v7, %v3417_v6  ;;  %v4294_v24 = vld [vmem:[%s6631_s1 + $0x5a4] sm:$0xf0] }
  0x3d   :  { %2096 = vmatpush.bf16.msrb.mxu1 %v3082_v61  ;;  %v4298_v61 = vld [vmem:[%s6631_s1 + $0x5c4] sm:$0xf0]  ;;  %v3426_v0 = vor.u32 %v4282_v59, %v3425_v58  ;;  %v3273_v29 = vld [vmem:[%s6631_s1 + $0x410] sm:$0xf]  ;;  %v4260_v33 = vld [vmem:[%s6631_s1 + $0x494] sm:$0xf0] }
  0x3e   :  { %2109 = vmatpush.bf16.msrb.mxu2 %v3146_v62  ;;  %v3298_v62 = vor.u32 %v4250_v52, %v3297_v49  ;;  %v3490_v4 = vor.u32 %v4298_v61, %v3489_v60  ;;  %v3337_v31 = vld [vmem:[%s6631_s1 + $0x490] sm:$0xf]  ;;  %v4292_v37 = vld [vmem:[%s6631_s1 + $0x594] sm:$0xf0]  ;;  %v3274_v38 = vor.u32 %v4244_v30, %v3273_v29  ;;  %v3265_v39 = vld [vmem:[%s6631_s1 + $0x400] sm:$0xf] }
  0x3f   :  { %2122 = vmatpush.bf16.msrb.mxu3 %v3210_v2  ;;  %v4248_v2 = vld [vmem:[%s6631_s1 + $0x434] sm:$0xf0]  ;;  %v3338_v41 = vor.u32 %v4260_v33, %v3337_v31  ;;  %v3329_v43 = vld [vmem:[%s6631_s1 + $0x480] sm:$0xf]  ;;  %v4258_v44 = vld [vmem:[%s6631_s1 + $0x484] sm:$0xf0] }
  0x40   :  { %2084 = vmatpush.bf16.msrb.mxu0 %v3010_v9  ;;  %v4296_v9 = vld [vmem:[%s6631_s1 + $0x5b4] sm:$0xf0]  ;;  %v3290_v10 = vor.u32 %v4248_v2, %v3289_v1  ;;  %v3393_v45 = vld [vmem:[%s6631_s1 + $0x500] sm:$0xf]  ;;  %v4290_v49 = vld [vmem:[%s6631_s1 + $0x584] sm:$0xf0]  ;;  %v3330_v61 = vor.u32 %v4258_v44, %v3329_v43 }
  0x41   :  { %2097 = vmatpush.bf16.msrb.mxu1 %v3074_v13  ;;  %v3281_v13 = vld [vmem:[%s6631_s1 + $0x420] sm:$0xf]  ;;  %v3482_v16 = vor.u32 %v4296_v9, %v3481_v8  ;;  %v3577_v52 = vld [vmem:[%s6631_s1 + $0x670] sm:$0xf]  ;;  %v4320_v54 = vld [vmem:[%s6631_s1 + $0x674] sm:$0xf0] }
  0x42   :  { %2110 = vmatpush.bf16.msrb.mxu2 %v3138_v14  ;;  %v4246_v14 = vld [vmem:[%s6631_s1 + $0x424] sm:$0xf0]  ;;  %v4336_v58 = vld [vmem:[%s6631_s1 + $0x6f4] sm:$0xf0]  ;;  %v3705_v59 = vld [vmem:[%s6631_s1 + $0x770] sm:$0xf]  ;;  %v3578_v2 = vor.u32 %v4320_v54, %v3577_v52 }
  0x43   :  { %2123 = vmatpush.bf16.msrb.mxu3 %v3202_v17  ;;  %2085 = vmatmul.bf16.vlgmr.msrb.gmra.mxu0 %v4889_v51  ;;  %v4262_v17 = vld [vmem:[%s6631_s1 + $0x4a4] sm:$0xf0]  ;;  %v3282_v25 = vor.u32 %v4246_v14, %v3281_v13  ;;  %v4352_v60 = vld [vmem:[%s6631_s1 + $0x774] sm:$0xf0]  ;;  %v3569_v5 = vld [vmem:[%s6631_s1 + $0x660] sm:$0xf] }
  0x44   :  { %2129 = vmatpush.bf16.msra.mxu0 %v3322_v18  ;;  %2098 = vmatmul.bf16.vlgmr.msrb.gmra.mxu1 %v4896_v55  ;;  %v3409_v18 = vld [vmem:[%s6631_s1 + $0x520] sm:$0xf]  ;;  %v3346_v27 = vor.u32 %v4262_v17, %v3345_v15  ;;  %v4318_v6 = vld [vmem:[%s6631_s1 + $0x664] sm:$0xf0]  ;;  %v5174_v15 = vld [vmem:[#allocation1 + $0x12] sm:$0xff] }
  0x45   :  { %2142 = vmatpush.bf16.msra.mxu1 %v3386_v19  ;;  %2111 = vmatmul.bf16.vlgmr.msrb.gmra.mxu2 %v4887_v50  ;;  %v4278_v19 = vld [vmem:[%s6631_s1 + $0x524] sm:$0xf0]  ;;  %v3633_v7 = vld [vmem:[%s6631_s1 + $0x6e0] sm:$0xf]  ;;  %v4332_v29 = vld [vmem:[%s6631_s1 + $0x6d4] sm:$0xf0] }
  0x46   :  { %2155 = vmatpush.bf16.msra.mxu2 %v3450_v23  ;;  %2124 = vmatmul.bf16.vlgmr.msrb.gmra.mxu3 %v4891_v53  ;;  %v3473_v23 = vld [vmem:[%s6631_s1 + $0x5a0] sm:$0xf]  ;;  %v4334_v9 = vld [vmem:[%s6631_s1 + $0x6e4] sm:$0xf0]  ;;  %v3689_v30 = vld [vmem:[%s6631_s1 + $0x750] sm:$0xf] }
  0x47   :  { %2168 = vmatpush.bf16.msra.mxu3 %v3514_v28  ;;  %v3410_v28 = vor.u32 %v4278_v19, %v3409_v18  ;;  %v3474_v32 = vor.u32 %v4294_v24, %v3473_v23  ;;  %v3761_v13 = vld [vmem:[%s6631_s1 + $0x7e0] sm:$0xf]  ;;  %v4366_v14 = vld [vmem:[%s6631_s1 + $0x7e4] sm:$0xf0]  ;;  %v3570_v18 = vor.u32 %v4318_v6, %v3569_v5  ;;  %v3634_v19 = vor.u32 %v4334_v9, %v3633_v7  ;;  %v3561_v24 = vld [vmem:[%s6631_s1 + $0x650] sm:$0xf] }
  0x48   :  { %2130 = vmatpush.bf16.msra.mxu0 %v3314_v34  ;;  %v3401_v34 = vld [vmem:[%s6631_s1 + $0x510] sm:$0xf]  ;;  %v5178_v17 = vld [vmem:[#allocation1 + $0x1b] sm:$0xff]  ;;  %v4346_v43 = vld [vmem:[%s6631_s1 + $0x744] sm:$0xf0] }
  0x49   :  { %2143 = vmatpush.bf16.msra.mxu1 %v3378_v35  ;;  %v4276_v35 = vld [vmem:[%s6631_s1 + $0x514] sm:$0xf0]  ;;  %v3745_v44 = vld [vmem:[%s6631_s1 + $0x7c0] sm:$0xf] }
  0x4a   :  { %2156 = vmatpush.bf16.msra.mxu2 %v3442_v36  ;;  %v3465_v36 = vld [vmem:[%s6631_s1 + $0x590] sm:$0xf]  ;;  %v3402_v42 = vor.u32 %v4276_v35, %v3401_v34  ;;  %v4348_v31 = vld [vmem:[%s6631_s1 + $0x754] sm:$0xf0]  ;;  %v3553_v35 = vld [vmem:[%s6631_s1 + $0x640] sm:$0xf] }
  0x4b   :  { %2169 = vmatpush.bf16.msra.mxu3 %v3506_v40  ;;  %v4242_v40 = vld [vmem:[%s6631_s1 + $0x404] sm:$0xf0]  ;;  %v4364_v33 = vld [vmem:[%s6631_s1 + $0x7d4] sm:$0xf0] }
  0x4c   :  { %2131 = vmatpush.bf16.msra.mxu0 %v3306_v46  ;;  %v3466_v46 = vor.u32 %v4292_v37, %v3465_v36  ;;  %v3266_v57 = vor.u32 %v4242_v40, %v3265_v39  ;;  %v3690_v37 = vor.u32 %v4348_v31, %v3689_v30  ;;  %v3617_v39 = vld [vmem:[%s6631_s1 + $0x6c0] sm:$0xf]  ;;  %v4330_v40 = vld [vmem:[%s6631_s1 + $0x6c4] sm:$0xf0] }
  0x4d   :  { %2144 = vmatpush.bf16.msra.mxu1 %v3370_v47  ;;  %v4274_v47 = vld [vmem:[%s6631_s1 + $0x504] sm:$0xf0] }
  0x4e   :  { %2157 = vmatpush.bf16.msra.mxu2 %v3434_v48  ;;  %v3457_v48 = vld [vmem:[%s6631_s1 + $0x580] sm:$0xf] }
  0x4f   :  { %2170 = vmatpush.bf16.msra.mxu3 %v3498_v56  ;;  %v3641_v56 = vld [vmem:[%s6631_s1 + $0x6f0] sm:$0xf]  ;;  %v3458_v1 = vor.u32 %v4290_v49, %v3457_v48 }
  0x50   :  { %2132 = vmatpush.bf16.msra.mxu0 %v3298_v62  ;;  %v3394_v62 = vor.u32 %v4274_v47, %v3393_v45  ;;  %v3642_v3 = vor.u32 %v4336_v58, %v3641_v56  ;;  %v4362_v45 = vld [vmem:[%s6631_s1 + $0x7c4] sm:$0xf0] }
  0x51   :  { %2145 = vmatpush.bf16.msra.mxu1 %v3362_v63  ;;  %v3769_v63 = vld [vmem:[%s6631_s1 + $0x7f0] sm:$0xf] }
  0x52   :  { %2158 = vmatpush.bf16.msra.mxu2 %v3426_v0  ;;  %v4368_v0 = vld [vmem:[%s6631_s1 + $0x7f4] sm:$0xf0] }
  0x53   :  { %2171 = vmatpush.bf16.msra.mxu3 %v3490_v4  ;;  %v3706_v4 = vor.u32 %v4352_v60, %v3705_v59  ;;  %v3770_v8 = vor.u32 %v4368_v0, %v3769_v63 }
  0x54   :  { %2133 = vmatpush.bf16.msra.mxu0 %v3290_v10  ;;  %v3697_v10 = vld [vmem:[%s6631_s1 + $0x760] sm:$0xf] }
  0x55   :  { %2146 = vmatpush.bf16.msra.mxu1 %v3354_v11  ;;  %v4350_v11 = vld [vmem:[%s6631_s1 + $0x764] sm:$0xf0] }
  0x56   :  { %2159 = vmatpush.bf16.msra.mxu2 %v3418_v12  ;;  %v5166_v12 = vld [vmem:[#allocation1] sm:$0xff]  ;;  %v3698_v23 = vor.u32 %v4350_v11, %v3697_v10 }
  0x57   :  { %2172 = vmatpush.bf16.msra.mxu3 %v3482_v16  ;;  %v5176_v16 = vld [vmem:[#allocation1 + $0x9] sm:$0xff] }
  0x58   :  { %2134 = vmatpush.bf16.msra.mxu0 %v3282_v25  ;;  %v4316_v25 = vld [vmem:[%s6631_s1 + $0x654] sm:$0xf0] }
  0x59   :  { %2147 = vmatpush.bf16.msra.mxu1 %v3346_v27  ;;  %v3625_v27 = vld [vmem:[%s6631_s1 + $0x6d0] sm:$0xf]  ;;  %v3562_v34 = vor.u32 %v4316_v25, %v3561_v24 }
  0x5a   :  { %2160 = vmatpush.bf16.msra.mxu2 %v3410_v28  ;;  %v3762_v28 = vor.u32 %v4366_v14, %v3761_v13  ;;  %v3626_v36 = vor.u32 %v4332_v29, %v3625_v27 }
  0x5b   :  { %2173 = vmatpush.bf16.msra.mxu3 %v3474_v32  ;;  %v3753_v32 = vld [vmem:[%s6631_s1 + $0x7d0] sm:$0xf] }
  0x5c   :  { %2135 = vmatpush.bf16.msra.mxu0 %v3274_v38  ;;  %v4314_v38 = vld [vmem:[%s6631_s1 + $0x644] sm:$0xf0] }
  0x5d   :  { %2148 = vmatpush.bf16.msra.mxu1 %v3338_v41  ;;  %v3754_v41 = vor.u32 %v4364_v33, %v3753_v32 }
  0x5e   :  { %2161 = vmatpush.bf16.msra.mxu2 %v3402_v42  ;;  %v3681_v42 = vld [vmem:[%s6631_s1 + $0x740] sm:$0xf] }
  0x5f   :  { %2174 = vmatpush.bf16.msra.mxu3 %v3466_v46 }
  0x60   :  { %2136 = vmatpush.bf16.msra.mxu0 %v3266_v57 }
  0x61   :  { %2149 = vmatpush.bf16.msra.mxu1 %v3330_v61 }
  0x62   :  { %2162 = vmatpush.bf16.msra.mxu2 %v3394_v62 }
  0x63   :  { %2175 = vmatpush.bf16.msra.mxu3 %v3458_v1  ;;  %2137 = vmatmul.bf16.vlgmr.msra.gmra.mxu0 %v5166_v12 }
  0x64   :  { %2181 = vmatpush.bf16.msrb.mxu0 %v3578_v2  ;;  %2150 = vmatmul.bf16.vlgmr.msra.gmra.mxu1 %v5176_v16 }
  0x65   :  { %2194 = vmatpush.bf16.msrb.mxu1 %v3642_v3  ;;  %2163 = vmatmul.bf16.vlgmr.msra.gmra.mxu2 %v5174_v15 }
  0x66   :  { %2207 = vmatpush.bf16.msrb.mxu2 %v3706_v4  ;;  %2176 = vmatmul.bf16.vlgmr.msra.gmra.mxu3 %v5178_v17 }
  0x67   :  { %2220 = vmatpush.bf16.msrb.mxu3 %v3770_v8 }
  0x68   :  { %2182 = vmatpush.bf16.msrb.mxu0 %v3570_v18 }
  0x69   :  { %2195 = vmatpush.bf16.msrb.mxu1 %v3634_v19 }
  0x6a   :  { %2208 = vmatpush.bf16.msrb.mxu2 %v3698_v23 }
  0x6b   :  { %2221 = vmatpush.bf16.msrb.mxu3 %v3762_v28 }
  0x6c   :  { %10 = vsyncpa [#allocation3], 0  ;;  %2183 = vmatpush.bf16.msrb.mxu0 %v3562_v34  ;;  %v3554_v46 = vor.u32 %v4314_v38, %v3553_v35  ;;  %v3618_v47 = vor.u32 %v4330_v40, %v3617_v39  ;;  %v3682_v48 = vor.u32 %v4346_v43, %v3681_v42  ;;  %v3545_v49 = vld [vmem:[%s6631_s1 + $0x630] sm:$0xf]  ;;  %v4312_v52 = vld [vmem:[%s6631_s1 + $0x634] sm:$0xf0]  ;;  %v3746_v56 = vor.u32 %v4362_v45, %v3745_v44 }
  0x6d   :  { %2196 = vmatpush.bf16.msrb.mxu1 %v3626_v36  ;;  %v3609_v54 = vld [vmem:[%s6631_s1 + $0x6b0] sm:$0xf]  ;;  %v4328_v57 = vld [vmem:[%s6631_s1 + $0x6b4] sm:$0xf0]  ;;  %v3546_v62 = vor.u32 %v4312_v52, %v3545_v49  ;;  %v3537_v1 = vld [vmem:[%s6631_s1 + $0x620] sm:$0xf] }
  0x6e   :  { %2209 = vmatpush.bf16.msrb.mxu2 %v3690_v37  ;;  %v3673_v58 = vld [vmem:[%s6631_s1 + $0x730] sm:$0xf]  ;;  %v4344_v59 = vld [vmem:[%s6631_s1 + $0x734] sm:$0xf0]  ;;  %v3610_v63 = vor.u32 %v4328_v57, %v3609_v54  ;;  %v4310_v2 = vld [vmem:[%s6631_s1 + $0x624] sm:$0xf0] }
  0x6f   :  { %2222 = vmatpush.bf16.msrb.mxu3 %v3754_v41  ;;  %v3737_v60 = vld [vmem:[%s6631_s1 + $0x7b0] sm:$0xf]  ;;  %v4360_v61 = vld [vmem:[%s6631_s1 + $0x7b4] sm:$0xf0]  ;;  %v3674_v0 = vor.u32 %v4344_v59, %v3673_v58  ;;  %v3601_v3 = vld [vmem:[%s6631_s1 + $0x6a0] sm:$0xf]  ;;  %v3538_v10 = vor.u32 %v4310_v2, %v3537_v1 }
  0x70   :  { %2184 = vmatpush.bf16.msrb.mxu0 %v3554_v46  ;;  %v3738_v4 = vor.u32 %v4360_v61, %v3737_v60  ;;  %v4326_v5 = vld [vmem:[%s6631_s1 + $0x6a4] sm:$0xf0]  ;;  %v3665_v6 = vld [vmem:[%s6631_s1 + $0x720] sm:$0xf]  ;;  %v3529_v11 = vld [vmem:[%s6631_s1 + $0x610] sm:$0xf] }
  0x71   :  { %2197 = vmatpush.bf16.msrb.mxu1 %v3618_v47  ;;  %v4342_v7 = vld [vmem:[%s6631_s1 + $0x724] sm:$0xf0]  ;;  %v3729_v8 = vld [vmem:[%s6631_s1 + $0x7a0] sm:$0xf]  ;;  %v3602_v13 = vor.u32 %v4326_v5, %v3601_v3  ;;  %v4308_v18 = vld [vmem:[%s6631_s1 + $0x614] sm:$0xf0] }
  0x72   :  { %2210 = vmatpush.bf16.msrb.mxu2 %v3682_v48  ;;  %v4358_v9 = vld [vmem:[%s6631_s1 + $0x7a4] sm:$0xf0]  ;;  %v3666_v14 = vor.u32 %v4342_v7, %v3665_v6  ;;  %v3593_v19 = vld [vmem:[%s6631_s1 + $0x690] sm:$0xf]  ;;  %v4324_v23 = vld [vmem:[%s6631_s1 + $0x694] sm:$0xf0]  ;;  %v3530_v32 = vor.u32 %v4308_v18, %v3529_v11 }
  0x73   :  { %2223 = vmatpush.bf16.msrb.mxu3 %v3746_v56  ;;  %v3730_v24 = vor.u32 %v4358_v9, %v3729_v8  ;;  %v3657_v25 = vld [vmem:[%s6631_s1 + $0x710] sm:$0xf]  ;;  %v4340_v27 = vld [vmem:[%s6631_s1 + $0x714] sm:$0xf0]  ;;  %v3521_v30 = vld [vmem:[%s6631_s1 + $0x600] sm:$0xf]  ;;  %v3594_v37 = vor.u32 %v4324_v23, %v3593_v19 }
  0x74   :  { %2185 = vmatpush.bf16.msrb.mxu0 %v3546_v62  ;;  %v3721_v28 = vld [vmem:[%s6631_s1 + $0x790] sm:$0xf]  ;;  %v4356_v29 = vld [vmem:[%s6631_s1 + $0x794] sm:$0xf0]  ;;  %v4306_v31 = vld [vmem:[%s6631_s1 + $0x604] sm:$0xf0]  ;;  %v3658_v38 = vor.u32 %v4340_v27, %v3657_v25 }
  0x75   :  { %2198 = vmatpush.bf16.msrb.mxu1 %v3610_v63  ;;  %v3585_v33 = vld [vmem:[%s6631_s1 + $0x680] sm:$0xf]  ;;  %v4322_v34 = vld [vmem:[%s6631_s1 + $0x684] sm:$0xf0]  ;;  %v3833_v41 = vld [vmem:[%s6631_s1 + $0x870] sm:$0xf]  ;;  %v3722_v43 = vor.u32 %v4356_v29, %v3721_v28  ;;  %v3522_v54 = vor.u32 %v4306_v31, %v3521_v30 }
  0x76   :  { %2211 = vmatpush.bf16.msrb.mxu2 %v3674_v0  ;;  %v3649_v35 = vld [vmem:[%s6631_s1 + $0x700] sm:$0xf]  ;;  %v4338_v36 = vld [vmem:[%s6631_s1 + $0x704] sm:$0xf0]  ;;  %v4384_v42 = vld [vmem:[%s6631_s1 + $0x874] sm:$0xf0]  ;;  %v3586_v58 = vor.u32 %v4322_v34, %v3585_v33 }
  0x77   :  { %2224 = vmatpush.bf16.msrb.mxu3 %v3738_v4  ;;  %v3713_v39 = vld [vmem:[%s6631_s1 + $0x780] sm:$0xf]  ;;  %v4354_v40 = vld [vmem:[%s6631_s1 + $0x784] sm:$0xf0]  ;;  %v3897_v44 = vld [vmem:[%s6631_s1 + $0x8f0] sm:$0xf]  ;;  %v3650_v59 = vor.u32 %v4338_v36, %v3649_v35  ;;  %v3834_v63 = vor.u32 %v4384_v42, %v3833_v41 }
  0x78   :  { %2186 = vmatpush.bf16.msrb.mxu0 %v3538_v10  ;;  %v4400_v45 = vld [vmem:[%s6631_s1 + $0x8f4] sm:$0xf0]  ;;  %v5340_v46 = vld [vmem:[#allocation1 + $0x24] sm:$0xff]  ;;  %v5344_v48 = vld [vmem:[#allocation1 + $0x2d] sm:$0xff]  ;;  %v3714_v62 = vor.u32 %v4354_v40, %v3713_v39  ;;  %vm2022_vm0 = vcmask 261120   ;;  %s4487_s23 = smov [#allocation2]  }
  0x79   :  { %2199 = vmatpush.bf16.msrb.mxu1 %v3602_v13  ;;  %v5342_v47 = vld [vmem:[#allocation1 + $0x36] sm:$0xff]  ;;  %v5346_v49 = vld [vmem:[#allocation1 + $0x3f] sm:$0xff]  ;;  %v24_v52 = vld [vmem:[%s6630_s0 + $0x10] sm:$0x1f]  ;;  %v3898_v0 = vor.u32 %v4400_v45, %v3897_v44  ;;  %s2740_s24 = sshll.u32 %s4487_s23, 4  ;;  %s2742_s26 = sshll.u32 %s6635_s5, 4  ;;  %s2741_s24 = int_to_ptr.vmem [resolvable:$true] %s2740_s24  ;;  %s2743_s26 = int_to_ptr.hbm [resolvable:$true] %s2742_s26 }
  0x7a   :  { %2212 = vmatpush.bf16.msrb.mxu2 %v3666_v14  ;;  %v3961_v56 = vld [vmem:[%s6631_s1 + $0x970] sm:$0xf]  ;;  %v4416_v57 = vld [vmem:[%s6631_s1 + $0x974] sm:$0xf0]  ;;  %376 = vst [vmem:[#allocation1] ss:$9 sm:$0xff] %v24_v52 }
  0x7b   :  { %2225 = vmatpush.bf16.msrb.mxu3 %v3730_v24  ;;  %v4025_v60 = vld [vmem:[%s6631_s1 + $0x9f0] sm:$0xf]  ;;  %v4432_v61 = vld [vmem:[%s6631_s1 + $0x9f4] sm:$0xf0]  ;;  %v3962_v1 = vor.u32 %v4416_v57, %v3961_v56  ;;  %v3825_v2 = vld [vmem:[%s6631_s1 + $0x860] sm:$0xf] }
  0x7c   :  { %2187 = vmatpush.bf16.msrb.mxu0 %v3530_v32  ;;  %v4382_v3 = vld [vmem:[%s6631_s1 + $0x864] sm:$0xf0]  ;;  %v3889_v4 = vld [vmem:[%s6631_s1 + $0x8e0] sm:$0xf]  ;;  %v4026_v5 = vor.u32 %v4432_v61, %v4025_v60  ;;  %v3817_v18 = vld [vmem:[%s6631_s1 + $0x850] sm:$0xf] }
  0x7d   :  { %2200 = vmatpush.bf16.msrb.mxu1 %v3594_v37  ;;  %v4398_v6 = vld [vmem:[%s6631_s1 + $0x8e4] sm:$0xf0]  ;;  %v3953_v7 = vld [vmem:[%s6631_s1 + $0x960] sm:$0xf]  ;;  %v3826_v11 = vor.u32 %v4382_v3, %v3825_v2  ;;  %v4380_v19 = vld [vmem:[%s6631_s1 + $0x854] sm:$0xf0] }
  0x7e   :  { %2213 = vmatpush.bf16.msrb.mxu2 %v3658_v38  ;;  %v4414_v8 = vld [vmem:[%s6631_s1 + $0x964] sm:$0xf0]  ;;  %v4017_v9 = vld [vmem:[%s6631_s1 + $0x9e0] sm:$0xf]  ;;  %v3890_v13 = vor.u32 %v4398_v6, %v3889_v4  ;;  %v3881_v23 = vld [vmem:[%s6631_s1 + $0x8d0] sm:$0xf]  ;;  %v3818_v31 = vor.u32 %v4380_v19, %v3817_v18 }
  0x7f   :  { %2226 = vmatpush.bf16.msrb.mxu3 %v3722_v43  ;;  %v4430_v10 = vld [vmem:[%s6631_s1 + $0x9e4] sm:$0xf0]  ;;  %v3954_v14 = vor.u32 %v4414_v8, %v3953_v7  ;;  %v4396_v25 = vld [vmem:[%s6631_s1 + $0x8d4] sm:$0xf0]  ;;  %v3945_v27 = vld [vmem:[%s6631_s1 + $0x950] sm:$0xf] }
  0x80   :  { %2188 = vmatpush.bf16.msrb.mxu0 %v3522_v54  ;;  %v4018_v24 = vor.u32 %v4430_v10, %v4017_v9  ;;  %v4412_v28 = vld [vmem:[%s6631_s1 + $0x954] sm:$0xf0]  ;;  %v4009_v29 = vld [vmem:[%s6631_s1 + $0x9d0] sm:$0xf]  ;;  %v3882_v32 = vor.u32 %v4396_v25, %v3881_v23  ;;  %v3809_v34 = vld [vmem:[%s6631_s1 + $0x840] sm:$0xf] }
  0x81   :  { %2201 = vmatpush.bf16.msrb.mxu1 %v3586_v58  ;;  %v4428_v30 = vld [vmem:[%s6631_s1 + $0x9d4] sm:$0xf0]  ;;  %v3946_v33 = vor.u32 %v4412_v28, %v3945_v27  ;;  %v4378_v35 = vld [vmem:[%s6631_s1 + $0x844] sm:$0xf0]  ;;  %v3873_v36 = vld [vmem:[%s6631_s1 + $0x8c0] sm:$0xf] }
  0x82   :  { %2214 = vmatpush.bf16.msrb.mxu2 %v3650_v59  ;;  %v4010_v37 = vor.u32 %v4428_v30, %v4009_v29  ;;  %v4394_v38 = vld [vmem:[%s6631_s1 + $0x8c4] sm:$0xf0]  ;;  %v3937_v39 = vld [vmem:[%s6631_s1 + $0x940] sm:$0xf]  ;;  %v3810_v43 = vor.u32 %v4378_v35, %v3809_v34  ;;  %v3801_v52 = vld [vmem:[%s6631_s1 + $0x830] sm:$0xf] }
  0x83   :  { %2227 = vmatpush.bf16.msrb.mxu3 %v3714_v62  ;;  %2189 = vmatmul.bf16.vlgmr.msrb.gmra.mxu0 %v5340_v46  ;;  %v4410_v40 = vld [vmem:[%s6631_s1 + $0x944] sm:$0xf0]  ;;  %v4001_v41 = vld [vmem:[%s6631_s1 + $0x9c0] sm:$0xf]  ;;  %v3874_v44 = vor.u32 %v4394_v38, %v3873_v36  ;;  %v4376_v54 = vld [vmem:[%s6631_s1 + $0x834] sm:$0xf0] }
  0x84   :  { %2233 = vmatpush.bf16.msra.mxu0 %v3834_v63  ;;  %2202 = vmatmul.bf16.vlgmr.msrb.gmra.mxu1 %v5344_v48  ;;  %v4426_v42 = vld [vmem:[%s6631_s1 + $0x9c4] sm:$0xf0]  ;;  %v3938_v45 = vor.u32 %v4410_v40, %v3937_v39  ;;  %v3865_v56 = vld [vmem:[%s6631_s1 + $0x8b0] sm:$0xf]  ;;  %v4392_v58 = vld [vmem:[%s6631_s1 + $0x8b4] sm:$0xf0]  ;;  %v3802_v63 = vor.u32 %v4376_v54, %v3801_v52 }
  0x85   :  { %2246 = vmatpush.bf16.msra.mxu1 %v3898_v0  ;;  %2215 = vmatmul.bf16.vlgmr.msrb.gmra.mxu2 %v5342_v47  ;;  %v4002_v57 = vor.u32 %v4426_v42, %v4001_v41  ;;  %v3929_v59 = vld [vmem:[%s6631_s1 + $0x930] sm:$0xf]  ;;  %v4408_v60 = vld [vmem:[%s6631_s1 + $0x934] sm:$0xf0]  ;;  %v3866_v0 = vor.u32 %v4392_v58, %v3865_v56  ;;  %v3793_v2 = vld [vmem:[%s6631_s1 + $0x820] sm:$0xf] }
  0x86   :  { %2259 = vmatpush.bf16.msra.mxu2 %v3962_v1  ;;  %2228 = vmatmul.bf16.vlgmr.msrb.gmra.mxu3 %v5346_v49  ;;  %v3993_v61 = vld [vmem:[%s6631_s1 + $0x9b0] sm:$0xf]  ;;  %v4424_v62 = vld [vmem:[%s6631_s1 + $0x9b4] sm:$0xf0]  ;;  %v3930_v1 = vor.u32 %v4408_v60, %v3929_v59  ;;  %v4374_v3 = vld [vmem:[%s6631_s1 + $0x824] sm:$0xf0] }
  0x87   :  { %2272 = vmatpush.bf16.msra.mxu3 %v4026_v5  ;;  %v3857_v4 = vld [vmem:[%s6631_s1 + $0x8a0] sm:$0xf]  ;;  %v3994_v5 = vor.u32 %v4424_v62, %v3993_v61  ;;  %v4390_v6 = vld [vmem:[%s6631_s1 + $0x8a4] sm:$0xf0]  ;;  %v3785_v18 = vld [vmem:[%s6631_s1 + $0x810] sm:$0xf] }
  0x88   :  { %2234 = vmatpush.bf16.msra.mxu0 %v3826_v11  ;;  %v3921_v7 = vld [vmem:[%s6631_s1 + $0x920] sm:$0xf]  ;;  %v4406_v8 = vld [vmem:[%s6631_s1 + $0x924] sm:$0xf0]  ;;  %v3794_v11 = vor.u32 %v4374_v3, %v3793_v2  ;;  %v4372_v19 = vld [vmem:[%s6631_s1 + $0x814] sm:$0xf0] }
  0x89   :  { %2247 = vmatpush.bf16.msra.mxu1 %v3890_v13  ;;  %v3985_v9 = vld [vmem:[%s6631_s1 + $0x9a0] sm:$0xf]  ;;  %v4422_v10 = vld [vmem:[%s6631_s1 + $0x9a4] sm:$0xf0]  ;;  %v3858_v13 = vor.u32 %v4390_v6, %v3857_v4  ;;  %v3849_v23 = vld [vmem:[%s6631_s1 + $0x890] sm:$0xf] }
  0x8a   :  { %2260 = vmatpush.bf16.msra.mxu2 %v3954_v14  ;;  %v3922_v14 = vor.u32 %v4406_v8, %v3921_v7  ;;  %v4388_v25 = vld [vmem:[%s6631_s1 + $0x894] sm:$0xf0]  ;;  %v3913_v27 = vld [vmem:[%s6631_s1 + $0x910] sm:$0xf]  ;;  %v3841_v36 = vld [vmem:[%s6631_s1 + $0x880] sm:$0xf] }
  0x8b   :  { %2273 = vmatpush.bf16.msra.mxu3 %v4018_v24  ;;  %v3986_v24 = vor.u32 %v4422_v10, %v3985_v9  ;;  %v4404_v28 = vld [vmem:[%s6631_s1 + $0x914] sm:$0xf0]  ;;  %v3977_v29 = vld [vmem:[%s6631_s1 + $0x990] sm:$0xf]  ;;  %v3850_v34 = vor.u32 %v4388_v25, %v3849_v23  ;;  %v3905_v38 = vld [vmem:[%s6631_s1 + $0x900] sm:$0xf] }
  0x8c   :  { %2235 = vmatpush.bf16.msra.mxu0 %v3818_v31  ;;  %v4420_v30 = vld [vmem:[%s6631_s1 + $0x994] sm:$0xf0]  ;;  %v3786_v31 = vor.u32 %v4372_v19, %v3785_v18  ;;  %v3914_v35 = vor.u32 %v4404_v28, %v3913_v27  ;;  %v4402_v40 = vld [vmem:[%s6631_s1 + $0x904] sm:$0xf0]  ;;  %v3969_v41 = vld [vmem:[%s6631_s1 + $0x980] sm:$0xf] }
  0x8d   :  { %2248 = vmatpush.bf16.msra.mxu1 %v3882_v32  ;;  %v3777_v32 = vld [vmem:[%s6631_s1 + $0x800] sm:$0xf]  ;;  %v3978_v39 = vor.u32 %v4420_v30, %v3977_v29  ;;  %v4418_v42 = vld [vmem:[%s6631_s1 + $0x984] sm:$0xf0]  ;;  %v2875_v54 = vld [vmem:[%s6631_s1 + $0xf8] sm:$0xf0]  ;;  %v3906_v59 = vor.u32 %v4402_v40, %v3905_v38 }
  0x8e   :  { %2261 = vmatpush.bf16.msra.mxu2 %v3946_v33  ;;  %v4370_v33 = vld [vmem:[%s6631_s1 + $0x804] sm:$0xf0]  ;;  %v4159_v56 = vld [vmem:[%s6631_s1 + $0x174] sm:$0xf]  ;;  %v4041_v60 = vld [vmem:[%s6631_s1 + $0xa10] sm:$0xf]  ;;  %v3970_v62 = vor.u32 %v4418_v42, %v3969_v41 }
  0x8f   :  { %2274 = vmatpush.bf16.msra.mxu3 %v4010_v37  ;;  %v4386_v37 = vld [vmem:[%s6631_s1 + $0x884] sm:$0xf0]  ;;  %v3778_v52 = vor.u32 %v4370_v33, %v3777_v32  ;;  %v4436_v61 = vld [vmem:[%s6631_s1 + $0xa14] sm:$0xf0]  ;;  %v2803_v4 = vld [vmem:[%s6631_s1 + $0x68] sm:$0xf0] }
  0x90   :  { %2236 = vmatpush.bf16.msra.mxu0 %v3810_v43  ;;  %v4127_v43 = vld [vmem:[%s6631_s1 + $0x74] sm:$0xf]  ;;  %v3842_v58 = vor.u32 %v4386_v37, %v3841_v36  ;;  %v4042_v6 = vor.u32 %v4436_v61, %v4041_v60  ;;  %v377_v7 = vld [vmem:[#allocation1] sm:$0xff]  ;;  %v2867_v8 = vld [vmem:[%s6631_s1 + $0xe8] sm:$0xf0]  ;;  %vm2733_vm1 = vcmask 41984  }
  0x91   :  { %2249 = vmatpush.bf16.msra.mxu1 %v3874_v44  ;;  %v2811_v44 = vld [vmem:[%s6631_s1 + $0x78] sm:$0xf0]  ;;  %v379_v3 = vld [vmem:[#allocation1 + $0x12] sm:$0xff]  ;;  %v4157_v9 = vld [vmem:[%s6631_s1 + $0x164] sm:$0xf] }
  0x92   :  { %2262 = vmatpush.bf16.msra.mxu2 %v3938_v45  ;;  %v4143_v45 = vld [vmem:[%s6631_s1 + $0xf4] sm:$0xf]  ;;  %v2931_v10 = vld [vmem:[%s6631_s1 + $0x168] sm:$0xf0]  ;;  %v380_v18 = vld [vmem:[#allocation1 + $0x1b] sm:$0xff] }
  0x93   :  { %2275 = vmatpush.bf16.msra.mxu3 %v4002_v57  ;;  %v2939_v57 = vld [vmem:[%s6631_s1 + $0x178] sm:$0xf0]  ;;  %v4175_v23 = vld [vmem:[%s6631_s1 + $0x1f4] sm:$0xf]  ;;  %v2934_v27 = vor.u32 %v4157_v9, %v2931_v10  ;;  %v4173_v37 = vld [vmem:[%s6631_s1 + $0x1e4] sm:$0xf] }
  0x94   :  { %2237 = vmatpush.bf16.msra.mxu0 %v3802_v63  ;;  %v2814_v63 = vor.u32 %v4127_v43, %v2811_v44  ;;  %v2942_v2 = vor.u32 %v4159_v56, %v2939_v57  ;;  %v4123_v28 = vld [vmem:[%s6631_s1 + $0x54] sm:$0xf]  ;;  %v2795_v29 = vld [vmem:[%s6631_s1 + $0x58] sm:$0xf0]  ;;  %v2995_v38 = vld [vmem:[%s6631_s1 + $0x1e8] sm:$0xf0] }
  0x95   :  { %2250 = vmatpush.bf16.msra.mxu1 %v3866_v0  ;;  %v4125_v0 = vld [vmem:[%s6631_s1 + $0x64] sm:$0xf]  ;;  %v4139_v30 = vld [vmem:[%s6631_s1 + $0xd4] sm:$0xf]  ;;  %v2859_v32 = vld [vmem:[%s6631_s1 + $0xd8] sm:$0xf0]  ;;  %v2798_v36 = vor.u32 %v4123_v28, %v2795_v29 }
  0x96   :  { %2263 = vmatpush.bf16.msra.mxu2 %v3930_v1  ;;  %v2878_v1 = vor.u32 %v4143_v45, %v2875_v54  ;;  %v2806_v19 = vor.u32 %v4125_v0, %v2803_v4  ;;  %v4155_v33 = vld [vmem:[%s6631_s1 + $0x154] sm:$0xf]  ;;  %v4121_v41 = vld [vmem:[%s6631_s1 + $0x44] sm:$0xf]  ;;  %v2787_v42 = vld [vmem:[%s6631_s1 + $0x48] sm:$0xf0]  ;;  %v2998_v54 = vor.u32 %v4173_v37, %v2995_v38 }
  0x97   :  { %2276 = vmatpush.bf16.msra.mxu3 %v3994_v5  ;;  %v4141_v5 = vld [vmem:[%s6631_s1 + $0xe4] sm:$0xf]  ;;  %v2851_v44 = vld [vmem:[%s6631_s1 + $0xc8] sm:$0xf0]  ;;  %v2790_v56 = vor.u32 %v4121_v41, %v2787_v42  ;;  %v4171_v57 = vld [vmem:[%s6631_s1 + $0x1d4] sm:$0xf] }
  0x98   :  { %2238 = vmatpush.bf16.msra.mxu0 %v3794_v11  ;;  %v378_v11 = vld [vmem:[#allocation1 + $0x9] sm:$0xff]  ;;  %v2870_v25 = vor.u32 %v4141_v5, %v2867_v8  ;;  %v4137_v43 = vld [vmem:[%s6631_s1 + $0xc4] sm:$0xf]  ;;  %v2843_v0 = vld [vmem:[%s6631_s1 + $0xb8] sm:$0xf0] }
  0x99   :  { %2251 = vmatpush.bf16.msra.mxu1 %v3858_v13  ;;  %v4033_v13 = vld [vmem:[%s6631_s1 + $0xa00] sm:$0xf]  ;;  %v4153_v45 = vld [vmem:[%s6631_s1 + $0x144] sm:$0xf]  ;;  %v2854_v60 = vor.u32 %v4137_v43, %v2851_v44  ;;  %v4167_v28 = vld [vmem:[%s6631_s1 + $0x1b4] sm:$0xf] }
  0x9a   :  { %2264 = vmatpush.bf16.msra.mxu2 %v3922_v14  ;;  %v4434_v14 = vld [vmem:[%s6631_s1 + $0xa04] sm:$0xf0]  ;;  %v4117_v8 = vld [vmem:[%s6631_s1 + $0x24] sm:$0xf]  ;;  %v2971_v29 = vld [vmem:[%s6631_s1 + $0x1b8] sm:$0xf0] }
  0x9b   :  { %2277 = vmatpush.bf16.msra.mxu3 %v3986_v24  ;;  %v3003_v24 = vld [vmem:[%s6631_s1 + $0x1f8] sm:$0xf0]  ;;  %v2974_v42 = vor.u32 %v4167_v28, %v2971_v29  ;;  %v4165_v44 = vld [vmem:[%s6631_s1 + $0x1a4] sm:$0xf]  ;;  %v3059_v28 = vld [vmem:[%s6631_s1 + $0x268] sm:$0xf0] }
  0x9c   :  { %2239 = vmatpush.bf16.msra.mxu0 %v3786_v31  ;;  %v4034_v31 = vor.u32 %v4434_v14, %v4033_v13  ;;  %v4133_v13 = vld [vmem:[%s6631_s1 + $0xa4] sm:$0xf]  ;;  %v2827_v38 = vld [vmem:[%s6631_s1 + $0x98] sm:$0xf0] }
  0x9d   :  { %2252 = vmatpush.bf16.msra.mxu1 %v3850_v34  ;;  %v2923_v34 = vld [vmem:[%s6631_s1 + $0x158] sm:$0xf0]  ;;  %v4205_v29 = vld [vmem:[%s6631_s1 + $0x2e4] sm:$0xf] }
  0x9e   :  { %2265 = vmatpush.bf16.msra.mxu2 %v3914_v35  ;;  %v3006_v35 = vor.u32 %v4175_v23, %v3003_v24  ;;  %v2926_v40 = vor.u32 %v4155_v33, %v2923_v34  ;;  %v2899_v23 = vld [vmem:[%s6631_s1 + $0x128] sm:$0xf0]  ;;  %v381_v24 = vld [vmem:[#allocation1 + $0x24] sm:$0xff]  ;;  %v4115_v33 = vld [vmem:[%s6631_s1 + $0x14] sm:$0xf] }
  0x9f   :  { %2278 = vmatpush.bf16.msra.mxu3 %v3978_v39  ;;  %v2862_v39 = vor.u32 %v4139_v30, %v2859_v32  ;;  %v2763_v34 = vld [vmem:[%s6631_s1 + $0x18] sm:$0xf0] }
  0xa0   :  { %2240 = vmatpush.bf16.msra.mxu0 %v3778_v52  ;;  %v2915_v52 = vld [vmem:[%s6631_s1 + $0x148] sm:$0xf0]  ;;  %v2766_v43 = vor.u32 %v4115_v33, %v2763_v34  ;;  %v4161_v34 = vld [vmem:[%s6631_s1 + $0x184] sm:$0xf] }
  0xa1   :  { %2253 = vmatpush.bf16.msra.mxu1 %v3842_v58  ;;  %v2987_v58 = vld [vmem:[%s6631_s1 + $0x1d8] sm:$0xf0]  ;;  %v2918_v61 = vor.u32 %v4153_v45, %v2915_v52  ;;  %v2963_v45 = vld [vmem:[%s6631_s1 + $0x1a8] sm:$0xf0]  ;;  %v4113_v52 = vld [vmem:[%s6631_s1 + $0x4] sm:$0xf] }
  0xa2   :  { %2266 = vmatpush.bf16.msra.mxu2 %v3906_v59  ;;  %v4119_v59 = vld [vmem:[%s6631_s1 + $0x34] sm:$0xf]  ;;  %v2990_v4 = vor.u32 %v4171_v57, %v2987_v58  ;;  %v2755_v57 = vld [vmem:[%s6631_s1 + $0x8] sm:$0xf0]  ;;  %v4129_v58 = vld [vmem:[%s6631_s1 + $0x84] sm:$0xf] }
  0xa3   :  { %2279 = vmatpush.bf16.msra.mxu3 %v3970_v62  ;;  %2241 = vmatmul.bf16.vlgmr.msra.gmra.mxu0 %v377_v7  ;;  %v2779_v62 = vld [vmem:[%s6631_s1 + $0x38] sm:$0xf0]  ;;  %v2979_v7 = vld [vmem:[%s6631_s1 + $0x1c8] sm:$0xf0]  ;;  %v2034_v30 = vpop.f32.mrf.mxu0 }
  0xa4   :  { %2291 = vmatpush.bf16.msrb.mxu0 %v4042_v6  ;;  %2254 = vmatmul.bf16.vlgmr.msra.gmra.mxu1 %v378_v11  ;;  %v2782_v5 = vor.u32 %v4119_v59, %v2779_v62  ;;  %v4169_v6 = vld [vmem:[%s6631_s1 + $0x1c4] sm:$0xf]  ;;  %v2771_v11 = vld [vmem:[%s6631_s1 + $0x28] sm:$0xf0] }
  0xa5   :  { %2298 = vmatpush.bf16.msrb.mxu1 %v2814_v63  ;;  %2267 = vmatmul.bf16.vlgmr.msra.gmra.mxu2 %v379_v3  ;;  %v4135_v63 = vld [vmem:[%s6631_s1 + $0xb4] sm:$0xf]  ;;  %v349_v3 = vld [vmem:[%s6632_s2] sm:$0x3]  ;;  %v2819_v59 = vld [vmem:[%s6631_s1 + $0x88] sm:$0xf0] }
  0xa6   :  { %2311 = vmatpush.bf16.msrb.mxu2 %v2878_v1  ;;  %2280 = vmatmul.bf16.vlgmr.msra.gmra.mxu3 %v380_v18  ;;  %v4151_v1 = vld [vmem:[%s6631_s1 + $0x134] sm:$0xf]  ;;  %v2846_v9 = vor.u32 %v4135_v63, %v2843_v0  ;;  %v351_v14 = vperm.slane %v349_v3, 0  ;;  %v2835_v18 = vld [vmem:[%s6631_s1 + $0xa8] sm:$0xf0] }
  0xa7   :  { %2324 = vmatpush.bf16.msrb.mxu3 %v2942_v2  ;;  %v2907_v2 = vld [vmem:[%s6631_s1 + $0x138] sm:$0xf0]  ;;  %v2047_v37 = vpop.f32.mrf.mxu1  ;;  %v2883_v62 = vld [vmem:[%s6631_s1 + $0x108] sm:$0xf0]  ;;  %v4191_v63 = vld [vmem:[%s6631_s1 + $0x274] sm:$0xf] }
  0xa8   :  { %2292 = vmatpush.bf16.msrb.mxu0 %v4034_v31  ;;  %v2910_v10 = vor.u32 %v4151_v1, %v2907_v2  ;;  %v2838_v31 = vor.u32 %v4133_v13, %v2835_v18  ;;  %v3067_v2 = vld [vmem:[%s6631_s1 + $0x278] sm:$0xf0]  ;;  %v4207_v3 = vld [vmem:[%s6631_s1 + $0x2f4] sm:$0xf]  ;;  %v3187_v33 = vld [vmem:[%s6631_s1 + $0x368] sm:$0xf0] }
  0xa9   :  { %2299 = vmatpush.bf16.msrb.mxu1 %v2806_v19  ;;  %v4149_v19 = vld [vmem:[%s6631_s1 + $0x124] sm:$0xf]  ;;  %v2955_v18 = vld [vmem:[%s6631_s1 + $0x198] sm:$0xf0] }
  0xaa   :  { %2312 = vmatpush.bf16.msrb.mxu2 %v2870_v25  ;;  %v2982_v25 = vor.u32 %v4169_v6, %v2979_v7  ;;  %v2902_v32 = vor.u32 %v4149_v19, %v2899_v23  ;;  %v2758_v6 = vor.u32 %v4113_v52, %v2755_v57  ;;  %v4223_v7 = vld [vmem:[%s6631_s1 + $0x374] sm:$0xf]  ;;  %v3070_v23 = vor.u32 %v4191_v63, %v3067_v2  ;;  %v3115_v52 = vld [vmem:[%s6631_s1 + $0x2d8] sm:$0xf0]  ;;  %v4201_v63 = vld [vmem:[%s6631_s1 + $0x2c4] sm:$0xf] }
  0xab   :  { %2325 = vmatpush.bf16.msrb.mxu3 %v2934_v27  ;;  %v2774_v27 = vor.u32 %v4117_v8, %v2771_v11  ;;  %v2073_v1 = vpop.f32.mrf.mxu3  ;;  %v3195_v8 = vld [vmem:[%s6631_s1 + $0x378] sm:$0xf0]  ;;  %v2822_v11 = vor.u32 %v4129_v58, %v2819_v59  ;;  %v3171_v2 = vld [vmem:[%s6631_s1 + $0x348] sm:$0xf0] }
  0xac   :  { %2337 = vmatpush.bf16.msra.mxu0 %v3006_v35  ;;  %v4131_v35 = vld [vmem:[%s6631_s1 + $0x94] sm:$0xf]  ;;  %v3179_v57 = vld [vmem:[%s6631_s1 + $0x358] sm:$0xf0] }
  0xad   :  { %2300 = vmatpush.bf16.msrb.mxu1 %v2798_v36  ;;  %v2035_v36 = vadd.f32 %v2034_v30, %v351_v14  ;;  %v4163_v14 = vld [vmem:[%s6631_s1 + $0x194] sm:$0xf]  ;;  %v3123_v30 = vld [vmem:[%s6631_s1 + $0x2e8] sm:$0xf0] }
  0xae   :  { %2313 = vmatpush.bf16.msrb.mxu2 %v2862_v39  ;;  %v4147_v39 = vld [vmem:[%s6631_s1 + $0x114] sm:$0xf] }
  0xaf   :  { %2326 = vmatpush.bf16.msrb.mxu3 %v2926_v40  ;;  %v2891_v40 = vld [vmem:[%s6631_s1 + $0x118] sm:$0xf0]  ;;  %v2048_v41 = vadd.f32 %v2047_v37, %v2035_v36  ;;  %v2049_v19 = vpop.f32.mrf.mxu1 }
  0xb0   :  { %2338 = vmatpush.bf16.msra.mxu0 %v2998_v54  ;;  %v2830_v54 = vor.u32 %v4131_v35, %v2827_v38  ;;  %v2947_v35 = vld [vmem:[%s6631_s1 + $0x188] sm:$0xf0]  ;;  %v3126_v38 = vor.u32 %v4205_v29, %v3123_v30  ;;  %v3099_v19 = vld [vmem:[%s6631_s1 + $0x2b8] sm:$0xf0]  ;;  %v4233_v30 = vld [vmem:[%s6631_s1 + $0x3c4] sm:$0xf] }
  0xb1   :  { %2301 = vmatpush.bf16.msrb.mxu1 %v2790_v56  ;;  %v2894_v56 = vor.u32 %v4147_v39, %v2891_v40  ;;  %v4239_v39 = vld [vmem:[%s6631_s1 + $0x3f4] sm:$0xf]  ;;  %v3259_v40 = vld [vmem:[%s6631_s1 + $0x3f8] sm:$0xf0] }
  0xb2   :  { %2314 = vmatpush.bf16.msrb.mxu2 %v2854_v60  ;;  %v2060_v60 = vpop.f32.mrf.mxu2  ;;  %v3262_v58 = vor.u32 %v4239_v39, %v3259_v40  ;;  %v3155_v39 = vld [vmem:[%s6631_s1 + $0x328] sm:$0xf0] }
  0xb3   :  { %2327 = vmatpush.bf16.msrb.mxu3 %v2918_v61  ;;  %4047 = vmatmul.msk.bf16.vlgmr.msrb.gmra.mxu0 %vm2022_vm0, %v381_v24  ;;  %v4145_v61 = vld [vmem:[%s6631_s1 + $0x104] sm:$0xf]  ;;  %v2061_v0 = vadd.f32 %v2060_v60, %v2048_v41  ;;  %v4187_v41 = vld [vmem:[%s6631_s1 + $0x254] sm:$0xf] }
  0xb4   :  { %2339 = vmatpush.bf16.msra.mxu0 %v2990_v4  ;;  %v3131_v4 = vld [vmem:[%s6631_s1 + $0x2f8] sm:$0xf0]  ;;  %v2886_v13 = vor.u32 %v4145_v61, %v2883_v62  ;;  %v3251_v61 = vld [vmem:[%s6631_s1 + $0x3e8] sm:$0xf0]  ;;  %v4185_v62 = vld [vmem:[%s6631_s1 + $0x244] sm:$0xf] }
  0xb5   :  { %2302 = vmatpush.bf16.msrb.mxu1 %v2782_v5  ;;  %v2966_v5 = vor.u32 %v4165_v44, %v2963_v45  ;;  %v3134_v24 = vor.u32 %v4207_v3, %v3131_v4  ;;  %v3051_v44 = vld [vmem:[%s6631_s1 + $0x258] sm:$0xf0]  ;;  %v4203_v45 = vld [vmem:[%s6631_s1 + $0x2d4] sm:$0xf] }
  0xb6   :  { %2315 = vmatpush.bf16.msrb.mxu2 %v2846_v9  ;;  %v5749_v9 = vadd.f32 %v2073_v1, %v2061_v0  ;;  %v3054_v59 = vor.u32 %v4187_v41, %v3051_v44  ;;  %v3118_v60 = vor.u32 %v4203_v45, %v3115_v52  ;;  %v3107_v0 = vld [vmem:[%s6631_s1 + $0x2c8] sm:$0xf0]  ;;  %v4217_v1 = vld [vmem:[%s6631_s1 + $0x344] sm:$0xf]  ;;  %v4231_v45 = vld [vmem:[%s6631_s1 + $0x3b4] sm:$0xf] }
  0xb7   :  { %2328 = vmatpush.bf16.msrb.mxu3 %v2910_v10  ;;  %v2036_v10 = vpop.f32.mrf.mxu0  ;;  %v3227_v52 = vld [vmem:[%s6631_s1 + $0x3b8] sm:$0xf0] }
  0xb8   :  { %2340 = vmatpush.bf16.msra.mxu0 %v2982_v25  ;;  %v4189_v25 = vld [vmem:[%s6631_s1 + $0x264] sm:$0xf]  ;;  %v4183_v10 = vld [vmem:[%s6631_s1 + $0x234] sm:$0xf] }
  0xb9   :  { %2303 = vmatpush.bf16.msrb.mxu1 %v2774_v27  ;;  %v3198_v27 = vor.u32 %v4223_v7, %v3195_v8  ;;  %v3062_v37 = vor.u32 %v4189_v25, %v3059_v28  ;;  %v3243_v7 = vld [vmem:[%s6631_s1 + $0x3d8] sm:$0xf0] }
  0xba   :  { %2316 = vmatpush.bf16.msrb.mxu2 %v2838_v31  ;;  %v2958_v31 = vor.u32 %v4163_v14, %v2955_v18  ;;  %v2062_v36 = vpop.f32.mrf.mxu2  ;;  %v3035_v14 = vld [vmem:[%s6631_s1 + $0x238] sm:$0xf0]  ;;  %v4199_v18 = vld [vmem:[%s6631_s1 + $0x2b4] sm:$0xf] }
  0xbb   :  { %2329 = vmatpush.bf16.msrb.mxu3 %v2902_v32  ;;  %v4221_v32 = vld [vmem:[%s6631_s1 + $0x364] sm:$0xf]  ;;  %v3038_v28 = vor.u32 %v4183_v10, %v3035_v14  ;;  %v3102_v29 = vor.u32 %v4199_v18, %v3099_v19  ;;  %v3091_v36 = vld [vmem:[%s6631_s1 + $0x2a8] sm:$0xf0]  ;;  %v4271_v14 = vld [vmem:[%s6631_s1 + $0x4f4] sm:$0xf] }
  0xbc   :  { %2341 = vmatpush.bf16.msra.mxu0 %v2974_v42  ;;  %v2075_v42 = vpop.f32.mrf.mxu3 }
  0xbd   :  { %2304 = vmatpush.bf16.msrb.mxu1 %v2766_v43  ;;  %v3190_v43 = vor.u32 %v4221_v32, %v3187_v33 }
  0xbe   :  { %2317 = vmatpush.bf16.msrb.mxu2 %v2830_v54  ;;  %v2950_v54 = vor.u32 %v4161_v34, %v2947_v35  ;;  %v3027_v34 = vld [vmem:[%s6631_s1 + $0x228] sm:$0xf0]  ;;  %v4197_v35 = vld [vmem:[%s6631_s1 + $0x2a4] sm:$0xf] }
  0xbf   :  { %2330 = vmatpush.bf16.msrb.mxu3 %v2894_v56  ;;  %v4219_v56 = vld [vmem:[%s6631_s1 + $0x354] sm:$0xf] }
  0xc0   :  { %2342 = vmatpush.bf16.msra.mxu0 %v2966_v5  ;;  %v3110_v5 = vor.u32 %v4201_v63, %v3107_v0  ;;  %v2086_v8 = vpop.f32.mrf.mxu0  ;;  %v3219_v63 = vld [vmem:[%s6631_s1 + $0x3a8] sm:$0xf0] }
  0xc1   :  { %2305 = vmatpush.bf16.msrb.mxu1 %v2758_v6  ;;  %v4235_v6 = vld [vmem:[%s6631_s1 + $0x3d4] sm:$0xf] }
  0xc2   :  { %2318 = vmatpush.bf16.msrb.mxu2 %v2822_v11  ;;  %v3174_v11 = vor.u32 %v4217_v1, %v3171_v2  ;;  %v3246_v25 = vor.u32 %v4235_v6, %v3243_v7  ;;  %v4177_v2 = vld [vmem:[%s6631_s1 + $0x204] sm:$0xf]  ;;  %v3075_v6 = vld [vmem:[%s6631_s1 + $0x288] sm:$0xf0] }
  0xc3   :  { %2331 = vmatpush.bf16.msrb.mxu3 %v2886_v13  ;;  %v2087_v13 = vadd.f32 %v2086_v8, %v5749_v9  ;;  %v3163_v9 = vld [vmem:[%s6631_s1 + $0x338] sm:$0xf0]  ;;  %v4209_v7 = vld [vmem:[%s6631_s1 + $0x304] sm:$0xf]  ;;  %v3139_v8 = vld [vmem:[%s6631_s1 + $0x308] sm:$0xf0] }
  0xc4   :  { %2306 = vmatmul.bf16.vlgmr.msrb.gmra.mxu1 %v4823_v21  ;;  %2343 = vmatpush.bf16.msra.mxu0 %v2958_v31  ;;  %v4237_v21 = vld [vmem:[%s6631_s1 + $0x3e4] sm:$0xf] }
  0xc5   :  { %2350 = vmatpush.bf16.msra.mxu1 %v3070_v23  ;;  %2319 = vmatmul.bf16.vlgmr.msrb.gmra.mxu2 %v4834_v26  ;;  %v3182_v26 = vor.u32 %v4219_v56, %v3179_v57  ;;  %v3254_v3 = vor.u32 %v4237_v21, %v3251_v61  ;;  %v2099_v23 = vpop.f32.mrf.mxu1  ;;  %v4181_v31 = vld [vmem:[%s6631_s1 + $0x224] sm:$0xf]  ;;  %v4211_v61 = vld [vmem:[%s6631_s1 + $0x314] sm:$0xf] }
  0xc6   :  { %2363 = vmatpush.bf16.msra.mxu2 %v3134_v24  ;;  %2332 = vmatmul.bf16.vlgmr.msrb.gmra.mxu3 %v4821_v20  ;;  %v3043_v20 = vld [vmem:[%s6631_s1 + $0x248] sm:$0xf0]  ;;  %v4215_v24 = vld [vmem:[%s6631_s1 + $0x334] sm:$0xf]  ;;  %v3030_v42 = vor.u32 %v4181_v31, %v3027_v34 }
  0xc7   :  { %2376 = vmatpush.bf16.msra.mxu3 %v3198_v27  ;;  %v3046_v4 = vor.u32 %v4185_v62, %v3043_v20  ;;  %v2100_v27 = vadd.f32 %v2099_v23, %v2087_v13  ;;  %v3166_v32 = vor.u32 %v4215_v24, %v3163_v9  ;;  %v3147_v62 = vld [vmem:[%s6631_s1 + $0x318] sm:$0xf0]  ;;  %v4229_v20 = vld [vmem:[%s6631_s1 + $0x3a4] sm:$0xf]  ;;  %v4287_v24 = vld [vmem:[%s6631_s1 + $0x574] sm:$0xf] }
  0xc8   :  { %2344 = vmatpush.bf16.msra.mxu0 %v2950_v54  ;;  %v2112_v33 = vpop.f32.mrf.mxu2  ;;  %v4179_v54 = vld [vmem:[%s6631_s1 + $0x214] sm:$0xf]  ;;  %v2088_v56 = vpop.f32.mrf.mxu0  ;;  %v3323_v13 = vld [vmem:[%s6631_s1 + $0x478] sm:$0xf0]  ;;  %v3222_v19 = vor.u32 %v4229_v20, %v3219_v63  ;;  %v3315_v34 = vld [vmem:[%s6631_s1 + $0x468] sm:$0xf0] }
  0xc9   :  { %2351 = vmatpush.bf16.msra.mxu1 %v3062_v37  ;;  %v2113_v37 = vadd.f32 %v2112_v33, %v2100_v27  ;;  %v2125_v40 = vpop.f32.mrf.mxu3  ;;  %v3387_v23 = vld [vmem:[%s6631_s1 + $0x4f8] sm:$0xf0]  ;;  %v4253_v33 = vld [vmem:[%s6631_s1 + $0x464] sm:$0xf]  ;;  %v4251_v56 = vld [vmem:[%s6631_s1 + $0x454] sm:$0xf] }
  0xca   :  { %2364 = vmatpush.bf16.msra.mxu2 %v3126_v38  ;;  %v4213_v38 = vld [vmem:[%s6631_s1 + $0x324] sm:$0xf]  ;;  %v3451_v9 = vld [vmem:[%s6631_s1 + $0x578] sm:$0xf0]  ;;  %v3390_v31 = vor.u32 %v4271_v14, %v3387_v23  ;;  %v3507_v20 = vld [vmem:[%s6631_s1 + $0x5e8] sm:$0xf0] }
  0xcb   :  { %2377 = vmatpush.bf16.msra.mxu3 %v3190_v43  ;;  %2345 = vmatmul.bf16.vlgmr.msra.gmra.mxu0 %v4825_v22  ;;  %v3235_v22 = vld [vmem:[%s6631_s1 + $0x3c8] sm:$0xf0]  ;;  %v3094_v43 = vor.u32 %v4197_v35, %v3091_v36  ;;  %v5882_v44 = vadd.f32 %v2125_v40, %v2113_v37  ;;  %v3158_v57 = vor.u32 %v4213_v38, %v3155_v39  ;;  %v4269_v35 = vld [vmem:[%s6631_s1 + $0x4e4] sm:$0xf]  ;;  %v3291_v23 = vld [vmem:[%s6631_s1 + $0x438] sm:$0xf0] }
  0xcc   :  { %2389 = vmatpush.bf16.msrb.mxu0 %v3262_v58  ;;  %v3238_v41 = vor.u32 %v4233_v30, %v3235_v22  ;;  %v3019_v58 = vld [vmem:[%s6631_s1 + $0x218] sm:$0xf0]  ;;  %v3142_v30 = vor.u32 %v4209_v7, %v3139_v8  ;;  %v3379_v37 = vld [vmem:[%s6631_s1 + $0x4e8] sm:$0xf0]  ;;  %v4285_v38 = vld [vmem:[%s6631_s1 + $0x564] sm:$0xf] }
  0xcd   :  { %2352 = vmatpush.bf16.msra.mxu1 %v3054_v59  ;;  %v4195_v59 = vld [vmem:[%s6631_s1 + $0x294] sm:$0xf]  ;;  %v2101_v21 = vpop.f32.mrf.mxu1  ;;  %v3022_v0 = vor.u32 %v4179_v54, %v3019_v58  ;;  %v3443_v39 = vld [vmem:[%s6631_s1 + $0x568] sm:$0xf0]  ;;  %v4225_v40 = vld [vmem:[%s6631_s1 + $0x384] sm:$0xf] }
  0xce   :  { %2365 = vmatpush.bf16.msra.mxu2 %v3118_v60  ;;  %v3083_v60 = vld [vmem:[%s6631_s1 + $0x298] sm:$0xf0]  ;;  %v3446_v54 = vor.u32 %v4285_v38, %v3443_v39  ;;  %v4267_v58 = vld [vmem:[%s6631_s1 + $0x4d4] sm:$0xf] }
  0xcf   :  { %2378 = vmatpush.bf16.msra.mxu3 %v3182_v26  ;;  %v3230_v26 = vor.u32 %v4231_v45, %v3227_v52  ;;  %v3086_v1 = vor.u32 %v4195_v59, %v3083_v60  ;;  %v3515_v45 = vld [vmem:[%s6631_s1 + $0x5f8] sm:$0xf0]  ;;  %v3382_v52 = vor.u32 %v4269_v35, %v3379_v37  ;;  %v4283_v21 = vld [vmem:[%s6631_s1 + $0x554] sm:$0xf]  ;;  %v3347_v35 = vld [vmem:[%s6631_s1 + $0x4a8] sm:$0xf0] }
  0xd0   :  { %2390 = vmatpush.bf16.msrb.mxu0 %v3254_v3  ;;  %v3011_v3 = vld [vmem:[%s6631_s1 + $0x208] sm:$0xf0]  ;;  %v2114_v10 = vpop.f32.mrf.mxu2  ;;  %v3371_v60 = vld [vmem:[%s6631_s1 + $0x4d8] sm:$0xf0]  ;;  %v4299_v8 = vld [vmem:[%s6631_s1 + $0x5d4] sm:$0xf] }
  0xd1   :  { %2353 = vmatpush.bf16.msra.mxu1 %v3046_v4  ;;  %v4193_v4 = vld [vmem:[%s6631_s1 + $0x284] sm:$0xf]  ;;  %v2127_v18 = vpop.f32.mrf.mxu3  ;;  %v3374_v63 = vor.u32 %v4267_v58, %v3371_v60  ;;  %v3499_v10 = vld [vmem:[%s6631_s1 + $0x5d8] sm:$0xf0]  ;;  %v3411_v37 = vld [vmem:[%s6631_s1 + $0x528] sm:$0xf0] }
  0xd2   :  { %2366 = vmatpush.bf16.msra.mxu2 %v3110_v5  ;;  %v3150_v5 = vor.u32 %v4211_v61, %v3147_v62  ;;  %v3078_v27 = vor.u32 %v4193_v4, %v3075_v6  ;;  %v3435_v61 = vld [vmem:[%s6631_s1 + $0x558] sm:$0xf0]  ;;  %v3427_v4 = vld [vmem:[%s6631_s1 + $0x548] sm:$0xf0] }
  0xd3   :  { %2379 = vmatpush.bf16.msra.mxu3 %v3174_v11  ;;  %v4255_v11 = vld [vmem:[%s6631_s1 + $0x474] sm:$0xf]  ;;  %v3275_v58 = vld [vmem:[%s6631_s1 + $0x418] sm:$0xf0] }
  0xd4   :  { %2391 = vmatpush.bf16.msrb.mxu0 %v3246_v25  ;;  %v3014_v25 = vor.u32 %v4177_v2, %v3011_v3  ;;  %v3326_v22 = vor.u32 %v4255_v11, %v3323_v13  ;;  %v3363_v2 = vld [vmem:[%s6631_s1 + $0x4c8] sm:$0xf0]  ;;  %v4281_v3 = vld [vmem:[%s6631_s1 + $0x544] sm:$0xf] }
  0xd5   :  { %2354 = vmatpush.bf16.msra.mxu1 %v3038_v28  ;;  %v4227_v28 = vld [vmem:[%s6631_s1 + $0x394] sm:$0xf]  ;;  %v3430_v14 = vor.u32 %v4281_v3, %v3427_v4  ;;  %v4257_v3 = vld [vmem:[%s6631_s1 + $0x484] sm:$0xf]  ;;  %v3331_v4 = vld [vmem:[%s6631_s1 + $0x488] sm:$0xf0] }
  0xd6   :  { %2367 = vmatpush.bf16.msra.mxu2 %v3102_v29  ;;  %v3211_v29 = vld [vmem:[%s6631_s1 + $0x398] sm:$0xf0] }
  0xd7   :  { %2380 = vmatpush.bf16.msra.mxu3 %v3166_v32  ;;  %v3454_v32 = vor.u32 %v4287_v24, %v3451_v9  ;;  %v3214_v36 = vor.u32 %v4227_v28, %v3211_v29  ;;  %v4263_v24 = vld [vmem:[%s6631_s1 + $0x4b4] sm:$0xf]  ;;  %v3502_v28 = vor.u32 %v4299_v8, %v3499_v10  ;;  %v3579_v8 = vld [vmem:[%s6631_s1 + $0x678] sm:$0xf0] }
  0xd8   :  { %2392 = vmatpush.bf16.msrb.mxu0 %v3238_v41  ;;  %v3203_v41 = vld [vmem:[%s6631_s1 + $0x388] sm:$0xf0]  ;;  %v4279_v9 = vld [vmem:[%s6631_s1 + $0x534] sm:$0xf] }
  0xd9   :  { %2355 = vmatpush.bf16.msra.mxu1 %v3030_v42  ;;  %v3318_v42 = vor.u32 %v4253_v33, %v3315_v34  ;;  %v3206_v59 = vor.u32 %v4225_v40, %v3203_v41  ;;  %v3283_v33 = vld [vmem:[%s6631_s1 + $0x428] sm:$0xf0]  ;;  %v4261_v34 = vld [vmem:[%s6631_s1 + $0x4a4] sm:$0xf] }
  0xda   :  { %2368 = vmatpush.bf16.msra.mxu2 %v3094_v43  ;;  %v4303_v43 = vld [vmem:[%s6631_s1 + $0x5f4] sm:$0xf] }
  0xdb   :  { %2381 = vmatpush.bf16.msra.mxu3 %v3158_v57  ;;  %v3307_v57 = vld [vmem:[%s6631_s1 + $0x458] sm:$0xf0]  ;;  %v3518_v62 = vor.u32 %v4303_v43, %v3515_v45  ;;  %v4295_v43 = vld [vmem:[%s6631_s1 + $0x5b4] sm:$0xf] }
  0xdc   :  { %2393 = vmatpush.bf16.msrb.mxu0 %v3230_v26  ;;  %v4301_v26 = vld [vmem:[%s6631_s1 + $0x5e4] sm:$0xf]  ;;  %v3483_v45 = vld [vmem:[%s6631_s1 + $0x5b8] sm:$0xf0] }
  0xdd   :  { %2356 = vmatpush.bf16.msra.mxu1 %v3022_v0  ;;  %v3438_v0 = vor.u32 %v4283_v21, %v3435_v61  ;;  %v3339_v61 = vld [vmem:[%s6631_s1 + $0x498] sm:$0xf0] }
  0xde   :  { %2369 = vmatpush.bf16.msra.mxu2 %v3086_v1  ;;  %v4265_v1 = vld [vmem:[%s6631_s1 + $0x4c4] sm:$0xf] }
  0xdf   :  { %2382 = vmatpush.bf16.msra.mxu3 %v3150_v5  ;;  %v3510_v5 = vor.u32 %v4301_v26, %v3507_v20  ;;  %v3366_v13 = vor.u32 %v4265_v1, %v3363_v2  ;;  %v3486_v26 = vor.u32 %v4295_v43, %v3483_v45  ;;  %v4293_v20 = vld [vmem:[%s6631_s1 + $0x5a4] sm:$0xf] }
  0xe0   :  { %2394 = vmatpush.bf16.msrb.mxu0 %v3222_v19  ;;  %v2138_v6 = vpop.f32.mrf.mxu0  ;;  %v4247_v19 = vld [vmem:[%s6631_s1 + $0x434] sm:$0xf] }
  0xe1   :  { %2357 = vmatpush.bf16.msra.mxu1 %v3014_v25  ;;  %v2139_v11 = vadd.f32 %v2138_v6, %v5882_v44  ;;  %v2151_v18 = vpop.f32.mrf.mxu1  ;;  %v3355_v44 = vld [vmem:[%s6631_s1 + $0x4b8] sm:$0xf0]  ;;  %v3294_v29 = vor.u32 %v4247_v19, %v3291_v23  ;;  %v3395_v6 = vld [vmem:[%s6631_s1 + $0x508] sm:$0xf0] }
  0xe2   :  { %2370 = vmatpush.bf16.msra.mxu2 %v3078_v27  ;;  %v3419_v25 = vld [vmem:[%s6631_s1 + $0x538] sm:$0xf0] }
  0xe3   :  { %2383 = vmatpush.bf16.msra.mxu3 %v3142_v30  ;;  %v2152_v27 = vadd.f32 %v2151_v18, %v2139_v11  ;;  %v3491_v30 = vld [vmem:[%s6631_s1 + $0x5c8] sm:$0xf0]  ;;  %v4335_v11 = vld [vmem:[%s6631_s1 + $0x6f4] sm:$0xf]  ;;  %v3707_v23 = vld [vmem:[%s6631_s1 + $0x778] sm:$0xf0] }
  0xe4   :  { %2395 = vmatpush.bf16.msrb.mxu0 %v3214_v36  ;;  %2358 = vmatmul.bf16.vlgmr.msra.gmra.mxu1 %v4889_v51  ;;  %v3299_v51 = vld [vmem:[%s6631_s1 + $0x448] sm:$0xf0]  ;;  %v4277_v36 = vld [vmem:[%s6631_s1 + $0x524] sm:$0xf] }
  0xe5   :  { %2402 = vmatpush.bf16.msrb.mxu1 %v3326_v22  ;;  %2371 = vmatmul.bf16.vlgmr.msra.gmra.mxu2 %v4896_v55  ;;  %v3310_v55 = vor.u32 %v4251_v56, %v3307_v57  ;;  %v3358_v22 = vor.u32 %v4263_v24, %v3355_v44  ;;  %v3414_v56 = vor.u32 %v4277_v36, %v3411_v37  ;;  %v4243_v57 = vld [vmem:[%s6631_s1 + $0x414] sm:$0xf]  ;;  %v3467_v44 = vld [vmem:[%s6631_s1 + $0x598] sm:$0xf0]  ;;  %v4289_v36 = vld [vmem:[%s6631_s1 + $0x584] sm:$0xf] }
  0xe6   :  { %2415 = vmatpush.bf16.msrb.mxu2 %v3390_v31  ;;  %2384 = vmatmul.bf16.vlgmr.msra.gmra.mxu3 %v4887_v50  ;;  %v4249_v50 = vld [vmem:[%s6631_s1 + $0x444] sm:$0xf]  ;;  %v3422_v31 = vor.u32 %v4279_v9, %v3419_v25  ;;  %v4291_v24 = vld [vmem:[%s6631_s1 + $0x594] sm:$0xf]  ;;  %v3334_v25 = vor.u32 %v4257_v3, %v3331_v4  ;;  %v3459_v37 = vld [vmem:[%s6631_s1 + $0x588] sm:$0xf0] }
  0xe7   :  { %2428 = vmatpush.bf16.msrb.mxu3 %v3454_v32  ;;  %v3302_v7 = vor.u32 %v4249_v50, %v3299_v51  ;;  %v4245_v32 = vld [vmem:[%s6631_s1 + $0x424] sm:$0xf]  ;;  %v3267_v51 = vld [vmem:[%s6631_s1 + $0x408] sm:$0xf0]  ;;  %v3462_v45 = vor.u32 %v4289_v36, %v3459_v37  ;;  %v4307_v36 = vld [vmem:[%s6631_s1 + $0x614] sm:$0xf] }
  0xe8   :  { %2396 = vmatpush.bf16.msrb.mxu0 %v3206_v59  ;;  %v2164_v38 = vpop.f32.mrf.mxu2  ;;  %v4259_v59 = vld [vmem:[%s6631_s1 + $0x494] sm:$0xf]  ;;  %v4241_v50 = vld [vmem:[%s6631_s1 + $0x404] sm:$0xf] }
  0xe9   :  { %2403 = vmatpush.bf16.msrb.mxu1 %v3318_v42  ;;  %v2165_v40 = vadd.f32 %v2164_v38, %v2152_v27  ;;  %v2177_v41 = vpop.f32.mrf.mxu3  ;;  %v3286_v42 = vor.u32 %v4245_v32, %v3283_v33  ;;  %v2153_v60 = vpop.f32.mrf.mxu1  ;;  %v3342_v1 = vor.u32 %v4259_v59, %v3339_v61  ;;  %v3270_v19 = vor.u32 %v4241_v50, %v3267_v51  ;;  %v4333_v32 = vld [vmem:[%s6631_s1 + $0x6e4] sm:$0xf]  ;;  %v3635_v33 = vld [vmem:[%s6631_s1 + $0x6e8] sm:$0xf0]  ;;  %v4367_v38 = vld [vmem:[%s6631_s1 + $0x7f4] sm:$0xf] }
  0xea   :  { %2416 = vmatpush.bf16.msrb.mxu2 %v3382_v52  ;;  %v2140_v52 = vpop.f32.mrf.mxu0  ;;  %v3691_v59 = vld [vmem:[%s6631_s1 + $0x758] sm:$0xf0]  ;;  %v4365_v60 = vld [vmem:[%s6631_s1 + $0x7e4] sm:$0xf]  ;;  %v3683_v50 = vld [vmem:[%s6631_s1 + $0x748] sm:$0xf0] }
  0xeb   :  { %2429 = vmatpush.bf16.msrb.mxu3 %v3446_v54  ;;  %2397 = vmatmul.bf16.vlgmr.msrb.gmra.mxu0 %v4891_v53  ;;  %v4297_v53 = vld [vmem:[%s6631_s1 + $0x5c4] sm:$0xf]  ;;  %v3350_v54 = vor.u32 %v4261_v34, %v3347_v35  ;;  %v6096_v21 = vadd.f32 %v2177_v41, %v2165_v40  ;;  %v3699_v35 = vld [vmem:[%s6631_s1 + $0x768] sm:$0xf0]  ;;  %v3638_v41 = vor.u32 %v4333_v32, %v3635_v33  ;;  %v3563_v52 = vld [vmem:[%s6631_s1 + $0x658] sm:$0xf0] }
  0xec   :  { %2441 = vmatpush.bf16.msra.mxu0 %v3518_v62  ;;  %v3494_v39 = vor.u32 %v4297_v53, %v3491_v30  ;;  %v4275_v62 = vld [vmem:[%s6631_s1 + $0x514] sm:$0xf]  ;;  %v4317_v53 = vld [vmem:[%s6631_s1 + $0x664] sm:$0xf]  ;;  %v3571_v30 = vld [vmem:[%s6631_s1 + $0x668] sm:$0xf0] }
  0xed   :  { %2404 = vmatpush.bf16.msrb.mxu1 %v3310_v55  ;;  %v3403_v55 = vld [vmem:[%s6631_s1 + $0x518] sm:$0xf0]  ;;  %v4349_v34 = vld [vmem:[%s6631_s1 + $0x764] sm:$0xf]  ;;  %v3574_v40 = vor.u32 %v4317_v53, %v3571_v30  ;;  %v4363_v51 = vld [vmem:[%s6631_s1 + $0x7d4] sm:$0xf] }
  0xee   :  { %2417 = vmatpush.bf16.msrb.mxu2 %v3374_v63  ;;  %v3278_v63 = vor.u32 %v4243_v57, %v3275_v58  ;;  %v3406_v2 = vor.u32 %v4275_v62, %v3403_v55  ;;  %v3702_v43 = vor.u32 %v4349_v34, %v3699_v35  ;;  %v4347_v58 = vld [vmem:[%s6631_s1 + $0x754] sm:$0xf]  ;;  %v4313_v62 = vld [vmem:[%s6631_s1 + $0x644] sm:$0xf]  ;;  %v3667_v30 = vld [vmem:[%s6631_s1 + $0x728] sm:$0xf0] }
  0xef   :  { %2430 = vmatpush.bf16.msrb.mxu3 %v3438_v0  ;;  %v3475_v0 = vld [vmem:[%s6631_s1 + $0x5a8] sm:$0xf0]  ;;  %v3694_v55 = vor.u32 %v4347_v58, %v3691_v59  ;;  %v4341_v53 = vld [vmem:[%s6631_s1 + $0x724] sm:$0xf]  ;;  %v3739_v32 = vld [vmem:[%s6631_s1 + $0x7b8] sm:$0xf0] }
  0xf0   :  { %2442 = vmatpush.bf16.msra.mxu0 %v3510_v5  ;;  %v4273_v5 = vld [vmem:[%s6631_s1 + $0x504] sm:$0xf]  ;;  %v3478_v10 = vor.u32 %v4293_v20, %v3475_v0  ;;  %v2166_v18 = vpop.f32.mrf.mxu2  ;;  %v3619_v20 = vld [vmem:[%s6631_s1 + $0x6c8] sm:$0xf0] }
  0xf1   :  { %2405 = vmatpush.bf16.msrb.mxu1 %v3302_v7  ;;  %v4319_v7 = vld [vmem:[%s6631_s1 + $0x674] sm:$0xf]  ;;  %v2179_v9 = vpop.f32.mrf.mxu3  ;;  %v3398_v27 = vor.u32 %v4273_v5, %v3395_v6  ;;  %v4345_v0 = vld [vmem:[%s6631_s1 + $0x744] sm:$0xf] }
  0xf2   :  { %2418 = vmatpush.bf16.msrb.mxu2 %v3366_v13  ;;  %v3643_v13 = vld [vmem:[%s6631_s1 + $0x6f8] sm:$0xf0]  ;;  %v4311_v5 = vld [vmem:[%s6631_s1 + $0x634] sm:$0xf]  ;;  %v3686_v6 = vor.u32 %v4345_v0, %v3683_v50  ;;  %v4361_v18 = vld [vmem:[%s6631_s1 + $0x7c4] sm:$0xf] }
  0xf3   :  { %2431 = vmatpush.bf16.msrb.mxu3 %v3430_v14  ;;  %v4351_v14 = vld [vmem:[%s6631_s1 + $0x774] sm:$0xf]  ;;  %v4305_v59 = vld [vmem:[%s6631_s1 + $0x604] sm:$0xf]  ;;  %v3899_v0 = vld [vmem:[%s6631_s1 + $0x8f8] sm:$0xf0] }
  0xf4   :  { %2443 = vmatpush.bf16.msra.mxu0 %v3502_v28  ;;  %v3582_v28 = vor.u32 %v4319_v7, %v3579_v8  ;;  %v3547_v8 = vld [vmem:[%s6631_s1 + $0x638] sm:$0xf0]  ;;  %v4415_v50 = vld [vmem:[%s6631_s1 + $0x974] sm:$0xf] }
  0xf5   :  { %2406 = vmatpush.bf16.msrb.mxu1 %v3294_v29  ;;  %v3646_v29 = vor.u32 %v4335_v11, %v3643_v13  ;;  %v3611_v11 = vld [vmem:[%s6631_s1 + $0x6b8] sm:$0xf0] }
  0xf6   :  { %2419 = vmatpush.bf16.msrb.mxu2 %v3358_v22  ;;  %v3710_v22 = vor.u32 %v4351_v14, %v3707_v23  ;;  %v3675_v14 = vld [vmem:[%s6631_s1 + $0x738] sm:$0xf0]  ;;  %v3550_v23 = vor.u32 %v4311_v5, %v3547_v8  ;;  %v4355_v5 = vld [vmem:[%s6631_s1 + $0x794] sm:$0xf] }
  0xf7   :  { %2432 = vmatpush.bf16.msrb.mxu3 %v3422_v31  ;;  %v3470_v31 = vor.u32 %v4291_v24, %v3467_v44  ;;  %v4309_v44 = vld [vmem:[%s6631_s1 + $0x624] sm:$0xf] }
  0xf8   :  { %2444 = vmatpush.bf16.msra.mxu0 %v3494_v39  ;;  %v3771_v39 = vld [vmem:[%s6631_s1 + $0x7f8] sm:$0xf0] }
  0xf9   :  { %2407 = vmatpush.bf16.msrb.mxu1 %v3286_v42  ;;  %v4315_v42 = vld [vmem:[%s6631_s1 + $0x654] sm:$0xf]  ;;  %v3774_v57 = vor.u32 %v4367_v38, %v3771_v39  ;;  %v3670_v38 = vor.u32 %v4341_v53, %v3667_v30  ;;  %v3531_v39 = vld [vmem:[%s6631_s1 + $0x618] sm:$0xf0] }
  0xfa   :  { %2420 = vmatpush.bf16.msrb.mxu2 %v3350_v54  ;;  %v4331_v54 = vld [vmem:[%s6631_s1 + $0x6d4] sm:$0xf]  ;;  %v4027_v53 = vld [vmem:[%s6631_s1 + $0x9f8] sm:$0xf0] }
  0xfb   :  { %2433 = vmatpush.bf16.msrb.mxu3 %v3414_v56  ;;  %v3627_v56 = vld [vmem:[%s6631_s1 + $0x6d8] sm:$0xf0] }
  0xfc   :  { %2445 = vmatpush.bf16.msra.mxu0 %v3486_v26  ;;  %v3630_v61 = vor.u32 %v4331_v54, %v3627_v56  ;;  %v4329_v26 = vld [vmem:[%s6631_s1 + $0x6c4] sm:$0xf]  ;;  %v3731_v56 = vld [vmem:[%s6631_s1 + $0x7a8] sm:$0xf0] }
  0xfd   :  { %2408 = vmatpush.bf16.msrb.mxu1 %v3278_v63  ;;  %v3622_v4 = vor.u32 %v4329_v26, %v3619_v20  ;;  %v4357_v54 = vld [vmem:[%s6631_s1 + $0x7a4] sm:$0xf]  ;;  %v4383_v26 = vld [vmem:[%s6631_s1 + $0x874] sm:$0xf]  ;;  %v3835_v20 = vld [vmem:[%s6631_s1 + $0x878] sm:$0xf0] }
  0xfe   :  { %2421 = vmatpush.bf16.msrb.mxu2 %v3342_v1  ;;  %v3755_v1 = vld [vmem:[%s6631_s1 + $0x7d8] sm:$0xf0] }
  0xff   :  { %2434 = vmatpush.bf16.msrb.mxu3 %v3406_v2  ;;  %v3758_v13 = vor.u32 %v4363_v51, %v3755_v1  ;;  %v3963_v51 = vld [vmem:[%s6631_s1 + $0x978] sm:$0xf0] }
 0x100   :  { %2446 = vmatpush.bf16.msra.mxu0 %v3478_v10  ;;  %v6236_v2 = vpop.f32.mrf.mxu0  ;;  %v4327_v10 = vld [vmem:[%s6631_s1 + $0x6b4] sm:$0xf] }
 0x101   :  { %2409 = vmatpush.bf16.msrb.mxu1 %v3270_v19  ;;  %v6242_v7 = vpop.f32.mrf.mxu1  ;;  %v3747_v19 = vld [vmem:[%s6631_s1 + $0x7c8] sm:$0xf0]  ;;  %v3614_v24 = vor.u32 %v4327_v10, %v3611_v11  ;;  %v3838_v11 = vor.u32 %v4383_v26, %v3835_v20 }
 0x102   :  { %2422 = vmatpush.bf16.msrb.mxu2 %v3334_v25  ;;  %v3539_v25 = vld [vmem:[%s6631_s1 + $0x628] sm:$0xf0] }
 0x103   :  { %2435 = vmatpush.bf16.msrb.mxu3 %v3398_v27  ;;  %v4325_v27 = vld [vmem:[%s6631_s1 + $0x6a4] sm:$0xf]  ;;  %v3542_v34 = vor.u32 %v4309_v44, %v3539_v25 }
 0x104   :  { %2447 = vmatpush.bf16.msra.mxu0 %v3470_v31  ;;  %2410 = vmatmul.bf16.vlgmr.msrb.gmra.mxu1 %v5166_v12  ;;  %v3763_v12 = vld [vmem:[%s6631_s1 + $0x7e8] sm:$0xf0]  ;;  %v4359_v31 = vld [vmem:[%s6631_s1 + $0x7b4] sm:$0xf]  ;;  %v4413_v44 = vld [vmem:[%s6631_s1 + $0x964] sm:$0xf] }
 0x105   :  { %2454 = vmatpush.bf16.msra.mxu1 %v3582_v28  ;;  %2423 = vmatmul.bf16.vlgmr.msrb.gmra.mxu2 %v5176_v16  ;;  %v3566_v16 = vor.u32 %v4315_v42, %v3563_v52  ;;  %v3766_v63 = vor.u32 %v4365_v60, %v3763_v12  ;;  %v3603_v28 = vld [vmem:[%s6631_s1 + $0x6a8] sm:$0xf0]  ;;  %v3659_v52 = vld [vmem:[%s6631_s1 + $0x718] sm:$0xf0]  ;;  %v4321_v12 = vld [vmem:[%s6631_s1 + $0x684] sm:$0xf] }
 0x106   :  { %2467 = vmatpush.bf16.msra.mxu2 %v3646_v29  ;;  %2436 = vmatmul.bf16.vlgmr.msrb.gmra.mxu3 %v5174_v15  ;;  %v3555_v15 = vld [vmem:[%s6631_s1 + $0x648] sm:$0xf0]  ;;  %v3750_v29 = vor.u32 %v4361_v18, %v3747_v19  ;;  %v3606_v35 = vor.u32 %v4325_v27, %v3603_v28  ;;  %v4397_v19 = vld [vmem:[%s6631_s1 + $0x8e4] sm:$0xf] }
 0x107   :  { %2480 = vmatpush.bf16.msra.mxu3 %v3710_v22  ;;  %v3558_v3 = vor.u32 %v4313_v62, %v3555_v15  ;;  %v3523_v60 = vld [vmem:[%s6631_s1 + $0x608] sm:$0xf0]  ;;  %v4337_v62 = vld [vmem:[%s6631_s1 + $0x704] sm:$0xf]  ;;  %v3734_v15 = vor.u32 %v4357_v54, %v3731_v56 }
 0x108   :  { %2448 = vmatpush.bf16.msra.mxu0 %v3462_v45  ;;  %v6283_v22 = vpop.f32.mrf.mxu2  ;;  %v2192_v37 = vpop.f32.mrf.mxu0  ;;  %v4339_v45 = vld [vmem:[%s6631_s1 + $0x714] sm:$0xf]  ;;  %v3827_v18 = vld [vmem:[%s6631_s1 + $0x868] sm:$0xf0]  ;;  %v4353_v25 = vld [vmem:[%s6631_s1 + $0x784] sm:$0xf] }
 0x109   :  { %2455 = vmatpush.bf16.msra.mxu1 %v3574_v40  ;;  %v6291_v33 = vpop.f32.mrf.mxu3  ;;  %v4323_v40 = vld [vmem:[%s6631_s1 + $0x694] sm:$0xf]  ;;  %v2205_v42 = vpop.f32.mrf.mxu1  ;;  %v3715_v27 = vld [vmem:[%s6631_s1 + $0x788] sm:$0xf0]  ;;  %v3883_v37 = vld [vmem:[%s6631_s1 + $0x8d8] sm:$0xf0] }
 0x10a   :  { %2468 = vmatpush.bf16.msra.mxu2 %v3638_v41  ;;  %v3595_v41 = vld [vmem:[%s6631_s1 + $0x698] sm:$0xf0]  ;;  %v4019_v42 = vld [vmem:[%s6631_s1 + $0x9e8] sm:$0xf0]  ;;  %v4409_v56 = vld [vmem:[%s6631_s1 + $0x944] sm:$0xf] }
 0x10b   :  { %2481 = vmatpush.bf16.msra.mxu3 %v3702_v43  ;;  %2449 = vmatmul.bf16.vlgmr.msra.gmra.mxu0 %v5178_v17  ;;  %v4343_v17 = vld [vmem:[%s6631_s1 + $0x734] sm:$0xf]  ;;  %v3742_v43 = vor.u32 %v4359_v31, %v3739_v32  ;;  %v3598_v58 = vor.u32 %v4323_v40, %v3595_v41  ;;  %v4429_v41 = vld [vmem:[%s6631_s1 + $0x9e4] sm:$0xf]  ;;  %v3875_v54 = vld [vmem:[%s6631_s1 + $0x8c8] sm:$0xf0] }
 0x10c   :  { %2493 = vmatpush.bf16.msrb.mxu0 %v3774_v57  ;;  %v3678_v9 = vor.u32 %v4343_v17, %v3675_v14  ;;  %v3534_v57 = vor.u32 %v4307_v36, %v3531_v39  ;;  %v3966_v17 = vor.u32 %v4415_v50, %v3963_v51  ;;  %v4381_v14 = vld [vmem:[%s6631_s1 + $0x864] sm:$0xf]  ;;  %v4379_v32 = vld [vmem:[%s6631_s1 + $0x854] sm:$0xf]  ;;  %v3718_v36 = vor.u32 %v4353_v25, %v3715_v27  ;;  %v3947_v39 = vld [vmem:[%s6631_s1 + $0x958] sm:$0xf0] }
 0x10d   :  { %2456 = vmatpush.bf16.msra.mxu1 %v3566_v16  ;;  %v3662_v16 = vor.u32 %v4339_v45, %v3659_v52  ;;  %v3830_v28 = vor.u32 %v4381_v14, %v3827_v18  ;;  %v4393_v52 = vld [vmem:[%s6631_s1 + $0x8c4] sm:$0xf]  ;;  %v3931_v50 = vld [vmem:[%s6631_s1 + $0x938] sm:$0xf0]  ;;  %v4371_v27 = vld [vmem:[%s6631_s1 + $0x814] sm:$0xf] }
 0x10e   :  { %2469 = vmatpush.bf16.msra.mxu2 %v3630_v61  ;;  %v3587_v61 = vld [vmem:[%s6631_s1 + $0x688] sm:$0xf0] }
 0x10f   :  { %2482 = vmatpush.bf16.msra.mxu3 %v3694_v55  ;;  %v3651_v55 = vld [vmem:[%s6631_s1 + $0x708] sm:$0xf0] }
 0x110   :  { %2494 = vmatpush.bf16.msrb.mxu0 %v3766_v63  ;;  %v4399_v63 = vld [vmem:[%s6631_s1 + $0x8f4] sm:$0xf]  ;;  %v2218_v1 = vpop.f32.mrf.mxu2  ;;  %v3654_v10 = vor.u32 %v4337_v62, %v3651_v55  ;;  %v3803_v55 = vld [vmem:[%s6631_s1 + $0x838] sm:$0xf0] }
 0x111   :  { %2457 = vmatpush.bf16.msra.mxu1 %v3558_v3  ;;  %v3526_v3 = vor.u32 %v4305_v59, %v3523_v60  ;;  %v2231_v8 = vpop.f32.mrf.mxu3  ;;  %v4427_v60 = vld [vmem:[%s6631_s1 + $0x9d4] sm:$0xf] }
 0x112   :  { %2470 = vmatpush.bf16.msra.mxu2 %v3622_v4  ;;  %v3590_v4 = vor.u32 %v4321_v12, %v3587_v61  ;;  %v4011_v12 = vld [vmem:[%s6631_s1 + $0x9d8] sm:$0xf0]  ;;  %v4375_v62 = vld [vmem:[%s6631_s1 + $0x834] sm:$0xf]  ;;  %v3795_v8 = vld [vmem:[%s6631_s1 + $0x828] sm:$0xf0] }
 0x113   :  { %2483 = vmatpush.bf16.msra.mxu3 %v3686_v6  ;;  %v3723_v6 = vld [vmem:[%s6631_s1 + $0x798] sm:$0xf0]  ;;  %v4014_v51 = vor.u32 %v4427_v60, %v4011_v12  ;;  %v3806_v1 = vor.u32 %v4375_v62, %v3803_v55 }
 0x114   :  { %2495 = vmatpush.bf16.msrb.mxu0 %v3758_v13  ;;  %v3902_v13 = vor.u32 %v4399_v63, %v3899_v0  ;;  %v3867_v63 = vld [vmem:[%s6631_s1 + $0x8b8] sm:$0xf0]  ;;  %v4407_v0 = vld [vmem:[%s6631_s1 + $0x934] sm:$0xf] }
 0x115   :  { %2458 = vmatpush.bf16.msra.mxu1 %v3550_v23  ;;  %v3726_v23 = vor.u32 %v4355_v5, %v3723_v6  ;;  %v3934_v5 = vor.u32 %v4407_v0, %v3931_v50  ;;  %v4373_v6 = vld [vmem:[%s6631_s1 + $0x824] sm:$0xf]  ;;  %v4444_v62 = vld [vmem:[%s6633_s3 + $0x38] sm:$0xff]  ;;  %v4035_v50 = vld [vmem:[%s6631_s1 + $0xa08] sm:$0xf0] }
 0x116   :  { %2471 = vmatpush.bf16.msra.mxu2 %v3614_v24  ;;  %v3891_v24 = vld [vmem:[%s6631_s1 + $0x8e8] sm:$0xf0]  ;;  %v4433_v0 = vld [vmem:[%s6631_s1 + $0xa04] sm:$0xf] }
 0x117   :  { %2484 = vmatpush.bf16.msra.mxu3 %v3678_v9  ;;  %v3955_v9 = vld [vmem:[%s6631_s1 + $0x968] sm:$0xf0]  ;;  %v3894_v30 = vor.u32 %v4397_v19, %v3891_v24  ;;  %v3798_v19 = vor.u32 %v4373_v6, %v3795_v8  ;;  %v3995_v24 = vld [vmem:[%s6631_s1 + $0x9b8] sm:$0xf0]  ;;  %v4457_v6 = vld [vmem:[#allocation1 + $0x12] sm:$0xff] }
 0x118   :  { %2496 = vmatpush.bf16.msrb.mxu0 %v3750_v29  ;;  %v4431_v29 = vld [vmem:[%s6631_s1 + $0x9f4] sm:$0xf]  ;;  %v3958_v31 = vor.u32 %v4413_v44, %v3955_v9 }
 0x119   :  { %2459 = vmatpush.bf16.msra.mxu1 %v3542_v34  ;;  %v3819_v34 = vld [vmem:[%s6631_s1 + $0x858] sm:$0xf0]  ;;  %v4030_v40 = vor.u32 %v4431_v29, %v4027_v53  ;;  %v4387_v29 = vld [vmem:[%s6631_s1 + $0x894] sm:$0xf] }
 0x11a   :  { %2472 = vmatpush.bf16.msra.mxu2 %v3606_v35  ;;  %v4395_v35 = vld [vmem:[%s6631_s1 + $0x8d4] sm:$0xf] }
 0x11b   :  { %2485 = vmatpush.bf16.msra.mxu3 %v3670_v38  ;;  %v4411_v38 = vld [vmem:[%s6631_s1 + $0x954] sm:$0xf] }
 0x11c   :  { %2497 = vmatpush.bf16.msrb.mxu0 %v3742_v43  ;;  %v3886_v43 = vor.u32 %v4395_v35, %v3883_v37  ;;  %v3950_v45 = vor.u32 %v4411_v38, %v3947_v39  ;;  %v4421_v37 = vld [vmem:[%s6631_s1 + $0x9a4] sm:$0xf]  ;;  %v3987_v38 = vld [vmem:[%s6631_s1 + $0x9a8] sm:$0xf0] }
 0x11d   :  { %2460 = vmatpush.bf16.msra.mxu1 %v3534_v57  ;;  %v3939_v57 = vld [vmem:[%s6631_s1 + $0x948] sm:$0xf0] }
 0x11e   :  { %2473 = vmatpush.bf16.msra.mxu2 %v3598_v58  ;;  %v4022_v58 = vor.u32 %v4429_v41, %v4019_v42  ;;  %v3942_v61 = vor.u32 %v4409_v56, %v3939_v57  ;;  %v3779_v41 = vld [vmem:[%s6631_s1 + $0x808] sm:$0xf0]  ;;  %v4385_v42 = vld [vmem:[%s6631_s1 + $0x884] sm:$0xf] }
 0x11f   :  { %2486 = vmatpush.bf16.msra.mxu3 %v3662_v16  ;;  %v3878_v16 = vor.u32 %v4393_v52, %v3875_v54  ;;  %v4435_v52 = vld [vmem:[%s6631_s1 + $0xa14] sm:$0xf]  ;;  %v4043_v54 = vld [vmem:[%s6631_s1 + $0xa18] sm:$0xf0] }
 0x120   :  { %2498 = vmatpush.bf16.msrb.mxu0 %v3734_v15  ;;  %v4391_v15 = vld [vmem:[%s6631_s1 + $0x8b4] sm:$0xf]  ;;  %v6449_v26 = vpop.f32.mrf.mxu0  ;;  %v4046_v55 = vor.u32 %v4435_v52, %v4043_v54 }
 0x121   :  { %2461 = vmatpush.bf16.msra.mxu1 %v3526_v3  ;;  %v6452_v20 = vpop.f32.mrf.mxu1  ;;  %v4003_v3 = vld [vmem:[%s6631_s1 + $0x9c8] sm:$0xf0] }
 0x122   :  { %2474 = vmatpush.bf16.msra.mxu2 %v3590_v4  ;;  %v3870_v4 = vor.u32 %v4391_v15, %v3867_v63  ;;  %v2191_v15 = vadd.f32 %v6236_v2, %v6096_v21  ;;  %v4443_v21 = vld [vmem:[%s6633_s3 + $0x30] sm:$0xff]  ;;  %v4038_v2 = vor.u32 %v4433_v0, %v4035_v50  ;;  %v4450_v50 = vld [vmem:[%s6633_s3 + $0x68] sm:$0xff] }
 0x123   :  { %2487 = vmatpush.bf16.msra.mxu3 %v3654_v10  ;;  %v4389_v10 = vld [vmem:[%s6631_s1 + $0x8a4] sm:$0xf] }
 0x124   :  { %2499 = vmatpush.bf16.msrb.mxu0 %v3726_v23  ;;  %2462 = vmatmul.bf16.vlgmr.msra.gmra.mxu1 %v5340_v46  ;;  %v3822_v46 = vor.u32 %v4379_v32, %v3819_v34  ;;  %v4423_v23 = vld [vmem:[%s6631_s1 + $0x9b4] sm:$0xf]  ;;  %v3915_v32 = vld [vmem:[%s6631_s1 + $0x918] sm:$0xf0] }
 0x125   :  { %2506 = vmatpush.bf16.msrb.mxu1 %v3838_v11  ;;  %2475 = vmatmul.bf16.vlgmr.msra.gmra.mxu2 %v5344_v48  ;;  %v4377_v48 = vld [vmem:[%s6631_s1 + $0x844] sm:$0xf]  ;;  %v3859_v11 = vld [vmem:[%s6631_s1 + $0x8a8] sm:$0xf0]  ;;  %v3998_v35 = vor.u32 %v4423_v23, %v3995_v24 }
 0x126   :  { %2519 = vmatpush.bf16.msrb.mxu2 %v3902_v13  ;;  %2488 = vmatmul.bf16.vlgmr.msra.gmra.mxu3 %v5342_v47  ;;  %v3811_v47 = vld [vmem:[%s6631_s1 + $0x848] sm:$0xf0]  ;;  %v4405_v13 = vld [vmem:[%s6631_s1 + $0x924] sm:$0xf]  ;;  %v3862_v9 = vor.u32 %v4389_v10, %v3859_v11 }
 0x127   :  { %2532 = vmatpush.bf16.msrb.mxu3 %v3966_v17  ;;  %v3814_v59 = vor.u32 %v4377_v48, %v3811_v47  ;;  %v3923_v17 = vld [vmem:[%s6631_s1 + $0x928] sm:$0xf0]  ;;  %v3990_v47 = vor.u32 %v4421_v37, %v3987_v38  ;;  %v4437_v37 = vld [vmem:[%s6633_s3] sm:$0xff] }
 0x128   :  { %2500 = vmatpush.bf16.msrb.mxu0 %v3718_v36  ;;  %v6487_v14 = vpop.f32.mrf.mxu2  ;;  %v3926_v25 = vor.u32 %v4405_v13, %v3923_v17  ;;  %v2244_v53 = vpop.f32.mrf.mxu0  ;;  %v3907_v48 = vld [vmem:[%s6631_s1 + $0x908] sm:$0xf0]  ;;  %v4458_v13 = vld [vmem:[#allocation1 + $0x1b] sm:$0xff] }
 0x129   :  { %2507 = vmatpush.bf16.msrb.mxu1 %v3830_v28  ;;  %v6495_v44 = vpop.f32.mrf.mxu3  ;;  %v3787_v28 = vld [vmem:[%s6631_s1 + $0x818] sm:$0xf0]  ;;  %v2257_v34 = vpop.f32.mrf.mxu1  ;;  %v4442_v10 = vld [vmem:[%s6633_s3 + $0x28] sm:$0xff]  ;;  %v4441_v17 = vld [vmem:[%s6633_s3 + $0x20] sm:$0xff] }
 0x12a   :  { %2520 = vmatpush.bf16.msrb.mxu2 %v3894_v30  ;;  %v3851_v30 = vld [vmem:[%s6631_s1 + $0x898] sm:$0xf0]  ;;  %v3790_v36 = vor.u32 %v4371_v27, %v3787_v28  ;;  %v4439_v28 = vld [vmem:[%s6633_s3 + $0x10] sm:$0xff] }
 0x12b   :  { %2533 = vmatpush.bf16.msrb.mxu3 %v3958_v31  ;;  %2501 = vmatmul.bf16.vlgmr.msrb.gmra.mxu0 %v5346_v49  ;;  %v4425_v49 = vld [vmem:[%s6631_s1 + $0x9c4] sm:$0xf]  ;;  %v4403_v31 = vld [vmem:[%s6631_s1 + $0x914] sm:$0xf]  ;;  %v3854_v39 = vor.u32 %v4387_v29, %v3851_v30 }
 0x12c   :  { %2545 = vmatpush.bf16.msra.mxu0 %v4030_v40  ;;  %v4006_v18 = vor.u32 %v4425_v49, %v4003_v3  ;;  %v3918_v40 = vor.u32 %v4403_v31, %v3915_v32  ;;  %v2204_v49 = vadd.f32 %v6242_v7, %v2191_v15  ;;  %v4455_v3 = vld [vmem:[#allocation1] sm:$0xff] }
 0x12d   :  { %2508 = vmatpush.bf16.msrb.mxu1 %v3822_v46  ;;  %v4369_v46 = vld [vmem:[%s6631_s1 + $0x804] sm:$0xf] }
 0x12e   :  { %2521 = vmatpush.bf16.msrb.mxu2 %v3886_v43  ;;  %v3843_v43 = vld [vmem:[%s6631_s1 + $0x888] sm:$0xf0]  ;;  %v3782_v57 = vor.u32 %v4369_v46, %v3779_v41  ;;  %v2217_v8 = vadd.f32 %v6283_v22, %v2204_v49  ;;  %v4459_v22 = vld [vmem:[%s6632_s2] sm:$0x3] }
 0x12f   :  { %2534 = vmatpush.bf16.msrb.mxu3 %v3950_v45  ;;  %v4401_v45 = vld [vmem:[%s6631_s1 + $0x904] sm:$0xf]  ;;  %v3846_v60 = vor.u32 %v4385_v42, %v3843_v43 }
 0x130   :  { %2546 = vmatpush.bf16.msra.mxu0 %v4022_v58  ;;  %v2270_v56 = vpop.f32.mrf.mxu2  ;;  %v4419_v58 = vld [vmem:[%s6631_s1 + $0x994] sm:$0xf]  ;;  %v3910_v12 = vor.u32 %v4401_v45, %v3907_v48  ;;  %v2230_v7 = vadd.f32 %v6291_v33, %v2217_v8  ;;  %v4440_v33 = vld [vmem:[%s6633_s3 + $0x18] sm:$0xff] }
 0x131   :  { %2509 = vmatpush.bf16.msrb.mxu1 %v3814_v59  ;;  %v3979_v59 = vld [vmem:[%s6631_s1 + $0x998] sm:$0xf0] }
 0x132   :  { %2522 = vmatpush.bf16.msrb.mxu2 %v3878_v16  ;;  %v2283_v16 = vpop.f32.mrf.mxu3  ;;  %v3982_v63 = vor.u32 %v4419_v58, %v3979_v59  ;;  %v2243_v23 = vadd.f32 %v6449_v26, %v2230_v7  ;;  %v4460_v26 = vld [vmem:[#allocation1 + $0x24] sm:$0xff] }
 0x133   :  { %2535 = vmatpush.bf16.msrb.mxu3 %v3942_v61  ;;  %v2294_v61 = vpop.f32.mrf.mxu0 }
 0x134   :  { %2547 = vmatpush.bf16.msra.mxu0 %v4014_v51  ;;  %v4417_v51 = vld [vmem:[%s6631_s1 + $0x984] sm:$0xf] }
 0x135   :  { %2510 = vmatpush.bf16.msrb.mxu1 %v3806_v1  ;;  %v3971_v1 = vld [vmem:[%s6631_s1 + $0x988] sm:$0xf0] }
 0x136   :  { %2523 = vmatpush.bf16.msrb.mxu2 %v3870_v4  ;;  %v3974_v4 = vor.u32 %v4417_v51, %v3971_v1  ;;  %v4449_v51 = vld [vmem:[%s6633_s3 + $0x60] sm:$0xff] }
 0x137   :  { %2536 = vmatpush.bf16.msrb.mxu3 %v3934_v5  ;;  %v4456_v5 = vld [vmem:[#allocation1 + $0x9] sm:$0xff] }
 0x138   :  { %2548 = vmatpush.bf16.msra.mxu0 %v4006_v18  ;;  %v352_v18 = vperm.slane %v4459_v22, 1  ;;  %v4445_v22 = vld [vmem:[%s6633_s3 + $0x40] sm:$0xff] }
 0x139   :  { %2511 = vmatpush.bf16.msrb.mxu1 %v3798_v19 }
 0x13a   :  { %2524 = vmatpush.bf16.msrb.mxu2 %v3862_v9  ;;  %v2256_v9 = vadd.f32 %v6452_v20, %v2243_v23  ;;  %v4438_v20 = vld [vmem:[%s6633_s3 + $0x8] sm:$0xff] }
 0x13b   :  { %2537 = vmatpush.bf16.msrb.mxu3 %v3926_v25  ;;  %v2296_v11 = vpop.f32.mrf.mxu0 }
 0x13c   :  { %2549 = vmatpush.bf16.msra.mxu0 %v3998_v35  ;;  %v2269_v25 = vadd.f32 %v6487_v14, %v2256_v9 }
 0x13d   :  { %2512 = vmatpush.bf16.msrb.mxu1 %v3790_v36 }
 0x13e   :  { %2525 = vmatpush.bf16.msrb.mxu2 %v3854_v39  ;;  %v2282_v34 = vadd.f32 %v6495_v44, %v2269_v25 }
 0x13f   :  { %2538 = vmatpush.bf16.msrb.mxu3 %v3918_v40 }
 0x140   :  { %2550 = vmatpush.bf16.msra.mxu0 %v3990_v47  ;;  %v2295_v35 = vadd.f32 %v2294_v61, %v2282_v34 }
 0x141   :  { %2513 = vmatpush.bf16.msrb.mxu1 %v3782_v57  ;;  %v2307_v19 = vpop.f32.mrf.mxu1 }
 0x142   :  { %2526 = vmatpush.bf16.msrb.mxu2 %v3846_v60  ;;  %v2308_v24 = vadd.f32 %v2307_v19, %v352_v18  ;;  %v2571_v40 = vmax.f32 %v2295_v35, 0.0 }
 0x143   :  { %2539 = vmatpush.bf16.msrb.mxu3 %v3910_v12 }
 0x144   :  { %2551 = vmatpush.bf16.msra.mxu0 %v3982_v63  ;;  %2514 = vmatmul.bf16.vlgmr.msrb.gmra.mxu1 %v4455_v3  ;;  %v2573_v46 = vpack.c.bf16 %v2571_v40, %v2571_v40 }
 0x145   :  { %2564 = vmatpush.bf16.msra.mxu1 %v4046_v55  ;;  %2527 = vmatmul.bf16.vlgmr.msrb.gmra.mxu2 %v4456_v5  ;;  %v4451_v55 = vld [vmem:[%s6633_s3 + $0x70] sm:$0xff] }
 0x146   :  { %2707 = vmatpush.bf16.msra.mxu2 %v4444_v62  ;;  %2540 = vmatmul.bf16.vlgmr.msrb.gmra.mxu3 %v4457_v6  ;;  %v4452_v62 = vld [vmem:[%s6633_s3 + $0x78] sm:$0xff]  ;;  %v4447_v5 = vld [vmem:[%s6633_s3 + $0x50] sm:$0xff] }
 0x147   :  { %2720 = vmatpush.bf16.msra.mxu3 %v4452_v62 }
 0x148   :  { %2552 = vmatpush.bf16.msra.mxu0 %v3974_v4  ;;  %v2320_v27 = vpop.f32.mrf.mxu2  ;;  %v2346_v30 = vpop.f32.mrf.mxu0 }
 0x149   :  { %2565 = vmatpush.bf16.msra.mxu1 %v4038_v2  ;;  %v2321_v29 = vadd.f32 %v2320_v27, %v2308_v24  ;;  %v2333_v53 = vpop.f32.mrf.mxu3  ;;  %v2309_v31 = vpop.f32.mrf.mxu1 }
 0x14a   :  { %2708 = vmatpush.bf16.msra.mxu2 %v4443_v21  ;;  %v4448_v21 = vld [vmem:[%s6633_s3 + $0x58] sm:$0xff] }
 0x14b   :  { %2553 = vmatmul.bf16.vlgmr.msra.gmra.mxu0 %v4458_v13  ;;  %v2334_v32 = vadd.f32 %v2333_v53, %v2321_v29  ;;  %2721 = vmatpush.bf16.msra.mxu3 %v4451_v55 }
 0x14d   :  { %v2347_v14 = vadd.f32 %v2346_v30, %v2334_v32 }
 0x14e   :  { %2709 = vmatpush.bf16.msra.mxu2 %v4442_v10  ;;  %v4446_v10 = vld [vmem:[%s6633_s3 + $0x48] sm:$0xff] }
 0x14f   :  { %2722 = vmatpush.bf16.msra.mxu3 %v4450_v50 }
 0x150   :  { %v2322_v36 = vpop.f32.mrf.mxu2  ;;  %v2348_v39 = vpop.f32.mrf.mxu0 }
 0x151   :  { %v2335_v38 = vpop.f32.mrf.mxu3 }
 0x152   :  { %2710 = vmatpush.bf16.msra.mxu2 %v4441_v17 }
 0x153   :  { %2723 = vmatpush.bf16.msra.mxu3 %v4449_v51 }
 0x154   :  { %4048 = vmatmul.msk.bf16.vlgmr.msra.gmra.mxu1 %vm2022_vm0, %v4460_v26 }
 0x156   :  { %2711 = vmatpush.bf16.msra.mxu2 %v4440_v33 }
 0x157   :  { %2724 = vmatpush.bf16.msra.mxu3 %v4448_v21 }
 0x15a   :  { %2712 = vmatpush.bf16.msra.mxu2 %v4439_v28 }
 0x15b   :  { %2725 = vmatpush.bf16.msra.mxu3 %v4447_v5 }
 0x15e   :  { %2713 = vmatpush.bf16.msra.mxu2 %v4438_v20 }
 0x15f   :  { %2726 = vmatpush.bf16.msra.mxu3 %v4446_v10 }
 0x161   :  { %v2359_v44 = vpop.f32.mrf.mxu1 }
 0x162   :  { %2714 = vmatpush.bf16.msra.mxu2 %v4437_v37  ;;  %v2360_v41 = vadd.f32 %v2359_v44, %v2347_v14 }
 0x163   :  { %2727 = vmatpush.bf16.msra.mxu3 %v4445_v22 }
 0x165   :  { %2715 = vmatmul.bf16.vlgmr.msra.gmra.mxu2 %v2573_v46  ;;  %v4454_v46 = vld [vmem:[%s6634_s4] ss:$0 sm:$0xff] }
 0x168   :  { %v2372_v42 = vpop.f32.mrf.mxu2  ;;  %v2398_v48 = vpop.f32.mrf.mxu0 }
 0x169   :  { %v2373_v43 = vadd.f32 %v2372_v42, %v2360_v41  ;;  %v2385_v45 = vpop.f32.mrf.mxu3  ;;  %v2361_v52 = vpop.f32.mrf.mxu1 }
 0x16b   :  { %v2386_v47 = vadd.f32 %v2385_v45, %v2373_v43 }
 0x16d   :  { %v2399_v54 = vadd.f32 %v2398_v48, %v2386_v47 }
 0x170   :  { %v2374_v56 = vpop.f32.mrf.mxu2  ;;  %v2400_v58 = vpop.f32.mrf.mxu0 }
 0x171   :  { %v2387_v57 = vpop.f32.mrf.mxu3 }
 0x181   :  { %v2411_v59 = vpop.f32.mrf.mxu1 }
 0x182   :  { %v2412_v6 = vadd.f32 %v2411_v59, %v2399_v54 }
 0x188   :  { %v2424_v60 = vpop.f32.mrf.mxu2  ;;  %v2450_v16 = vpop.f32.mrf.mxu0 }
 0x189   :  { %v2437_v12 = vpop.f32.mrf.mxu3  ;;  %v2413_v61 = vpop.f32.mrf.mxu1  ;;  %v2425_v8 = vadd.f32 %v2424_v60, %v2412_v6 }
 0x18b   :  { %v2438_v17 = vadd.f32 %v2437_v12, %v2425_v8 }
 0x18d   :  { %v2451_v18 = vadd.f32 %v2450_v16, %v2438_v17 }
 0x190   :  { %v2426_v15 = vpop.f32.mrf.mxu2  ;;  %v2452_v0 = vpop.f32.mrf.mxu0 }
 0x191   :  { %v2439_v63 = vpop.f32.mrf.mxu3 }
 0x1a1   :  { %v2463_v1 = vpop.f32.mrf.mxu1 }
 0x1a2   :  { %v2464_v19 = vadd.f32 %v2463_v1, %v2451_v18 }
 0x1a8   :  { %v2476_v2 = vpop.f32.mrf.mxu2  ;;  %v2502_v3 = vpop.f32.mrf.mxu0 }
 0x1a9   :  { %v2489_v49 = vpop.f32.mrf.mxu3  ;;  %v2465_v4 = vpop.f32.mrf.mxu1  ;;  %v2477_v23 = vadd.f32 %v2476_v2, %v2464_v19 }
 0x1ab   :  { %v2490_v33 = vadd.f32 %v2489_v49, %v2477_v23 }
 0x1ad   :  { %v2503_v9 = vadd.f32 %v2502_v3, %v2490_v33 }
 0x1b0   :  { %v2478_v11 = vpop.f32.mrf.mxu2  ;;  %v2504_v13 = vpop.f32.mrf.mxu0 }
 0x1b1   :  { %v2491_v7 = vpop.f32.mrf.mxu3 }
 0x1c1   :  { %v2515_v24 = vpop.f32.mrf.mxu1 }
 0x1c2   :  { %v2516_v25 = vadd.f32 %v2515_v24, %v2503_v9 }
 0x1c8   :  { %v2528_v27 = vpop.f32.mrf.mxu2  ;;  %v2554_v53 = vpop.f32.mrf.mxu0 }
 0x1c9   :  { %v2541_v28 = vpop.f32.mrf.mxu3  ;;  %v2529_v29 = vadd.f32 %v2528_v27, %v2516_v25  ;;  %v2517_v30 = vpop.f32.mrf.mxu1 }
 0x1cb   :  { %v2542_v26 = vadd.f32 %v2541_v28, %v2529_v29 }
 0x1cd   :  { %v2555_v31 = vadd.f32 %v2554_v53, %v2542_v26 }
 0x1d0   :  { %v2530_v32 = vpop.f32.mrf.mxu2  ;;  %v2556_v20 = vpop.f32.mrf.mxu0 }
 0x1d1   :  { %v2543_v34 = vpop.f32.mrf.mxu3  ;;  %v2567_v14 = vpop.f32.mrf.mxu1 }
 0x1d2   :  { %v2568_v35 = vadd.f32 %v2567_v14, %v2555_v31 }
 0x1d4   :  { %v2572_v36 = vmax.f32 %v2568_v35, 0.0 }
 0x1d6   :  { %v2574_v37 = vpack.c.bf16 %v2572_v36, %v2572_v36 }
 0x1d8   :  { %2728 = vmatmul.bf16.vlgmr.msra.gmra.mxu3 %v2574_v37 }
 0x1d9   :  { %v2569_v38 = vpop.f32.mrf.mxu1 }
 0x1e8   :  { %v2716_v39 = vpop.f32.mrf.mxu2 }
 0x1e9   :  { %v2717_v44 = vadd.f32 %v4454_v46, %v2716_v39 }
 0x1f0   :  { %v2718_v40 = vpop.f32.mrf.mxu2 }
 0x25b   :  { %v2729_v41 = vpop.f32.mrf.mxu3 }
 0x25c   :  { %v2730_v42 = vadd.f32 %v2729_v41, %v2717_v44 }
 0x25e   :  { %2734 = vst.msk [vmem:[#allocation2] sm:$0x3] %vm2733_vm1, %v2730_v42 }
 0x25f   :  { %2745 = dma.vmem_to_hbm [thread:$0]  %s2741_s24, 32, %s2743_s26, [#allocation3]  }
 0x263   :  { %v2731_v43 = vpop.f32.mrf.mxu3 }
 0x264   :  { %4485 = dma.done.wait [#allocation3], 32  }
 0x265   :  { %4486 = vsyncadd [#allocation3], 4294967264 }
 0x266   :  { %2750 = vsyncpa [#allocation3], 1 }

</bundles_post_ra>
